<compile_context>
chip_gen: v6e
topology: v6e:2x2x1
jax: 0.10.0
libtpu: 0.0.40
codegen_flags: <defaults>
</compile_context>

<pallas_src>
import jax
import jax.numpy as jnp
from jax import lax
from jax.experimental import pallas as pl
from jax.experimental.pallas import tpu as pltpu


def _round_up(x, m):
    return ((x + m - 1) // m) * m


def _make_mlp_kernel(num_layers, sub_rows, n_sub):
    """Kernel body: (x_ref, w0, b0, ..., w{L-1}, b{L-1}, o_ref).

    x_ref:  (Tp, P*dim_in)  bf16   packed activations (P samples per row)
    w_l:    (P*in_l, P*out_l) bf16 block-diagonal weights
    b_l:    (1, P*out_l)    f32
    o_ref:  (Tp, P*dim_out) f32
    """

    def kernel(*refs):
        x_ref = refs[0]
        o_ref = refs[-1]
        param_refs = refs[1:-1]

        def chunk(c, carry):
            # Aligned sub-chunk of the big BlockSpec tile: keeps the live f32
            # activation small (vreg pressure) while the DMA tile stays large.
            r0 = pl.multiple_of(c * sub_rows, sub_rows)
            h = x_ref[pl.ds(r0, sub_rows), :]          # bf16
            for l in range(num_layers):
                w = param_refs[2 * l][...]             # bf16
                b = param_refs[2 * l + 1][...]         # f32, (1, P*out_l)
                acc = jnp.dot(h, w, preferred_element_type=jnp.float32) + b
                if l != num_layers - 1:
                    h = jnp.maximum(acc, 0.0).astype(jnp.bfloat16)
                else:
                    h = acc                            # final layer stays f32
            o_ref[pl.ds(r0, sub_rows), :] = h.astype(o_ref.dtype)
            return carry

        lax.fori_loop(0, n_sub, chunk, 0, unroll=True)

    return kernel


def mlp_forward_pallas(x, weights, biases, *, tile_n=4096, sub_n=512):
    """MLP forward (x @ W0 + b0 -> relu -> ... -> x @ W{L-1} + b{L-1}).

    x:        [N, dim_in] float32 (cast to bf16 for the HBM stream)
    weights:  list of [in_l, out_l] float32 (transposed vs. torch Linear)
    biases:   list of [1, out_l]   float32
    tile_n:   samples per grid step (tune per generation; keep >=2 tiles on
              v7x so both TensorCores get work).
    sub_n:    samples per in-kernel compute chunk (vreg-pressure knob).
    """
    num_layers = len(weights)
    N, dim_in = x.shape
    dim_out = weights[-1].shape[1]

    # Packing factor: P samples per 128-lane row (falls back to 1 if dim_in
    # does not divide 128 -- kernel still works, just lane-sparse).
    P = 128 // dim_in if 128 % dim_in == 0 else 1

    # Normalize tile sizes: bf16 sublane tiling is (16, 128), so keep packed
    # row counts multiples of 16.
    sub_n = _round_up(max(sub_n, 16 * P), 16 * P)
    tile_n = max(tile_n, sub_n)
    tile_n = min(tile_n, _round_up(N, sub_n))   # don't over-pad tiny batches
    tile_n = _round_up(tile_n, sub_n)
    Sp = sub_n // P                 # packed rows per compute chunk
    Tp = tile_n // P                # packed rows per grid step
    n_sub = Tp // Sp

    # Arbitrary N: pad with zero rows to a multiple of tile_n, slice at the end.
    n_tiles = pl.cdiv(N, tile_n)
    Npad = n_tiles * tile_n
    if Npad != N:
        x = jnp.pad(x, ((0, Npad - N), (0, 0)))

    # Bit-identical repack to a lane-dense slab + bf16 cast for the HBM stream
    # (pure layout plumbing; in a real pipeline the producer would emit bf16).
    Np = Npad // P
    x_p = x.reshape(Np, P * dim_in).astype(jnp.bfloat16)

    # Block-diagonal weights / tiled biases (precompute once in production).
    eye_p = jnp.eye(P, dtype=jnp.float32)
    in_specs = [pl.BlockSpec((Tp, P * dim_in), lambda i: (i, 0))]
    flat_params = []
    for w, b in zip(weights, biases):
        w_p = jnp.kron(eye_p, w).astype(jnp.bfloat16)      # (P*in, P*out)
        b_p = jnp.tile(b.reshape(1, -1), (1, P)).astype(jnp.float32)
        # Full-array blocks; constant index_map -> fetched once, never re-DMAed.
        in_specs.append(pl.BlockSpec(w_p.shape, lambda i: (0, 0)))
        in_specs.append(pl.BlockSpec(b_p.shape, lambda i: (0, 0)))
        flat_params.extend([w_p, b_p])

    out_spec = pl.BlockSpec((Tp, P * dim_out), lambda i: (i, 0))
    out_shape = jax.ShapeDtypeStruct((Np, P * dim_out), jnp.float32)

    kernel = _make_mlp_kernel(num_layers, Sp, n_sub)

    fn = pl.pallas_call(
        kernel,
        out_shape=out_shape,
        grid_spec=pltpu.PrefetchScalarGridSpec(
            num_scalar_prefetch=0,
            grid=(n_tiles,),
            in_specs=in_specs,
            out_specs=out_spec,
        ),
        compiler_params=pltpu.CompilerParams(
            dimension_semantics=("parallel",),
            # vmem_limit_bytes only needed if tile_n is pushed far higher;
            # footprint here is ~2 MiB vs 16-32 MiB default scoped limits.
        ),
    )
    out_p = fn(x_p, *flat_params)
    # Free, bit-identical unpack back to [N, dim_out].
    return out_p.reshape(Npad, dim_out)[:N]


def init_mlp_params(key, dim_in, dim_out, dim_hidden, num_layers):
    """Xavier-uniform (relu gain) init, zero bias; weights stored [in, out]."""
    gain = jnp.sqrt(2.0)  # nn.init.calculate_gain('relu')
    weights, biases = [], []
    for l in range(num_layers):
        d_in = dim_in if l == 0 else dim_hidden
        d_out = dim_out if l == num_layers - 1 else dim_hidden
        key, sub = jax.random.split(key)
        limit = gain * jnp.sqrt(6.0 / (d_in + d_out))
        w = jax.random.uniform(sub, (d_in, d_out), jnp.float32, -limit, limit)
        b = jnp.zeros((1, d_out), jnp.float32)
        weights.append(w)
        biases.append(b)
    return weights, biases


def mlp_forward_ref(x, weights, biases):
    """Pure-JAX reference mirroring the kernel's precision policy
    (bf16 matmul operands, f32 accumulation, f32 bias/ReLU)."""
    num_layers = len(weights)
    h = x.astype(jnp.bfloat16)
    for l in range(num_layers):
        acc = jnp.dot(h, weights[l].astype(jnp.bfloat16),
                      preferred_element_type=jnp.float32) + biases[l]
        if l != num_layers - 1:
            h = jnp.maximum(acc, 0.0).astype(jnp.bfloat16)
        else:
            h = acc
    return h


if __name__ == "__main__":
    # Small MLP consistent with nerf usage: MLP(dim_in=8, dim_out=4,
    # dim_hidden=32, num_layers=3) on a flat batch of points.  N is
    # deliberately not a multiple of the tile to exercise padding; tile_n=1024
    # gives a 2-step parallel grid (both v7x TensorCores busy).
    dim_in, dim_out, dim_hidden, num_layers = 8, 4, 32, 3
    N = 2000

    key = jax.random.PRNGKey(0)
    key, kx = jax.random.split(key)
    x = jax.random.normal(kx, (N, dim_in), jnp.float32)

    weights, biases = init_mlp_params(key, dim_in, dim_out, dim_hidden,
                                      num_layers)

    out = mlp_forward_pallas(x, weights, biases, tile_n=1024, sub_n=256)
    out = jax.block_until_ready(out)

    ref = mlp_forward_ref(x, weights, biases)
    assert out.shape == (N, dim_out)
    assert jnp.allclose(out, ref, atol=1e-2, rtol=1e-2), "mismatch vs reference"

    print("KERNEL_OK")
</pallas_src>

<mosaic_0001>
module attributes {stable_mosaic.version = 11 : i64} {
  func.func @kernel(%arg0: i32, %arg1: memref<64x128xbf16, #tpu.memory_space<vmem>>, %arg2: memref<128x512xbf16, #tpu.memory_space<vmem>>, %arg3: memref<1x512xf32, #tpu.memory_space<vmem>>, %arg4: memref<512x512xbf16, #tpu.memory_space<vmem>>, %arg5: memref<1x512xf32, #tpu.memory_space<vmem>>, %arg6: memref<512x64xbf16, #tpu.memory_space<vmem>>, %arg7: memref<1x64xf32, #tpu.memory_space<vmem>>, %arg8: memref<64x64xf32, #tpu.memory_space<vmem>>) attributes {dimension_semantics = [#tpu.dimension_semantics<parallel>], iteration_bounds = array<i64: 2>, scalar_prefetch = 0 : i64, scratch_operands = 0 : i64, tpu.core_type = #tpu.core_type<tc>, window_params = [{transform_indices = @transform_0, window_bounds = array<i64: 64, 128>}, {pipeline_mode = #tpu.pipeline_mode<synchronous>, transform_indices = @transform_1, window_bounds = array<i64: 128, 512>}, {pipeline_mode = #tpu.pipeline_mode<synchronous>, transform_indices = @transform_2, window_bounds = array<i64: 1, 512>}, {pipeline_mode = #tpu.pipeline_mode<synchronous>, transform_indices = @transform_3, window_bounds = array<i64: 512, 512>}, {pipeline_mode = #tpu.pipeline_mode<synchronous>, transform_indices = @transform_4, window_bounds = array<i64: 1, 512>}, {pipeline_mode = #tpu.pipeline_mode<synchronous>, transform_indices = @transform_5, window_bounds = array<i64: 512, 64>}, {pipeline_mode = #tpu.pipeline_mode<synchronous>, transform_indices = @transform_6, window_bounds = array<i64: 1, 64>}, {transform_indices = @transform_7, window_bounds = array<i64: 64, 64>}]} {
    %c0_i32 = arith.constant 0 : i32
    %c16_i32 = arith.constant 16 : i32
    %0 = arith.muli %c0_i32, %c16_i32 : i32
    %1 = tpu.assume_multiple %0, 16 : i32
    %2 = arith.index_cast %1 : i32 to index
    %c0 = arith.constant 0 : index
    %3 = vector.load %arg1[%2, %c0] : memref<64x128xbf16, #tpu.memory_space<vmem>>, vector<16x128xbf16>
    %c0_0 = arith.constant 0 : index
    %c0_1 = arith.constant 0 : index
    %4 = vector.load %arg2[%c0_0, %c0_1] : memref<128x512xbf16, #tpu.memory_space<vmem>>, vector<128x512xbf16>
    %c0_2 = arith.constant 0 : index
    %c0_3 = arith.constant 0 : index
    %5 = vector.load %arg3[%c0_2, %c0_3] : memref<1x512xf32, #tpu.memory_space<vmem>>, vector<1x512xf32>
    %cst = arith.constant dense<0.000000e+00> : vector<16x512xf32>
    %6 = tpu.matmul %3, %4, %cst {dimension_numbers = #tpu.dot_dimension_numbers<[1], [0], [0], [1], [0, 0, 1, 1], [], []>} : vector<16x128xbf16>, vector<128x512xbf16>, vector<16x512xf32> -> vector<16x512xf32>
    %7 = vector.broadcast %5 : vector<1x512xf32> to vector<16x512xf32>
    %8 = arith.addf %6, %7 : vector<16x512xf32>
    %cst_4 = arith.constant 0.000000e+00 : f32
    %9 = vector.broadcast %cst_4 : f32 to vector<16x512xf32>
    %10 = arith.maximumf %8, %9 : vector<16x512xf32>
    %11 = arith.truncf %10 : vector<16x512xf32> to vector<16x512xbf16>
    %c0_5 = arith.constant 0 : index
    %c0_6 = arith.constant 0 : index
    %12 = vector.load %arg4[%c0_5, %c0_6] : memref<512x512xbf16, #tpu.memory_space<vmem>>, vector<512x512xbf16>
    %c0_7 = arith.constant 0 : index
    %c0_8 = arith.constant 0 : index
    %13 = vector.load %arg5[%c0_7, %c0_8] : memref<1x512xf32, #tpu.memory_space<vmem>>, vector<1x512xf32>
    %cst_9 = arith.constant dense<0.000000e+00> : vector<16x512xf32>
    %14 = tpu.matmul %11, %12, %cst_9 {dimension_numbers = #tpu.dot_dimension_numbers<[1], [0], [0], [1], [0, 0, 1, 1], [], []>} : vector<16x512xbf16>, vector<512x512xbf16>, vector<16x512xf32> -> vector<16x512xf32>
    %15 = vector.broadcast %13 : vector<1x512xf32> to vector<16x512xf32>
    %16 = arith.addf %14, %15 : vector<16x512xf32>
    %cst_10 = arith.constant 0.000000e+00 : f32
    %17 = vector.broadcast %cst_10 : f32 to vector<16x512xf32>
    %18 = arith.maximumf %16, %17 : vector<16x512xf32>
    %19 = arith.truncf %18 : vector<16x512xf32> to vector<16x512xbf16>
    %c0_11 = arith.constant 0 : index
    %c0_12 = arith.constant 0 : index
    %20 = vector.load %arg6[%c0_11, %c0_12] : memref<512x64xbf16, #tpu.memory_space<vmem>>, vector<512x64xbf16>
    %c0_13 = arith.constant 0 : index
    %c0_14 = arith.constant 0 : index
    %21 = vector.load %arg7[%c0_13, %c0_14] : memref<1x64xf32, #tpu.memory_space<vmem>>, vector<1x64xf32>
    %cst_15 = arith.constant dense<0.000000e+00> : vector<16x64xf32>
    %22 = tpu.matmul %19, %20, %cst_15 {dimension_numbers = #tpu.dot_dimension_numbers<[1], [0], [0], [1], [0, 0, 1, 1], [], []>} : vector<16x512xbf16>, vector<512x64xbf16>, vector<16x64xf32> -> vector<16x64xf32>
    %23 = vector.broadcast %21 : vector<1x64xf32> to vector<16x64xf32>
    %24 = arith.addf %22, %23 : vector<16x64xf32>
    %25 = arith.index_cast %1 : i32 to index
    %c0_16 = arith.constant 0 : index
    %26 = vector.load %arg8[%25, %c0_16] : memref<64x64xf32, #tpu.memory_space<vmem>>, vector<16x64xf32>
    tpu.vector_store %arg8[%25, %c0_16], %24 {strides = array<i32>} : memref<64x64xf32, #tpu.memory_space<vmem>>, vector<16x64xf32>,
    %c1_i32 = arith.constant 1 : i32
    %c16_i32_17 = arith.constant 16 : i32
    %27 = arith.muli %c1_i32, %c16_i32_17 : i32
    %28 = tpu.assume_multiple %27, 16 : i32
    %29 = arith.index_cast %28 : i32 to index
    %c0_18 = arith.constant 0 : index
    %30 = vector.load %arg1[%29, %c0_18] : memref<64x128xbf16, #tpu.memory_space<vmem>>, vector<16x128xbf16>
    %c0_19 = arith.constant 0 : index
    %c0_20 = arith.constant 0 : index
    %31 = vector.load %arg2[%c0_19, %c0_20] : memref<128x512xbf16, #tpu.memory_space<vmem>>, vector<128x512xbf16>
    %c0_21 = arith.constant 0 : index
    %c0_22 = arith.constant 0 : index
    %32 = vector.load %arg3[%c0_21, %c0_22] : memref<1x512xf32, #tpu.memory_space<vmem>>, vector<1x512xf32>
    %cst_23 = arith.constant dense<0.000000e+00> : vector<16x512xf32>
    %33 = tpu.matmul %30, %31, %cst_23 {dimension_numbers = #tpu.dot_dimension_numbers<[1], [0], [0], [1], [0, 0, 1, 1], [], []>} : vector<16x128xbf16>, vector<128x512xbf16>, vector<16x512xf32> -> vector<16x512xf32>
    %34 = vector.broadcast %32 : vector<1x512xf32> to vector<16x512xf32>
    %35 = arith.addf %33, %34 : vector<16x512xf32>
    %cst_24 = arith.constant 0.000000e+00 : f32
    %36 = vector.broadcast %cst_24 : f32 to vector<16x512xf32>
    %37 = arith.maximumf %35, %36 : vector<16x512xf32>
    %38 = arith.truncf %37 : vector<16x512xf32> to vector<16x512xbf16>
    %c0_25 = arith.constant 0 : index
    %c0_26 = arith.constant 0 : index
    %39 = vector.load %arg4[%c0_25, %c0_26] : memref<512x512xbf16, #tpu.memory_space<vmem>>, vector<512x512xbf16>
    %c0_27 = arith.constant 0 : index
    %c0_28 = arith.constant 0 : index
    %40 = vector.load %arg5[%c0_27, %c0_28] : memref<1x512xf32, #tpu.memory_space<vmem>>, vector<1x512xf32>
    %cst_29 = arith.constant dense<0.000000e+00> : vector<16x512xf32>
    %41 = tpu.matmul %38, %39, %cst_29 {dimension_numbers = #tpu.dot_dimension_numbers<[1], [0], [0], [1], [0, 0, 1, 1], [], []>} : vector<16x512xbf16>, vector<512x512xbf16>, vector<16x512xf32> -> vector<16x512xf32>
    %42 = vector.broadcast %40 : vector<1x512xf32> to vector<16x512xf32>
    %43 = arith.addf %41, %42 : vector<16x512xf32>
    %cst_30 = arith.constant 0.000000e+00 : f32
    %44 = vector.broadcast %cst_30 : f32 to vector<16x512xf32>
    %45 = arith.maximumf %43, %44 : vector<16x512xf32>
    %46 = arith.truncf %45 : vector<16x512xf32> to vector<16x512xbf16>
    %c0_31 = arith.constant 0 : index
    %c0_32 = arith.constant 0 : index
    %47 = vector.load %arg6[%c0_31, %c0_32] : memref<512x64xbf16, #tpu.memory_space<vmem>>, vector<512x64xbf16>
    %c0_33 = arith.constant 0 : index
    %c0_34 = arith.constant 0 : index
    %48 = vector.load %arg7[%c0_33, %c0_34] : memref<1x64xf32, #tpu.memory_space<vmem>>, vector<1x64xf32>
    %cst_35 = arith.constant dense<0.000000e+00> : vector<16x64xf32>
    %49 = tpu.matmul %46, %47, %cst_35 {dimension_numbers = #tpu.dot_dimension_numbers<[1], [0], [0], [1], [0, 0, 1, 1], [], []>} : vector<16x512xbf16>, vector<512x64xbf16>, vector<16x64xf32> -> vector<16x64xf32>
    %50 = vector.broadcast %48 : vector<1x64xf32> to vector<16x64xf32>
    %51 = arith.addf %49, %50 : vector<16x64xf32>
    %52 = arith.index_cast %28 : i32 to index
    %c0_36 = arith.constant 0 : index
    %53 = vector.load %arg8[%52, %c0_36] : memref<64x64xf32, #tpu.memory_space<vmem>>, vector<16x64xf32>
    tpu.vector_store %arg8[%52, %c0_36], %51 {strides = array<i32>} : memref<64x64xf32, #tpu.memory_space<vmem>>, vector<16x64xf32>,
    %c2_i32 = arith.constant 2 : i32
    %c16_i32_37 = arith.constant 16 : i32
    %54 = arith.muli %c2_i32, %c16_i32_37 : i32
    %55 = tpu.assume_multiple %54, 16 : i32
    %56 = arith.index_cast %55 : i32 to index
    %c0_38 = arith.constant 0 : index
    %57 = vector.load %arg1[%56, %c0_38] : memref<64x128xbf16, #tpu.memory_space<vmem>>, vector<16x128xbf16>
    %c0_39 = arith.constant 0 : index
    %c0_40 = arith.constant 0 : index
    %58 = vector.load %arg2[%c0_39, %c0_40] : memref<128x512xbf16, #tpu.memory_space<vmem>>, vector<128x512xbf16>
    %c0_41 = arith.constant 0 : index
    %c0_42 = arith.constant 0 : index
    %59 = vector.load %arg3[%c0_41, %c0_42] : memref<1x512xf32, #tpu.memory_space<vmem>>, vector<1x512xf32>
    %cst_43 = arith.constant dense<0.000000e+00> : vector<16x512xf32>
    %60 = tpu.matmul %57, %58, %cst_43 {dimension_numbers = #tpu.dot_dimension_numbers<[1], [0], [0], [1], [0, 0, 1, 1], [], []>} : vector<16x128xbf16>, vector<128x512xbf16>, vector<16x512xf32> -> vector<16x512xf32>
    %61 = vector.broadcast %59 : vector<1x512xf32> to vector<16x512xf32>
    %62 = arith.addf %60, %61 : vector<16x512xf32>
    %cst_44 = arith.constant 0.000000e+00 : f32
    %63 = vector.broadcast %cst_44 : f32 to vector<16x512xf32>
    %64 = arith.maximumf %62, %63 : vector<16x512xf32>
    %65 = arith.truncf %64 : vector<16x512xf32> to vector<16x512xbf16>
    %c0_45 = arith.constant 0 : index
    %c0_46 = arith.constant 0 : index
    %66 = vector.load %arg4[%c0_45, %c0_46] : memref<512x512xbf16, #tpu.memory_space<vmem>>, vector<512x512xbf16>
    %c0_47 = arith.constant 0 : index
    %c0_48 = arith.constant 0 : index
    %67 = vector.load %arg5[%c0_47, %c0_48] : memref<1x512xf32, #tpu.memory_space<vmem>>, vector<1x512xf32>
    %cst_49 = arith.constant dense<0.000000e+00> : vector<16x512xf32>
    %68 = tpu.matmul %65, %66, %cst_49 {dimension_numbers = #tpu.dot_dimension_numbers<[1], [0], [0], [1], [0, 0, 1, 1], [], []>} : vector<16x512xbf16>, vector<512x512xbf16>, vector<16x512xf32> -> vector<16x512xf32>
    %69 = vector.broadcast %67 : vector<1x512xf32> to vector<16x512xf32>
    %70 = arith.addf %68, %69 : vector<16x512xf32>
    %cst_50 = arith.constant 0.000000e+00 : f32
    %71 = vector.broadcast %cst_50 : f32 to vector<16x512xf32>
    %72 = arith.maximumf %70, %71 : vector<16x512xf32>
    %73 = arith.truncf %72 : vector<16x512xf32> to vector<16x512xbf16>
    %c0_51 = arith.constant 0 : index
    %c0_52 = arith.constant 0 : index
    %74 = vector.load %arg6[%c0_51, %c0_52] : memref<512x64xbf16, #tpu.memory_space<vmem>>, vector<512x64xbf16>
    %c0_53 = arith.constant 0 : index
    %c0_54 = arith.constant 0 : index
    %75 = vector.load %arg7[%c0_53, %c0_54] : memref<1x64xf32, #tpu.memory_space<vmem>>, vector<1x64xf32>
    %cst_55 = arith.constant dense<0.000000e+00> : vector<16x64xf32>
    %76 = tpu.matmul %73, %74, %cst_55 {dimension_numbers = #tpu.dot_dimension_numbers<[1], [0], [0], [1], [0, 0, 1, 1], [], []>} : vector<16x512xbf16>, vector<512x64xbf16>, vector<16x64xf32> -> vector<16x64xf32>
    %77 = vector.broadcast %75 : vector<1x64xf32> to vector<16x64xf32>
    %78 = arith.addf %76, %77 : vector<16x64xf32>
    %79 = arith.index_cast %55 : i32 to index
    %c0_56 = arith.constant 0 : index
    %80 = vector.load %arg8[%79, %c0_56] : memref<64x64xf32, #tpu.memory_space<vmem>>, vector<16x64xf32>
    tpu.vector_store %arg8[%79, %c0_56], %78 {strides = array<i32>} : memref<64x64xf32, #tpu.memory_space<vmem>>, vector<16x64xf32>,
    %c3_i32 = arith.constant 3 : i32
    %c16_i32_57 = arith.constant 16 : i32
    %81 = arith.muli %c3_i32, %c16_i32_57 : i32
    %82 = tpu.assume_multiple %81, 16 : i32
    %83 = arith.index_cast %82 : i32 to index
    %c0_58 = arith.constant 0 : index
    %84 = vector.load %arg1[%83, %c0_58] : memref<64x128xbf16, #tpu.memory_space<vmem>>, vector<16x128xbf16>
    %c0_59 = arith.constant 0 : index
    %c0_60 = arith.constant 0 : index
    %85 = vector.load %arg2[%c0_59, %c0_60] : memref<128x512xbf16, #tpu.memory_space<vmem>>, vector<128x512xbf16>
    %c0_61 = arith.constant 0 : index
    %c0_62 = arith.constant 0 : index
    %86 = vector.load %arg3[%c0_61, %c0_62] : memref<1x512xf32, #tpu.memory_space<vmem>>, vector<1x512xf32>
    %cst_63 = arith.constant dense<0.000000e+00> : vector<16x512xf32>
    %87 = tpu.matmul %84, %85, %cst_63 {dimension_numbers = #tpu.dot_dimension_numbers<[1], [0], [0], [1], [0, 0, 1, 1], [], []>} : vector<16x128xbf16>, vector<128x512xbf16>, vector<16x512xf32> -> vector<16x512xf32>
    %88 = vector.broadcast %86 : vector<1x512xf32> to vector<16x512xf32>
    %89 = arith.addf %87, %88 : vector<16x512xf32>
    %cst_64 = arith.constant 0.000000e+00 : f32
    %90 = vector.broadcast %cst_64 : f32 to vector<16x512xf32>
    %91 = arith.maximumf %89, %90 : vector<16x512xf32>
    %92 = arith.truncf %91 : vector<16x512xf32> to vector<16x512xbf16>
    %c0_65 = arith.constant 0 : index
    %c0_66 = arith.constant 0 : index
    %93 = vector.load %arg4[%c0_65, %c0_66] : memref<512x512xbf16, #tpu.memory_space<vmem>>, vector<512x512xbf16>
    %c0_67 = arith.constant 0 : index
    %c0_68 = arith.constant 0 : index
    %94 = vector.load %arg5[%c0_67, %c0_68] : memref<1x512xf32, #tpu.memory_space<vmem>>, vector<1x512xf32>
    %cst_69 = arith.constant dense<0.000000e+00> : vector<16x512xf32>
    %95 = tpu.matmul %92, %93, %cst_69 {dimension_numbers = #tpu.dot_dimension_numbers<[1], [0], [0], [1], [0, 0, 1, 1], [], []>} : vector<16x512xbf16>, vector<512x512xbf16>, vector<16x512xf32> -> vector<16x512xf32>
    %96 = vector.broadcast %94 : vector<1x512xf32> to vector<16x512xf32>
    %97 = arith.addf %95, %96 : vector<16x512xf32>
    %cst_70 = arith.constant 0.000000e+00 : f32
    %98 = vector.broadcast %cst_70 : f32 to vector<16x512xf32>
    %99 = arith.maximumf %97, %98 : vector<16x512xf32>
    %100 = arith.truncf %99 : vector<16x512xf32> to vector<16x512xbf16>
    %c0_71 = arith.constant 0 : index
    %c0_72 = arith.constant 0 : index
    %101 = vector.load %arg6[%c0_71, %c0_72] : memref<512x64xbf16, #tpu.memory_space<vmem>>, vector<512x64xbf16>
    %c0_73 = arith.constant 0 : index
    %c0_74 = arith.constant 0 : index
    %102 = vector.load %arg7[%c0_73, %c0_74] : memref<1x64xf32, #tpu.memory_space<vmem>>, vector<1x64xf32>
    %cst_75 = arith.constant dense<0.000000e+00> : vector<16x64xf32>
    %103 = tpu.matmul %100, %101, %cst_75 {dimension_numbers = #tpu.dot_dimension_numbers<[1], [0], [0], [1], [0, 0, 1, 1], [], []>} : vector<16x512xbf16>, vector<512x64xbf16>, vector<16x64xf32> -> vector<16x64xf32>
    %104 = vector.broadcast %102 : vector<1x64xf32> to vector<16x64xf32>
    %105 = arith.addf %103, %104 : vector<16x64xf32>
    %106 = arith.index_cast %82 : i32 to index
    %c0_76 = arith.constant 0 : index
    %107 = vector.load %arg8[%106, %c0_76] : memref<64x64xf32, #tpu.memory_space<vmem>>, vector<16x64xf32>
    tpu.vector_store %arg8[%106, %c0_76], %105 {strides = array<i32>} : memref<64x64xf32, #tpu.memory_space<vmem>>, vector<16x64xf32>,
    %c4_i32 = arith.constant 4 : i32
    return
  }
  func.func @transform_0(%arg0: i32) -> (i32, i32) {
    %c0_i32 = arith.constant 0 : i32
    %c0_i32_0 = arith.constant 0 : i32
    return %arg0, %c0_i32 : i32, i32
  }
  func.func @transform_1(%arg0: i32) -> (i32, i32) {
    %c0_i32 = arith.constant 0 : i32
    %c0_i32_0 = arith.constant 0 : i32
    %c0_i32_1 = arith.constant 0 : i32
    return %c0_i32, %c0_i32_0 : i32, i32
  }
  func.func @transform_2(%arg0: i32) -> (i32, i32) {
    %c0_i32 = arith.constant 0 : i32
    %c0_i32_0 = arith.constant 0 : i32
    %c0_i32_1 = arith.constant 0 : i32
    return %c0_i32, %c0_i32_0 : i32, i32
  }
  func.func @transform_3(%arg0: i32) -> (i32, i32) {
    %c0_i32 = arith.constant 0 : i32
    %c0_i32_0 = arith.constant 0 : i32
    %c0_i32_1 = arith.constant 0 : i32
    return %c0_i32, %c0_i32_0 : i32, i32
  }
  func.func @transform_4(%arg0: i32) -> (i32, i32) {
    %c0_i32 = arith.constant 0 : i32
    %c0_i32_0 = arith.constant 0 : i32
    %c0_i32_1 = arith.constant 0 : i32
    return %c0_i32, %c0_i32_0 : i32, i32
  }
  func.func @transform_5(%arg0: i32) -> (i32, i32) {
    %c0_i32 = arith.constant 0 : i32
    %c0_i32_0 = arith.constant 0 : i32
    %c0_i32_1 = arith.constant 0 : i32
    return %c0_i32, %c0_i32_0 : i32, i32
  }
  func.func @transform_6(%arg0: i32) -> (i32, i32) {
    %c0_i32 = arith.constant 0 : i32
    %c0_i32_0 = arith.constant 0 : i32
    %c0_i32_1 = arith.constant 0 : i32
    return %c0_i32, %c0_i32_0 : i32, i32
  }
  func.func @transform_7(%arg0: i32) -> (i32, i32) {
    %c0_i32 = arith.constant 0 : i32
    %c0_i32_0 = arith.constant 0 : i32
    return %arg0, %c0_i32 : i32, i32
  }
}

</mosaic_0001>

<bundles_post_ra>
// kernel: tpu_custom_call.1
= control target key start
LH: loop header
LB: loop body
LE: loop exit
PB: predicated region body
PF: predicated region fallthrough
CT: control target
= control target key end

     0   :  { %12 = vsyncpa [#allocation3], 0  ;;  %s9110_s24 = smov 0   ;;  %s10112_s0 = inlined_call_operand.vmem [shape: bf16[128,128], index: 0, kind: input, shape index: {}]   ;;  %s10113_s1 = inlined_call_operand.vmem [shape: bf16[128,512], index: 1, kind: input, shape index: {}]   ;;  %s10114_s2 = inlined_call_operand.vmem [shape: f32[1,512], index: 2, kind: input, shape index: {}]   ;;  %s10115_s3 = inlined_call_operand.hbm [shape: bf16[512,512], index: 3, kind: input, shape index: {}]   ;;  %s10116_s4 = inlined_call_operand.vmem [shape: f32[1,512], index: 4, kind: input, shape index: {}]   ;;  %s10117_s5 = inlined_call_operand.vmem [shape: bf16[512,64], index: 5, kind: input, shape index: {}]   ;;  %s10118_s6 = inlined_call_operand.vmem [shape: f32[1,64], index: 6, kind: input, shape index: {}]   ;;  %s10119_s7 = inlined_call_operand.vmem [shape: f32[128,64], index: 7, kind: output, shape index: {}]  }
   0x1 LB: > { %s6937_s25 = sadd.s32 4294967295, %s9064_s24   ;;  %p6939_p0 = scmp.ge.s32.totalorder %s9064_s24, 1  ;;  %s9064_s24 = sphi %s9110_s24, %s18_s24  }
   0x2   : > { %p201_p1 = scmp.lt.s32.totalorder %s9064_s24, 3  ;;  %s9066_s26 = smov [#allocation2]  }
   0x3   : > { %s219_s27 = sshll.u32 %s9066_s26, 4  ;;  %p9124_p3 = scmp.eq.s32.totalorder %s6937_s25, 0  ;;  %s220_s27 = int_to_ptr.vmem [resolvable:$true] %s219_s27 }
   0x4   : > { %p9118_p2 = pnand %p6939_p0, %p201_p1  ;;  %s9039_s30 = scalar_lea.vmem %s220_s27, 16384 }
   0x5   : > { %p9040_p7 = scmp.ne.s32.totalorder %s220_s27, %s9039_s30  ;;  %p9047_p10 = scmp.lt.s32.totalorder %s220_s27, %s220_s27 }
   0x6   : > { %p7918_p4 = pneg %p9118_p2  ;;  %p9048_p11 = scmp.lt.s32.totalorder %s9039_s30, %s9039_s30 }
   0x8   : > { %p7919_p5 = pnand %p9124_p3, %p7918_p4  ;;  %p9049_p12 = por %p9048_p11, %p9047_p10 }
   0xa   : > { %p9030_p6 = pneg %p7919_p5 }
   0xc   : > { %p9042_p8 = pnand %p9040_p7, %p9030_p6 }
   0xe   : > { %p9043_p9 = pneg %p9042_p8 }
  0x10   : > { %p9050_p13 = pnand %p9049_p12, %p9043_p9 }
  0x12   : > { %9053 = shalt.err (!%p9050_p13)
}
  0x13   : > { %s9067_s8 = smov 256   ;;  %s9068_s9 = smov 16  }
  0x14   : > { %7921 = dma.hbm_to_vmem [thread:$0]  (!%p7919_p5), %s10115_s3, 16384, %s220_s27, [#allocation3], %s9067_s8, %s9067_s8, %s9068_s9  }
  0x15   : > { %253 = sbr.rel (%p9118_p2) target bundleno = 2267 (0x8db), region = 48 }
  0x1a   : > { %9059 = dma.done.wait (%p9124_p3), [#allocation3], 16384  }
  0x1b   : > { %9061 = vsyncadd (%p9124_p3), [#allocation3], 4294950912  ;;  %v9069_v0 = vmov 0   ;;  %v7936_v1 = vld [vmem:[%s10113_s1 + $0xe4] ss:$16 sps:$4 sm:$0xff]   ;;  %s6944_s9 = sshll.u32 %s6937_s25, 3 }
  0x1c   : > { %552 = vmatprep.mubr.bf16.mxu0 %v9069_v0  ;;  %595 = vmatprep.mubr.bf16.mxu1 %v9069_v0  ;;  %v7938_v2 = vld [vmem:[%s10113_s1 + $0xec] ss:$16 sps:$4 sm:$0xff]   ;;  %v7940_v3 = vld [vmem:[%s10113_s1 + $0xe0] ss:$16 sps:$4 sm:$0xff]   ;;  %v7941_v4 = vld [vmem:[%s10113_s1 + $0xe8] ss:$16 sps:$4 sm:$0xff]  }
  0x1d   : > { %520 = vmatprep.subr.bf16.mxu0 %v7936_v1  ;;  %563 = vmatprep.subr.bf16.mxu1 %v7938_v2  ;;  %v7942_v5 = vld [vmem:[%s10113_s1 + $0xc4] ss:$16 sps:$4 sm:$0xff]   ;;  %v7944_v6 = vld [vmem:[%s10113_s1 + $0xcc] ss:$16 sps:$4 sm:$0xff]   ;;  %v7946_v7 = vld [vmem:[%s10113_s1 + $0xc0] ss:$16 sps:$4 sm:$0xff]  }
  0x1e   : > { %521 = vmatpush1.bf16.msra.mxu0 %v7940_v3  ;;  %564 = vmatpush1.bf16.msra.mxu1 %v7941_v4  ;;  %v7947_v8 = vld [vmem:[%s10113_s1 + $0xc8] ss:$16 sps:$4 sm:$0xff]   ;;  %v7948_v9 = vld [vmem:[%s10113_s1 + $0xa4] ss:$16 sps:$4 sm:$0xff]   ;;  %v7950_v10 = vld [vmem:[%s10113_s1 + $0xac] ss:$16 sps:$4 sm:$0xff]  }
  0x1f   : > { %522 = vmatprep.subr.bf16.mxu0 %v7942_v5  ;;  %565 = vmatprep.subr.bf16.mxu1 %v7944_v6  ;;  %v7952_v11 = vld [vmem:[%s10113_s1 + $0xa0] ss:$16 sps:$4 sm:$0xff]   ;;  %v7953_v12 = vld [vmem:[%s10113_s1 + $0xa8] ss:$16 sps:$4 sm:$0xff]   ;;  %v7954_v13 = vld [vmem:[%s10113_s1 + $0x84] ss:$16 sps:$4 sm:$0xff]  }
  0x20   : > { %v7956_v14 = vld [vmem:[%s10113_s1 + $0x8c] ss:$16 sps:$4 sm:$0xff]   ;;  %p286_p0 = scmp.lt.s32.totalorder %s6944_s9, 15  ;;  %v7958_v15 = vld [vmem:[%s10113_s1 + $0x80] ss:$16 sps:$4 sm:$0xff]   ;;  %vm1937_vm0 = vcmask 523264  }
  0x21   : > { %v7959_v16 = vld [vmem:[%s10113_s1 + $0x88] ss:$16 sps:$4 sm:$0xff]   ;;  %v7960_v17 = vld [vmem:[%s10113_s1 + $0x64] ss:$16 sps:$4 sm:$0xff]   ;;  %v7962_v18 = vld [vmem:[%s10113_s1 + $0x6c] ss:$16 sps:$4 sm:$0xff]  }
  0x22   : > { %523 = vmatpush1.bf16.msra.mxu0 %v7946_v7  ;;  %566 = vmatpush1.bf16.msra.mxu1 %v7947_v8  ;;  %s10123_s9 = smov (!%p286_p0, %s6944_s9), 15  ;;  %v7964_v19 = vld [vmem:[%s10113_s1 + $0x60] ss:$16 sps:$4 sm:$0xff]   ;;  %v7965_v20 = vld [vmem:[%s10113_s1 + $0x68] ss:$16 sps:$4 sm:$0xff]  }
  0x23   : > { %524 = vmatprep.subr.bf16.mxu0 %v7948_v9  ;;  %567 = vmatprep.subr.bf16.mxu1 %v7950_v10  ;;  %v7966_v21 = vld [vmem:[%s10113_s1 + $0x44] ss:$16 sps:$4 sm:$0xff]   ;;  %v7968_v22 = vld [vmem:[%s10113_s1 + $0x4c] ss:$16 sps:$4 sm:$0xff]   ;;  %s6945_s15 = sshll.u32 %s10123_s9, 2  ;;  %s6947_s14 = sshll.u32 %s10123_s9, 3 }
  0x24   : > { %v7970_v23 = vld [vmem:[%s10113_s1 + $0x40] ss:$16 sps:$4 sm:$0xff]   ;;  %v7971_v24 = vld [vmem:[%s10113_s1 + $0x48] ss:$16 sps:$4 sm:$0xff]   ;;  %v7972_v25 = vld [vmem:[%s10113_s1 + $0x24] ss:$16 sps:$4 sm:$0xff]   ;;  %s9226_s23 = scalar_lea.vmem %s10112_s0, %s6945_s15  ;;  %s9504_s17 = scalar_lea.vmem %s10119_s7, %s6947_s14 }
  0x25   : > { %v7974_v26 = vld [vmem:[%s10113_s1 + $0x2c] ss:$16 sps:$4 sm:$0xff]   ;;  %v7976_v27 = vld [vmem:[%s10113_s1 + $0x20] ss:$16 sps:$4 sm:$0xff]   ;;  %v7977_v28 = vld [vmem:[%s10113_s1 + $0x28] ss:$16 sps:$4 sm:$0xff]  }
  0x26   : > { %525 = vmatpush1.bf16.msra.mxu0 %v7952_v11  ;;  %568 = vmatpush1.bf16.msra.mxu1 %v7953_v12  ;;  %v7978_v29 = vld [vmem:[%s10113_s1 + $0x4] ss:$16 sps:$4 sm:$0xff]   ;;  %v7980_v30 = vld [vmem:[%s10113_s1 + $0xc] ss:$16 sps:$4 sm:$0xff]   ;;  %v7982_v31 = vld [vmem:[%s10113_s1] ss:$16 sps:$4 sm:$0xff]  }
  0x27   : > { %526 = vmatprep.subr.bf16.mxu0 %v7954_v13  ;;  %569 = vmatprep.subr.bf16.mxu1 %v7956_v14  ;;  %v7983_v32 = vld [vmem:[%s10113_s1 + $0x8] ss:$16 sps:$4 sm:$0xff]   ;;  %v7987_v33 = vld [vmem:[#allocation2 + $0xe4] ss:$16 sps:$4 sm:$0xff]   ;;  %v7985_v36 = vld [vmem:[#allocation2 + $0xe0] ss:$16 sps:$4 sm:$0xff]  }
  0x28   : > { %v7990_v34 = vld [vmem:[#allocation2 + $0x2e4] ss:$16 sps:$4 sm:$0xff]   ;;  %v7988_v37 = vld [vmem:[#allocation2 + $0x2e0] ss:$16 sps:$4 sm:$0xff]  }
  0x29   : > { %v7984_v35 = vld [vmem:[%s9226_s23] sm:$0xff]  }
  0x2a   : > { %527 = vmatpush1.bf16.msra.mxu0 %v7958_v15  ;;  %570 = vmatpush1.bf16.msra.mxu1 %v7959_v16  ;;  %v7993_v38 = vld [vmem:[#allocation2 + $0xc4] ss:$16 sps:$4 sm:$0xff]   ;;  %v7991_v40 = vld [vmem:[#allocation2 + $0xc0] ss:$16 sps:$4 sm:$0xff]  }
  0x2b   : > { %528 = vmatprep.subr.bf16.mxu0 %v7960_v17  ;;  %571 = vmatprep.subr.bf16.mxu1 %v7962_v18  ;;  %v7996_v39 = vld [vmem:[#allocation2 + $0x2c4] ss:$16 sps:$4 sm:$0xff]   ;;  %v7994_v41 = vld [vmem:[#allocation2 + $0x2c0] ss:$16 sps:$4 sm:$0xff]  }
  0x2c   : > { %v7999_v42 = vld [vmem:[#allocation2 + $0xa4] ss:$16 sps:$4 sm:$0xff]   ;;  %v7997_v44 = vld [vmem:[#allocation2 + $0xa0] ss:$16 sps:$4 sm:$0xff]  }
  0x2d   : > { %v8002_v43 = vld [vmem:[#allocation2 + $0x2a4] ss:$16 sps:$4 sm:$0xff]   ;;  %v8000_v45 = vld [vmem:[#allocation2 + $0x2a0] ss:$16 sps:$4 sm:$0xff]  }
  0x2e   : > { %529 = vmatpush1.bf16.msra.mxu0 %v7964_v19  ;;  %572 = vmatpush1.bf16.msra.mxu1 %v7965_v20  ;;  %v8005_v46 = vld [vmem:[#allocation2 + $0x84] ss:$16 sps:$4 sm:$0xff]   ;;  %v8003_v48 = vld [vmem:[#allocation2 + $0x80] ss:$16 sps:$4 sm:$0xff]  }
  0x2f   : > { %530 = vmatprep.subr.bf16.mxu0 %v7966_v21  ;;  %573 = vmatprep.subr.bf16.mxu1 %v7968_v22  ;;  %v8008_v47 = vld [vmem:[#allocation2 + $0x284] ss:$16 sps:$4 sm:$0xff]   ;;  %v8006_v49 = vld [vmem:[#allocation2 + $0x280] ss:$16 sps:$4 sm:$0xff]  }
  0x30   : > { %v8011_v50 = vld [vmem:[#allocation2 + $0x64] ss:$16 sps:$4 sm:$0xff]   ;;  %v8009_v52 = vld [vmem:[#allocation2 + $0x60] ss:$16 sps:$4 sm:$0xff]  }
  0x31   : > { %v8014_v51 = vld [vmem:[#allocation2 + $0x264] ss:$16 sps:$4 sm:$0xff]   ;;  %v8012_v53 = vld [vmem:[#allocation2 + $0x260] ss:$16 sps:$4 sm:$0xff]  }
  0x32   : > { %531 = vmatpush1.bf16.msra.mxu0 %v7970_v23  ;;  %574 = vmatpush1.bf16.msra.mxu1 %v7971_v24  ;;  %v8017_v54 = vld [vmem:[#allocation2 + $0x44] ss:$16 sps:$4 sm:$0xff]   ;;  %v8015_v56 = vld [vmem:[#allocation2 + $0x40] ss:$16 sps:$4 sm:$0xff]  }
  0x33   : > { %532 = vmatprep.subr.bf16.mxu0 %v7972_v25  ;;  %575 = vmatprep.subr.bf16.mxu1 %v7974_v26  ;;  %v8020_v55 = vld [vmem:[#allocation2 + $0x244] ss:$16 sps:$4 sm:$0xff]   ;;  %v8018_v57 = vld [vmem:[#allocation2 + $0x240] ss:$16 sps:$4 sm:$0xff]  }
  0x34   : > { %v8023_v58 = vld [vmem:[#allocation2 + $0x24] ss:$16 sps:$4 sm:$0xff]   ;;  %v8021_v60 = vld [vmem:[#allocation2 + $0x20] ss:$16 sps:$4 sm:$0xff]  }
  0x35   : > { %v8026_v59 = vld [vmem:[#allocation2 + $0x224] ss:$16 sps:$4 sm:$0xff]   ;;  %v8024_v61 = vld [vmem:[#allocation2 + $0x220] ss:$16 sps:$4 sm:$0xff]  }
  0x36   : > { %533 = vmatpush1.bf16.msra.mxu0 %v7976_v27  ;;  %576 = vmatpush1.bf16.msra.mxu1 %v7977_v28  ;;  %v8029_v62 = vld [vmem:[#allocation2 + $0x4] ss:$16 sps:$4 sm:$0xff]   ;;  %v8027_v1 = vld [vmem:[#allocation2] ss:$16 sps:$4 sm:$0xff]  }
  0x37   : > { %534 = vmatprep.subr.bf16.mxu0 %v7978_v29  ;;  %577 = vmatprep.subr.bf16.mxu1 %v7980_v30  ;;  %v8032_v63 = vld [vmem:[#allocation2 + $0x204] ss:$16 sps:$4 sm:$0xff]   ;;  %v8030_v2 = vld [vmem:[#allocation2 + $0x200] ss:$16 sps:$4 sm:$0xff]  }
  0x38   : > { %v8035_v3 = vld [vmem:[#allocation2 + $0x1e4] ss:$16 sps:$4 sm:$0xff]   ;;  %v8033_v5 = vld [vmem:[#allocation2 + $0x1e0] ss:$16 sps:$4 sm:$0xff]  }
  0x39   : > { %v8038_v4 = vld [vmem:[#allocation2 + $0x3e4] ss:$16 sps:$4 sm:$0xff]   ;;  %v8036_v6 = vld [vmem:[#allocation2 + $0x3e0] ss:$16 sps:$4 sm:$0xff]  }
  0x3a   : > { %535 = vmatpush1.bf16.msra.mxu0 %v7982_v31  ;;  %578 = vmatpush1.bf16.msra.mxu1 %v7983_v32  ;;  %v8041_v7 = vld [vmem:[#allocation2 + $0x1c4] ss:$16 sps:$4 sm:$0xff]   ;;  %v8039_v9 = vld [vmem:[#allocation2 + $0x1c0] ss:$16 sps:$4 sm:$0xff]  }
  0x3b   : > { %1408 = vmatprep.subr.bf16.mxu0 %v7987_v33  ;;  %1451 = vmatprep.subr.bf16.mxu1 %v7990_v34  ;;  %v8044_v8 = vld [vmem:[#allocation2 + $0x3c4] ss:$16 sps:$4 sm:$0xff]   ;;  %v8042_v10 = vld [vmem:[#allocation2 + $0x3c0] ss:$16 sps:$4 sm:$0xff]  }
  0x3c   : > { %v8047_v11 = vld [vmem:[#allocation2 + $0x1a4] ss:$16 sps:$4 sm:$0xff]   ;;  %v8045_v13 = vld [vmem:[#allocation2 + $0x1a0] ss:$16 sps:$4 sm:$0xff]  }
  0x3d   : > { %553 = vmatmul.mubr.bf16.vlgmr.msra.gmra.mxu0 %v7984_v35  ;;  %596 = vmatmul.mubr.bf16.vlgmr.msra.gmra.mxu1 %v7984_v35  ;;  %v8050_v12 = vld [vmem:[#allocation2 + $0x3a4] ss:$16 sps:$4 sm:$0xff]   ;;  %v8048_v14 = vld [vmem:[#allocation2 + $0x3a0] ss:$16 sps:$4 sm:$0xff]   ;;  %v8083_v35 = vld [vmem:[#allocation2 + $0xec] ss:$16 sps:$4 sm:$0xff]  }
  0x3e   : > { %1409 = vmatpush1.bf16.msra.mxu0 %v7985_v36  ;;  %1452 = vmatpush1.bf16.msra.mxu1 %v7988_v37  ;;  %v8053_v15 = vld [vmem:[#allocation2 + $0x184] ss:$16 sps:$4 sm:$0xff]   ;;  %v8051_v17 = vld [vmem:[#allocation2 + $0x180] ss:$16 sps:$4 sm:$0xff]   ;;  %v8086_v36 = vld [vmem:[#allocation2 + $0x2ec] ss:$16 sps:$4 sm:$0xff]   ;;  %v334_v37 = vlaneseq }
  0x3f   : > { %1410 = vmatprep.subr.bf16.mxu0 %v7993_v38  ;;  %1453 = vmatprep.subr.bf16.mxu1 %v7996_v39  ;;  %v8056_v16 = vld [vmem:[#allocation2 + $0x384] ss:$16 sps:$4 sm:$0xff]   ;;  %v8054_v18 = vld [vmem:[#allocation2 + $0x380] ss:$16 sps:$4 sm:$0xff]  }
  0x40   : > { %v8059_v19 = vld [vmem:[#allocation2 + $0x164] ss:$16 sps:$4 sm:$0xff]   ;;  %v8057_v21 = vld [vmem:[#allocation2 + $0x160] ss:$16 sps:$4 sm:$0xff]   ;;  %v335_v38 = vshrl.u32 %v334_v37, 7 }
  0x41   : > { %v8062_v20 = vld [vmem:[#allocation2 + $0x364] ss:$16 sps:$4 sm:$0xff]   ;;  %v8060_v22 = vld [vmem:[#allocation2 + $0x360] ss:$16 sps:$4 sm:$0xff]   ;;  %v8117_v37 = vld [vmem:[#allocation2 + $0x28] ss:$16 sps:$4 sm:$0xff]  }
  0x42   : > { %1411 = vmatpush1.bf16.msra.mxu0 %v7991_v40  ;;  %1454 = vmatpush1.bf16.msra.mxu1 %v7994_v41  ;;  %v8065_v23 = vld [vmem:[#allocation2 + $0x144] ss:$16 sps:$4 sm:$0xff]   ;;  %v8063_v25 = vld [vmem:[#allocation2 + $0x140] ss:$16 sps:$4 sm:$0xff]   ;;  %v9250_v39 = vsub.s32 1, %v335_v38  ;;  %v9255_v41 = vsub.s32 3, %v335_v38 }
  0x43   : > { %1412 = vmatprep.subr.bf16.mxu0 %v7999_v42  ;;  %1455 = vmatprep.subr.bf16.mxu1 %v8002_v43  ;;  %v8068_v24 = vld [vmem:[#allocation2 + $0x344] ss:$16 sps:$4 sm:$0xff]   ;;  %v8066_v26 = vld [vmem:[#allocation2 + $0x340] ss:$16 sps:$4 sm:$0xff]   ;;  %v9257_v42 = vsub.s32 0, %v335_v38  ;;  %v9259_v43 = vsub.s32 2, %v335_v38 }
  0x44   : > { %v8071_v27 = vld [vmem:[#allocation2 + $0x124] ss:$16 sps:$4 sm:$0xff]   ;;  %v8069_v29 = vld [vmem:[#allocation2 + $0x120] ss:$16 sps:$4 sm:$0xff]   ;;  %v8120_v38 = vld [vmem:[#allocation2 + $0x228] ss:$16 sps:$4 sm:$0xff]  }
  0x45   : > { %v8074_v28 = vld [vmem:[#allocation2 + $0x324] ss:$16 sps:$4 sm:$0xff]   ;;  %v8072_v30 = vld [vmem:[#allocation2 + $0x320] ss:$16 sps:$4 sm:$0xff]  }
  0x46   : > { %1413 = vmatpush1.bf16.msra.mxu0 %v7997_v44  ;;  %1456 = vmatpush1.bf16.msra.mxu1 %v8000_v45  ;;  %v8077_v31 = vld [vmem:[#allocation2 + $0x104] ss:$16 sps:$4 sm:$0xff]   ;;  %v8075_v33 = vld [vmem:[#allocation2 + $0x100] ss:$16 sps:$4 sm:$0xff]  }
  0x47   : > { %1414 = vmatprep.subr.bf16.mxu0 %v8005_v46  ;;  %1457 = vmatprep.subr.bf16.mxu1 %v8008_v47  ;;  %v8080_v32 = vld [vmem:[#allocation2 + $0x304] ss:$16 sps:$4 sm:$0xff]   ;;  %v8078_v34 = vld [vmem:[#allocation2 + $0x300] ss:$16 sps:$4 sm:$0xff]  }
  0x48   : > { %v332_v40 = vld [vmem:[%s10114_s2] sm:$0xf] }
  0x49   : > { %v341_v46 = vrot.slane %v332_v40, %v9250_v39  ;;  %v349_v47 = vrot.slane %v332_v40, %v9255_v41 }
  0x4a   : > { %1415 = vmatpush1.bf16.msra.mxu0 %v8003_v48  ;;  %1458 = vmatpush1.bf16.msra.mxu1 %v8006_v49  ;;  %v337_v48 = vrot.slane %v332_v40, %v9257_v42  ;;  %v345_v49 = vrot.slane %v332_v40, %v9259_v43  ;;  %v8125_v40 = vld [vmem:[#allocation2 + $0xc] ss:$16 sps:$4 sm:$0xff]  }
  0x4b   : > { %1416 = vmatprep.subr.bf16.mxu0 %v8011_v50  ;;  %1459 = vmatprep.subr.bf16.mxu1 %v8014_v51 }
  0x4e   : > { %1417 = vmatpush1.bf16.msra.mxu0 %v8009_v52  ;;  %1460 = vmatpush1.bf16.msra.mxu1 %v8012_v53 }
  0x4f   : > { %1418 = vmatprep.subr.bf16.mxu0 %v8017_v54  ;;  %1461 = vmatprep.subr.bf16.mxu1 %v8020_v55 }
  0x52   : > { %1419 = vmatpush1.bf16.msra.mxu0 %v8015_v56  ;;  %1462 = vmatpush1.bf16.msra.mxu1 %v8018_v57 }
  0x53   : > { %1420 = vmatprep.subr.bf16.mxu0 %v8023_v58  ;;  %1463 = vmatprep.subr.bf16.mxu1 %v8026_v59 }
  0x56   : > { %1421 = vmatpush1.bf16.msra.mxu0 %v8021_v60  ;;  %1464 = vmatpush1.bf16.msra.mxu1 %v8024_v61 }
  0x57   : > { %1422 = vmatprep.subr.bf16.mxu0 %v8029_v62  ;;  %1465 = vmatprep.subr.bf16.mxu1 %v8032_v63 }
  0x5a   : > { %1423 = vmatpush1.bf16.msra.mxu0 %v8027_v1  ;;  %1466 = vmatpush1.bf16.msra.mxu1 %v8030_v2 }
  0x5b   : > { %1424 = vmatprep.subr.bf16.mxu0 %v8035_v3  ;;  %1467 = vmatprep.subr.bf16.mxu1 %v8038_v4 }
  0x5e   : > { %1425 = vmatpush2.bf16.msra.mxu0 %v8033_v5  ;;  %1468 = vmatpush2.bf16.msra.mxu1 %v8036_v6 }
  0x5f   : > { %1426 = vmatprep.subr.bf16.mxu0 %v8041_v7  ;;  %1469 = vmatprep.subr.bf16.mxu1 %v8044_v8  ;;  %v8081_v7 = vld [vmem:[#allocation2 + $0xe8] ss:$16 sps:$4 sm:$0xff]  }
  0x60   : > { %v8084_v8 = vld [vmem:[#allocation2 + $0x2e8] ss:$16 sps:$4 sm:$0xff]  }
  0x62   : > { %1427 = vmatpush2.bf16.msra.mxu0 %v8039_v9  ;;  %1470 = vmatpush2.bf16.msra.mxu1 %v8042_v10 }
  0x63   : > { %1428 = vmatprep.subr.bf16.mxu0 %v8047_v11  ;;  %1471 = vmatprep.subr.bf16.mxu1 %v8050_v12 }
  0x66   : > { %1429 = vmatpush2.bf16.msra.mxu0 %v8045_v13  ;;  %1472 = vmatpush2.bf16.msra.mxu1 %v8048_v14  ;;  %v8089_v13 = vld [vmem:[#allocation2 + $0xcc] ss:$16 sps:$4 sm:$0xff]  }
  0x67   : > { %1430 = vmatprep.subr.bf16.mxu0 %v8053_v15  ;;  %1473 = vmatprep.subr.bf16.mxu1 %v8056_v16  ;;  %v8092_v14 = vld [vmem:[#allocation2 + $0x2cc] ss:$16 sps:$4 sm:$0xff]  }
  0x6a   : > { %1431 = vmatpush2.bf16.msra.mxu0 %v8051_v17  ;;  %1474 = vmatpush2.bf16.msra.mxu1 %v8054_v18  ;;  %v8087_v17 = vld [vmem:[#allocation2 + $0xc8] ss:$16 sps:$4 sm:$0xff]  }
  0x6b   : > { %1432 = vmatprep.subr.bf16.mxu0 %v8059_v19  ;;  %1475 = vmatprep.subr.bf16.mxu1 %v8062_v20  ;;  %v8090_v18 = vld [vmem:[#allocation2 + $0x2c8] ss:$16 sps:$4 sm:$0xff]   ;;  %v8095_v19 = vld [vmem:[#allocation2 + $0xac] ss:$16 sps:$4 sm:$0xff]  }
  0x6c   : > { %v8098_v20 = vld [vmem:[#allocation2 + $0x2ac] ss:$16 sps:$4 sm:$0xff]  }
  0x6e   : > { %1433 = vmatpush2.bf16.msra.mxu0 %v8057_v21  ;;  %1476 = vmatpush2.bf16.msra.mxu1 %v8060_v22  ;;  %v8093_v21 = vld [vmem:[#allocation2 + $0xa8] ss:$16 sps:$4 sm:$0xff]  }
  0x6f   : > { %1434 = vmatprep.subr.bf16.mxu0 %v8065_v23  ;;  %1477 = vmatprep.subr.bf16.mxu1 %v8068_v24  ;;  %v8096_v22 = vld [vmem:[#allocation2 + $0x2a8] ss:$16 sps:$4 sm:$0xff]   ;;  %v8101_v23 = vld [vmem:[#allocation2 + $0x8c] ss:$16 sps:$4 sm:$0xff]  }
  0x70   : > { %v8104_v24 = vld [vmem:[#allocation2 + $0x28c] ss:$16 sps:$4 sm:$0xff]  }
  0x72   : > { %1435 = vmatpush2.bf16.msra.mxu0 %v8063_v25  ;;  %1478 = vmatpush2.bf16.msra.mxu1 %v8066_v26  ;;  %v8099_v25 = vld [vmem:[#allocation2 + $0x88] ss:$16 sps:$4 sm:$0xff]  }
  0x73   : > { %1436 = vmatprep.subr.bf16.mxu0 %v8071_v27  ;;  %1479 = vmatprep.subr.bf16.mxu1 %v8074_v28  ;;  %v8102_v26 = vld [vmem:[#allocation2 + $0x288] ss:$16 sps:$4 sm:$0xff]   ;;  %v8107_v27 = vld [vmem:[#allocation2 + $0x6c] ss:$16 sps:$4 sm:$0xff]  }
  0x74   : > { %v8110_v28 = vld [vmem:[#allocation2 + $0x26c] ss:$16 sps:$4 sm:$0xff]  }
  0x76   : > { %1437 = vmatpush2.bf16.msra.mxu0 %v8069_v29  ;;  %1480 = vmatpush2.bf16.msra.mxu1 %v8072_v30  ;;  %v8105_v29 = vld [vmem:[#allocation2 + $0x68] ss:$16 sps:$4 sm:$0xff]  }
  0x77   : > { %1438 = vmatprep.subr.bf16.mxu0 %v8077_v31  ;;  %1481 = vmatprep.subr.bf16.mxu1 %v8080_v32  ;;  %v8108_v30 = vld [vmem:[#allocation2 + $0x268] ss:$16 sps:$4 sm:$0xff]   ;;  %v8113_v31 = vld [vmem:[#allocation2 + $0x4c] ss:$16 sps:$4 sm:$0xff]  }
  0x78   : > { %v8116_v32 = vld [vmem:[#allocation2 + $0x24c] ss:$16 sps:$4 sm:$0xff]  }
  0x7a   : > { %1439 = vmatpush2.bf16.msra.mxu0 %v8075_v33  ;;  %1482 = vmatpush2.bf16.msra.mxu1 %v8078_v34  ;;  %v8111_v33 = vld [vmem:[#allocation2 + $0x48] ss:$16 sps:$4 sm:$0xff]  }
  0x7b   : > { %1494 = vmatprep.subr.bf16.mxu0 %v8083_v35  ;;  %1537 = vmatprep.subr.bf16.mxu1 %v8086_v36  ;;  %v8114_v34 = vld [vmem:[#allocation2 + $0x248] ss:$16 sps:$4 sm:$0xff]   ;;  %v8119_v35 = vld [vmem:[#allocation2 + $0x2c] ss:$16 sps:$4 sm:$0xff]  }
  0x7c   : > { %v8122_v36 = vld [vmem:[#allocation2 + $0x22c] ss:$16 sps:$4 sm:$0xff]  }
  0xfd   : > { %v554_v44 = vpop.f32.mrf.mxu0  ;;  %v597_v45 = vpop.f32.mrf.mxu1 }
  0xfe   : > { %v555_v58 = vadd.f32 %v554_v44, %v337_v48  ;;  %v598_v59 = vadd.f32 %v597_v45, %v345_v49  ;;  %v8128_v44 = vld [vmem:[#allocation2 + $0x20c] ss:$16 sps:$4 sm:$0xff]   ;;  %v8123_v45 = vld [vmem:[#allocation2 + $0x8] ss:$16 sps:$4 sm:$0xff]  }
  0xff   : > { %v556_v50 = vpop.f32.mrf.mxu0  ;;  %v599_v51 = vpop.f32.mrf.mxu1 }
 0x100   : > { %v557_v52 = vadd.f32 %v556_v50, %v341_v46  ;;  %v600_v55 = vadd.f32 %v599_v51, %v349_v47  ;;  %v606_v9 = vmax.f32 %v555_v58, 0.0  ;;  %v608_v10 = vmax.f32 %v598_v59, 0.0  ;;  %v8132_v50 = vld [vmem:[#allocation2 + $0x3e8] ss:$16 sps:$4 sm:$0xff]   ;;  %v8137_v51 = vld [vmem:[#allocation2 + $0x1cc] ss:$16 sps:$4 sm:$0xff]  }
 0x101   : > { %v558_v53 = vpop.f32.mrf.mxu0  ;;  %v601_v54 = vpop.f32.mrf.mxu1  ;;  %v8144_v58 = vld [vmem:[#allocation2 + $0x3a8] ss:$16 sps:$4 sm:$0xff]   ;;  %v8149_v59 = vld [vmem:[#allocation2 + $0x18c] ss:$16 sps:$4 sm:$0xff]  }
 0x102   : > { %v559_v56 = vadd.f32 %v558_v53, %v337_v48  ;;  %v602_v57 = vadd.f32 %v601_v54, %v345_v49  ;;  %v607_v1 = vmax.f32 %v557_v52, 0.0  ;;  %v609_v4 = vmax.f32 %v600_v55, 0.0  ;;  %v8134_v48 = vld [vmem:[#allocation2 + $0x3ec] ss:$16 sps:$4 sm:$0xff]   ;;  %v8129_v49 = vld [vmem:[#allocation2 + $0x1e8] ss:$16 sps:$4 sm:$0xff]  }
 0x103   : > { %v560_v60 = vpop.f32.mrf.mxu0  ;;  %v603_v61 = vpop.f32.mrf.mxu1  ;;  %v8140_v52 = vld [vmem:[#allocation2 + $0x3cc] ss:$16 sps:$4 sm:$0xff]   ;;  %v8135_v53 = vld [vmem:[#allocation2 + $0x1c8] ss:$16 sps:$4 sm:$0xff]  }
 0x104   : > { %v561_v62 = vadd.f32 %v560_v60, %v341_v46  ;;  %v604_v63 = vadd.f32 %v603_v61, %v349_v47  ;;  %v610_v2 = vmax.f32 %v559_v56, 0.0  ;;  %v612_v3 = vmax.f32 %v602_v57, 0.0  ;;  %v8126_v46 = vld [vmem:[#allocation2 + $0x208] ss:$16 sps:$4 sm:$0xff]   ;;  %v8131_v47 = vld [vmem:[#allocation2 + $0x1ec] ss:$16 sps:$4 sm:$0xff]  }
 0x105   : > { %v8138_v54 = vld [vmem:[#allocation2 + $0x3c8] ss:$16 sps:$4 sm:$0xff]   ;;  %v8143_v55 = vld [vmem:[#allocation2 + $0x1ac] ss:$16 sps:$4 sm:$0xff]  }
 0x106   : > { %v611_v5 = vmax.f32 %v561_v62, 0.0  ;;  %v613_v6 = vmax.f32 %v604_v63, 0.0  ;;  %v9265_v15 = vpack.c.bf16 %v610_v2, %v606_v9  ;;  %v9267_v16 = vpack.c.bf16 %v612_v3, %v608_v10  ;;  %v8146_v56 = vld [vmem:[#allocation2 + $0x3ac] ss:$16 sps:$4 sm:$0xff]   ;;  %v8141_v57 = vld [vmem:[#allocation2 + $0x1a8] ss:$16 sps:$4 sm:$0xff]  }
 0x107   : > { %v8152_v60 = vld [vmem:[#allocation2 + $0x38c] ss:$16 sps:$4 sm:$0xff]   ;;  %v8147_v61 = vld [vmem:[#allocation2 + $0x188] ss:$16 sps:$4 sm:$0xff]  }
 0x108   : > { %v615_v11 = vpack.c.bf16 %v611_v5, %v607_v1  ;;  %v617_v12 = vpack.c.bf16 %v613_v6, %v609_v4  ;;  %v8150_v62 = vld [vmem:[#allocation2 + $0x388] ss:$16 sps:$4 sm:$0xff]   ;;  %v8155_v63 = vld [vmem:[#allocation2 + $0x16c] ss:$16 sps:$4 sm:$0xff]  }
 0x109   : > { %v8158_v1 = vld [vmem:[#allocation2 + $0x36c] ss:$16 sps:$4 sm:$0xff]   ;;  %v8153_v2 = vld [vmem:[#allocation2 + $0x168] ss:$16 sps:$4 sm:$0xff]  }
 0x10a   : > { %1440 = vmatprep.mubr.bf16.mxu0 %v615_v11  ;;  %1483 = vmatprep.mubr.bf16.mxu1 %v617_v12  ;;  %v8156_v3 = vld [vmem:[#allocation2 + $0x368] ss:$16 sps:$4 sm:$0xff]   ;;  %v8161_v4 = vld [vmem:[#allocation2 + $0x14c] ss:$16 sps:$4 sm:$0xff]  }
 0x10b   : > { %1441 = vmatmul.mubr.bf16.vlgmr.msra.gmra.mxu0 %v9265_v15  ;;  %1484 = vmatmul.mubr.bf16.vlgmr.msra.gmra.mxu1 %v9267_v16  ;;  %v8164_v5 = vld [vmem:[#allocation2 + $0x34c] ss:$16 sps:$4 sm:$0xff]   ;;  %v8159_v6 = vld [vmem:[#allocation2 + $0x148] ss:$16 sps:$4 sm:$0xff]  }
 0x10c   : > { %1495 = vmatpush1.bf16.msra.mxu0 %v8081_v7  ;;  %1538 = vmatpush1.bf16.msra.mxu1 %v8084_v8  ;;  %v8162_v7 = vld [vmem:[#allocation2 + $0x348] ss:$16 sps:$4 sm:$0xff]   ;;  %v8167_v8 = vld [vmem:[#allocation2 + $0x12c] ss:$16 sps:$4 sm:$0xff]  }
 0x10d   : > { %1526 = vmatprep.mubr.bf16.mxu0 %v615_v11  ;;  %1569 = vmatprep.mubr.bf16.mxu1 %v617_v12  ;;  %v8170_v9 = vld [vmem:[#allocation2 + $0x32c] ss:$16 sps:$4 sm:$0xff]   ;;  %v8165_v10 = vld [vmem:[#allocation2 + $0x128] ss:$16 sps:$4 sm:$0xff]  }
 0x10e   : > { %1496 = vmatprep.subr.bf16.mxu0 %v8089_v13  ;;  %1539 = vmatprep.subr.bf16.mxu1 %v8092_v14  ;;  %v8168_v11 = vld [vmem:[#allocation2 + $0x328] ss:$16 sps:$4 sm:$0xff]   ;;  %v8173_v12 = vld [vmem:[#allocation2 + $0x10c] ss:$16 sps:$4 sm:$0xff]  }
 0x10f   : > { %v8176_v13 = vld [vmem:[#allocation2 + $0x30c] ss:$16 sps:$4 sm:$0xff]   ;;  %v8171_v14 = vld [vmem:[#allocation2 + $0x108] ss:$16 sps:$4 sm:$0xff]  }
 0x110   : > { %1497 = vmatpush1.bf16.msra.mxu0 %v8087_v17  ;;  %1540 = vmatpush1.bf16.msra.mxu1 %v8090_v18  ;;  %v8174_v17 = vld [vmem:[#allocation2 + $0x308] ss:$16 sps:$4 sm:$0xff]  }
 0x111   : > { %1498 = vmatprep.subr.bf16.mxu0 %v8095_v19  ;;  %1541 = vmatprep.subr.bf16.mxu1 %v8098_v20  ;;  %v8177_v18 = vld [vmem:[%s10117_s5 + $0x78] sm:$0xff]   ;;  %v8179_v20 = vld [vmem:[%s10117_s5 + $0x70] sm:$0xff]  }
 0x112   : > { %v8178_v19 = vld [vmem:[%s10117_s5 + $0x38] sm:$0xff]  }
 0x114   : > { %1499 = vmatpush1.bf16.msra.mxu0 %v8093_v21  ;;  %1542 = vmatpush1.bf16.msra.mxu1 %v8096_v22  ;;  %v8180_v21 = vld [vmem:[%s10117_s5 + $0x30] sm:$0xff]   ;;  %v8181_v22 = vld [vmem:[%s10117_s5 + $0x68] sm:$0xff]  }
 0x115   : > { %1500 = vmatprep.subr.bf16.mxu0 %v8101_v23  ;;  %1543 = vmatprep.subr.bf16.mxu1 %v8104_v24  ;;  %v8182_v23 = vld [vmem:[%s10117_s5 + $0x28] sm:$0xff]   ;;  %v8183_v24 = vld [vmem:[%s10117_s5 + $0x60] sm:$0xff]  }
 0x118   : > { %1501 = vmatpush1.bf16.msra.mxu0 %v8099_v25  ;;  %1544 = vmatpush1.bf16.msra.mxu1 %v8102_v26  ;;  %v8186_v25 = vld [vmem:[%s10117_s5 + $0x18] sm:$0xff]   ;;  %v8187_v26 = vld [vmem:[%s10117_s5 + $0x50] sm:$0xff]  }
 0x119   : > { %1502 = vmatprep.subr.bf16.mxu0 %v8107_v27  ;;  %1545 = vmatprep.subr.bf16.mxu1 %v8110_v28  ;;  %v8188_v27 = vld [vmem:[%s10117_s5 + $0x10] sm:$0xff]   ;;  %v8189_v28 = vld [vmem:[%s10117_s5 + $0x48] sm:$0xff]  }
 0x11c   : > { %1503 = vmatpush1.bf16.msra.mxu0 %v8105_v29  ;;  %1546 = vmatpush1.bf16.msra.mxu1 %v8108_v30  ;;  %v8190_v29 = vld [vmem:[%s10117_s5 + $0x8] sm:$0xff]   ;;  %v8191_v30 = vld [vmem:[%s10117_s5 + $0x40] sm:$0xff]  }
 0x11d   : > { %1504 = vmatprep.subr.bf16.mxu0 %v8113_v31  ;;  %1547 = vmatprep.subr.bf16.mxu1 %v8116_v32  ;;  %v8192_v31 = vld [vmem:[%s10117_s5] sm:$0xff]  }
 0x11e   : > { %v8195_v32 = vld [vmem:[%s10113_s1 + $0xe4] ss:$16 sps:$4 sm:$0xff]  }
 0x120   : > { %1505 = vmatpush1.bf16.msra.mxu0 %v8111_v33  ;;  %1548 = vmatpush1.bf16.msra.mxu1 %v8114_v34  ;;  %v8217_v33 = vld [vmem:[%s10117_s5 + $0xf8] sm:$0xff]  }
 0x121   : > { %1506 = vmatprep.subr.bf16.mxu0 %v8119_v35  ;;  %1549 = vmatprep.subr.bf16.mxu1 %v8122_v36  ;;  %v8218_v34 = vld [vmem:[%s10117_s5 + $0xb8] sm:$0xff]   ;;  %v8220_v35 = vld [vmem:[%s10117_s5 + $0xf0] sm:$0xff]  }
 0x122   : > { %v8221_v36 = vld [vmem:[%s10117_s5 + $0xb0] sm:$0xff]  }
 0x124   : > { %1507 = vmatpush1.bf16.msra.mxu0 %v8117_v37  ;;  %1550 = vmatpush1.bf16.msra.mxu1 %v8120_v38  ;;  %v8222_v37 = vld [vmem:[%s10117_s5 + $0xe8] sm:$0xff]  }
 0x125   : > { %1508 = vmatprep.subr.bf16.mxu0 %v8125_v40  ;;  %1551 = vmatprep.subr.bf16.mxu1 %v8128_v44  ;;  %v8223_v38 = vld [vmem:[%s10117_s5 + $0xa8] sm:$0xff]   ;;  %v8224_v40 = vld [vmem:[%s10117_s5 + $0xe0] sm:$0xff]  }
 0x126   : > { %v8225_v44 = vld [vmem:[%s10117_s5 + $0xa0] sm:$0xff]  }
 0x128   : > { %1509 = vmatpush1.bf16.msra.mxu0 %v8123_v45  ;;  %1552 = vmatpush1.bf16.msra.mxu1 %v8126_v46  ;;  %v8226_v45 = vld [vmem:[%s10117_s5 + $0xd8] sm:$0xff]  }
 0x129   : > { %1510 = vmatprep.subr.bf16.mxu0 %v8131_v47  ;;  %1553 = vmatprep.subr.bf16.mxu1 %v8134_v48  ;;  %v8227_v46 = vld [vmem:[%s10117_s5 + $0x98] sm:$0xff]   ;;  %v8228_v47 = vld [vmem:[%s10117_s5 + $0xd0] sm:$0xff]  }
 0x12a   : > { %v8229_v48 = vld [vmem:[%s10117_s5 + $0x90] sm:$0xff]  }
 0x12c   : > { %1511 = vmatpush2.bf16.msra.mxu0 %v8129_v49  ;;  %1554 = vmatpush2.bf16.msra.mxu1 %v8132_v50  ;;  %v8230_v49 = vld [vmem:[%s10117_s5 + $0xc8] sm:$0xff]  }
 0x12d   : > { %1512 = vmatprep.subr.bf16.mxu0 %v8137_v51  ;;  %1555 = vmatprep.subr.bf16.mxu1 %v8140_v52  ;;  %v8231_v50 = vld [vmem:[%s10117_s5 + $0x88] sm:$0xff]   ;;  %v8232_v51 = vld [vmem:[%s10117_s5 + $0xc0] sm:$0xff]  }
 0x12e   : > { %v8233_v52 = vld [vmem:[%s10117_s5 + $0x80] sm:$0xff]  }
 0x130   : > { %1513 = vmatpush2.bf16.msra.mxu0 %v8135_v53  ;;  %1556 = vmatpush2.bf16.msra.mxu1 %v8138_v54  ;;  %v8236_v53 = vld [vmem:[%s10113_s1 + $0xec] ss:$16 sps:$4 sm:$0xff]   ;;  %v9378_v54 = vld [vmem:[%s10116_s4] sm:$0xf] }
 0x131   : > { %1514 = vmatprep.subr.bf16.mxu0 %v8143_v55  ;;  %1557 = vmatprep.subr.bf16.mxu1 %v8146_v56  ;;  %v755_v55 = vrot.slane %v9378_v54, %v9250_v39  ;;  %v751_v56 = vrot.slane %v9378_v54, %v9257_v42 }
 0x134   : > { %1515 = vmatpush2.bf16.msra.mxu0 %v8141_v57  ;;  %1558 = vmatpush2.bf16.msra.mxu1 %v8144_v58 }
 0x135   : > { %1516 = vmatprep.subr.bf16.mxu0 %v8149_v59  ;;  %1559 = vmatprep.subr.bf16.mxu1 %v8152_v60 }
 0x138   : > { %1517 = vmatpush2.bf16.msra.mxu0 %v8147_v61  ;;  %1560 = vmatpush2.bf16.msra.mxu1 %v8150_v62 }
 0x139   : > { %1518 = vmatprep.subr.bf16.mxu0 %v8155_v63  ;;  %1561 = vmatprep.subr.bf16.mxu1 %v8158_v1 }
 0x13c   : > { %1519 = vmatpush2.bf16.msra.mxu0 %v8153_v2  ;;  %1562 = vmatpush2.bf16.msra.mxu1 %v8156_v3 }
 0x13d   : > { %1520 = vmatprep.subr.bf16.mxu0 %v8161_v4  ;;  %1563 = vmatprep.subr.bf16.mxu1 %v8164_v5 }
 0x140   : > { %1521 = vmatpush2.bf16.msra.mxu0 %v8159_v6  ;;  %1564 = vmatpush2.bf16.msra.mxu1 %v8162_v7 }
 0x141   : > { %1522 = vmatprep.subr.bf16.mxu0 %v8167_v8  ;;  %1565 = vmatprep.subr.bf16.mxu1 %v8170_v9 }
 0x144   : > { %1523 = vmatpush2.bf16.msra.mxu0 %v8165_v10  ;;  %1566 = vmatpush2.bf16.msra.mxu1 %v8168_v11 }
 0x145   : > { %1524 = vmatprep.subr.bf16.mxu0 %v8173_v12  ;;  %1567 = vmatprep.subr.bf16.mxu1 %v8176_v13 }
 0x148   : > { %1525 = vmatpush2.bf16.msra.mxu0 %v8171_v14  ;;  %1568 = vmatpush2.bf16.msra.mxu1 %v8174_v17  ;;  %v8193_v17 = vld [vmem:[%s10113_s1 + $0xe0] ss:$16 sps:$4 sm:$0xff]  }
 0x149   : > { %7738 = vmatprep.subr.bf16.mxu0 %v8177_v18  ;;  %7760 = vmatprep.subr.bf16.mxu1 %v8217_v33  ;;  %v8258_v33 = vld [vmem:[#allocation2 + $0xe0] ss:$16 sps:$4 sm:$0xff]  }
 0x14b   : > { %1527 = vmatmul.mubr.bf16.vlgmr.msra.gmra.mxu0 %v9265_v15  ;;  %1570 = vmatmul.mubr.bf16.vlgmr.msra.gmra.mxu1 %v9267_v16  ;;  %v8184_v15 = vld [vmem:[%s10117_s5 + $0x20] sm:$0xff]   ;;  %v8185_v16 = vld [vmem:[%s10117_s5 + $0x58] sm:$0xff]  }
 0x14c   : > { %7739 = vmatpush3.bf16.msra.mxu0 %v8178_v19  ;;  %7761 = vmatpush3.bf16.msra.mxu1 %v8218_v34  ;;  %v8198_v19 = vld [vmem:[%s10113_s1 + $0xc4] ss:$16 sps:$4 sm:$0xff]  }
 0x14d   : > { %7740 = vmatprep.subr.bf16.mxu0 %v8179_v20  ;;  %7762 = vmatprep.subr.bf16.mxu1 %v8220_v35  ;;  %v8196_v20 = vld [vmem:[%s10113_s1 + $0xc0] ss:$16 sps:$4 sm:$0xff]   ;;  %v8263_v34 = vld [vmem:[#allocation2 + $0xc4] ss:$16 sps:$4 sm:$0xff]  }
 0x14e   : > { %v8261_v35 = vld [vmem:[#allocation2 + $0xc0] ss:$16 sps:$4 sm:$0xff]  }
 0x150   : > { %7741 = vmatpush3.bf16.msra.mxu0 %v8180_v21  ;;  %7763 = vmatpush3.bf16.msra.mxu1 %v8221_v36  ;;  %v8201_v21 = vld [vmem:[%s10113_s1 + $0xa4] ss:$16 sps:$4 sm:$0xff]  }
 0x151   : > { %7742 = vmatprep.subr.bf16.mxu0 %v8181_v22  ;;  %7764 = vmatprep.subr.bf16.mxu1 %v8222_v37  ;;  %v8199_v22 = vld [vmem:[%s10113_s1 + $0xa0] ss:$16 sps:$4 sm:$0xff]   ;;  %v8266_v36 = vld [vmem:[#allocation2 + $0xa4] ss:$16 sps:$4 sm:$0xff]  }
 0x152   : > { %v8264_v37 = vld [vmem:[#allocation2 + $0xa0] ss:$16 sps:$4 sm:$0xff]  }
 0x154   : > { %7743 = vmatpush3.bf16.msra.mxu0 %v8182_v23  ;;  %7765 = vmatpush3.bf16.msra.mxu1 %v8223_v38  ;;  %v8204_v23 = vld [vmem:[%s10113_s1 + $0x84] ss:$16 sps:$4 sm:$0xff]  }
 0x155   : > { %7744 = vmatprep.subr.bf16.mxu0 %v8183_v24  ;;  %7766 = vmatprep.subr.bf16.mxu1 %v8224_v40  ;;  %v8202_v24 = vld [vmem:[%s10113_s1 + $0x80] ss:$16 sps:$4 sm:$0xff]   ;;  %v8269_v38 = vld [vmem:[#allocation2 + $0x84] ss:$16 sps:$4 sm:$0xff]  }
 0x156   : > { %v8267_v40 = vld [vmem:[#allocation2 + $0x80] ss:$16 sps:$4 sm:$0xff]  }
 0x158   : > { %7745 = vmatpush3.bf16.msra.mxu0 %v8184_v15  ;;  %7767 = vmatpush3.bf16.msra.mxu1 %v8225_v44  ;;  %v8207_v15 = vld [vmem:[%s10113_s1 + $0x64] ss:$16 sps:$4 sm:$0xff]  }
 0x159   : > { %7746 = vmatprep.subr.bf16.mxu0 %v8185_v16  ;;  %7768 = vmatprep.subr.bf16.mxu1 %v8226_v45  ;;  %v8205_v16 = vld [vmem:[%s10113_s1 + $0x60] ss:$16 sps:$4 sm:$0xff]   ;;  %v8272_v44 = vld [vmem:[#allocation2 + $0x64] ss:$16 sps:$4 sm:$0xff]  }
 0x15a   : > { %v8270_v45 = vld [vmem:[#allocation2 + $0x60] ss:$16 sps:$4 sm:$0xff]  }
 0x15c   : > { %7747 = vmatpush3.bf16.msra.mxu0 %v8186_v25  ;;  %7769 = vmatpush3.bf16.msra.mxu1 %v8227_v46  ;;  %v8210_v25 = vld [vmem:[%s10113_s1 + $0x44] ss:$16 sps:$4 sm:$0xff]   ;;  %v763_v46 = vrot.slane %v9378_v54, %v9255_v41 }
 0x15d   : > { %7748 = vmatprep.subr.bf16.mxu0 %v8187_v26  ;;  %7770 = vmatprep.subr.bf16.mxu1 %v8228_v47  ;;  %v8208_v26 = vld [vmem:[%s10113_s1 + $0x40] ss:$16 sps:$4 sm:$0xff]   ;;  %v759_v47 = vrot.slane %v9378_v54, %v9259_v43 }
 0x160   : > { %7749 = vmatpush3.bf16.msra.mxu0 %v8188_v27  ;;  %7771 = vmatpush3.bf16.msra.mxu1 %v8229_v48  ;;  %v8213_v27 = vld [vmem:[%s10113_s1 + $0x24] ss:$16 sps:$4 sm:$0xff]  }
 0x161   : > { %7750 = vmatprep.subr.bf16.mxu0 %v8189_v28  ;;  %7772 = vmatprep.subr.bf16.mxu1 %v8230_v49  ;;  %v8211_v28 = vld [vmem:[%s10113_s1 + $0x20] ss:$16 sps:$4 sm:$0xff]  }
 0x164   : > { %7751 = vmatpush3.bf16.msra.mxu0 %v8190_v29  ;;  %7773 = vmatpush3.bf16.msra.mxu1 %v8231_v50  ;;  %v8216_v29 = vld [vmem:[%s10113_s1 + $0x4] ss:$16 sps:$4 sm:$0xff]  }
 0x165   : > { %7752 = vmatprep.subr.bf16.mxu0 %v8191_v30  ;;  %7774 = vmatprep.subr.bf16.mxu1 %v8232_v51  ;;  %v8214_v30 = vld [vmem:[%s10113_s1] ss:$16 sps:$4 sm:$0xff]  }
 0x168   : > { %7753 = vmatpush3.bf16.msra.mxu0 %v8192_v31  ;;  %7775 = vmatpush3.bf16.msra.mxu1 %v8233_v52  ;;  %v8260_v31 = vld [vmem:[#allocation2 + $0xe4] ss:$16 sps:$4 sm:$0xff]  }
 0x169   : > { %2163 = vmatprep.subr.bf16.mxu0 %v8195_v32  ;;  %2206 = vmatprep.subr.bf16.mxu1 %v8236_v53  ;;  %v9431_v32 = vld [vmem:[%s9226_s23 + $0x8] sm:$0xff]  }
 0x1cb   : > { %v1442_v57 = vpop.f32.mrf.mxu0  ;;  %v1485_v58 = vpop.f32.mrf.mxu1 }
 0x1cc   : > { %v1443_v62 = vadd.f32 %v1442_v57, %v751_v56 }
 0x1cd   : > { %v1444_v59 = vpop.f32.mrf.mxu0  ;;  %v1487_v60 = vpop.f32.mrf.mxu1 }
 0x1ce   : > { %v1445_v61 = vadd.f32 %v1444_v59, %v755_v55  ;;  %v1486_v7 = vadd.f32 %v1485_v58, %v1443_v62 }
 0x1cf   : > { %v1446_v63 = vpop.f32.mrf.mxu0  ;;  %v1489_v1 = vpop.f32.mrf.mxu1 }
 0x1d0   : > { %v1447_v2 = vadd.f32 %v1446_v63, %v751_v56  ;;  %v1488_v4 = vadd.f32 %v1487_v60, %v1445_v61  ;;  %v1580_v13 = vmax.f32 %v1486_v7, 0.0 }
 0x1d1   : > { %v1448_v3 = vpop.f32.mrf.mxu0  ;;  %v1491_v8 = vpop.f32.mrf.mxu1 }
 0x1d2   : > { %v1490_v5 = vadd.f32 %v1489_v1, %v1447_v2  ;;  %v1449_v6 = vadd.f32 %v1448_v3, %v755_v55  ;;  %v1581_v11 = vmax.f32 %v1488_v4, 0.0 }
 0x1d4   : > { %v1492_v9 = vadd.f32 %v1491_v8, %v1449_v6  ;;  %v1584_v10 = vmax.f32 %v1490_v5, 0.0  ;;  %v8234_v6 = vld [vmem:[%s10113_s1 + $0xe8] ss:$16 sps:$4 sm:$0xff]   ;;  %v8239_v8 = vld [vmem:[%s10113_s1 + $0xcc] ss:$16 sps:$4 sm:$0xff]  }
 0x1d6   : > { %v1585_v12 = vmax.f32 %v1492_v9, 0.0  ;;  %v1588_v18 = vpack.c.bf16 %v1584_v10, %v1580_v13  ;;  %v8273_v9 = vld [vmem:[#allocation2 + $0x40] ss:$16 sps:$4 sm:$0xff]   ;;  %v8275_v10 = vld [vmem:[#allocation2 + $0x44] ss:$16 sps:$4 sm:$0xff]  }
 0x1d7   : > { %v8278_v13 = vld [vmem:[#allocation2 + $0x24] ss:$16 sps:$4 sm:$0xff]  }
 0x1d8   : > { %v1589_v14 = vpack.c.bf16 %v1585_v12, %v1581_v11  ;;  %v8237_v11 = vld [vmem:[%s10113_s1 + $0xc8] ss:$16 sps:$4 sm:$0xff]   ;;  %v8242_v12 = vld [vmem:[%s10113_s1 + $0xac] ss:$16 sps:$4 sm:$0xff]  }
 0x1da   : > { %1887 = vmatprep.mubr.bf16.mxu0 %v1589_v14  ;;  %v8240_v14 = vld [vmem:[%s10113_s1 + $0xa8] ss:$16 sps:$4 sm:$0xff]  }
 0x1db   : > { %1888 = vmatmul.mubr.bf16.vlgmr.msra.gmra.mxu0 %v1588_v18  ;;  %v8245_v18 = vld [vmem:[%s10113_s1 + $0x8c] ss:$16 sps:$4 sm:$0xff]  }
 0x1dc   : > { %2164 = vmatpush1.bf16.msra.mxu0 %v8193_v17  ;;  %2195 = vmatprep.mubr.bf16.mxu0 %v9069_v0  ;;  %v8276_v17 = vld [vmem:[#allocation2 + $0x20] ss:$16 sps:$4 sm:$0xff]  }
 0x1dd   : > { %2165 = vmatprep.subr.bf16.mxu0 %v8198_v19  ;;  %v8281_v19 = vld [vmem:[#allocation2 + $0x4] ss:$16 sps:$4 sm:$0xff]  }
 0x1e0   : > { %2166 = vmatpush1.bf16.msra.mxu0 %v8196_v20  ;;  %v8243_v20 = vld [vmem:[%s10113_s1 + $0x88] ss:$16 sps:$4 sm:$0xff]  }
 0x1e1   : > { %2167 = vmatprep.subr.bf16.mxu0 %v8201_v21  ;;  %v8279_v21 = vld [vmem:[#allocation2] ss:$16 sps:$4 sm:$0xff]  }
 0x1e4   : > { %2168 = vmatpush1.bf16.msra.mxu0 %v8199_v22  ;;  %v8284_v22 = vld [vmem:[#allocation2 + $0x1e4] ss:$16 sps:$4 sm:$0xff]  }
 0x1e5   : > { %2169 = vmatprep.subr.bf16.mxu0 %v8204_v23  ;;  %v8248_v23 = vld [vmem:[%s10113_s1 + $0x6c] ss:$16 sps:$4 sm:$0xff]  }
 0x1e8   : > { %2170 = vmatpush1.bf16.msra.mxu0 %v8202_v24  ;;  %v8282_v24 = vld [vmem:[#allocation2 + $0x1e0] ss:$16 sps:$4 sm:$0xff]  }
 0x1e9   : > { %2171 = vmatprep.subr.bf16.mxu0 %v8207_v15  ;;  %v8287_v15 = vld [vmem:[#allocation2 + $0x1c4] ss:$16 sps:$4 sm:$0xff]  }
 0x1ec   : > { %2172 = vmatpush1.bf16.msra.mxu0 %v8205_v16  ;;  %v8246_v16 = vld [vmem:[%s10113_s1 + $0x68] ss:$16 sps:$4 sm:$0xff]  }
 0x1ed   : > { %2173 = vmatprep.subr.bf16.mxu0 %v8210_v25  ;;  %v8251_v25 = vld [vmem:[%s10113_s1 + $0x4c] ss:$16 sps:$4 sm:$0xff]  }
 0x1f0   : > { %2174 = vmatpush1.bf16.msra.mxu0 %v8208_v26  ;;  %v8285_v26 = vld [vmem:[#allocation2 + $0x1c0] ss:$16 sps:$4 sm:$0xff]  }
 0x1f1   : > { %2175 = vmatprep.subr.bf16.mxu0 %v8213_v27  ;;  %v8290_v27 = vld [vmem:[#allocation2 + $0x1a4] ss:$16 sps:$4 sm:$0xff]  }
 0x1f4   : > { %2176 = vmatpush1.bf16.msra.mxu0 %v8211_v28  ;;  %v8249_v28 = vld [vmem:[%s10113_s1 + $0x48] ss:$16 sps:$4 sm:$0xff]  }
 0x1f5   : > { %2177 = vmatprep.subr.bf16.mxu0 %v8216_v29  ;;  %v8254_v29 = vld [vmem:[%s10113_s1 + $0x2c] ss:$16 sps:$4 sm:$0xff]  }
 0x1f8   : > { %2178 = vmatpush1.bf16.msra.mxu0 %v8214_v30  ;;  %v8288_v30 = vld [vmem:[#allocation2 + $0x1a0] ss:$16 sps:$4 sm:$0xff]  }
 0x1f9   : > { %3051 = vmatprep.subr.bf16.mxu0 %v8260_v31  ;;  %v8293_v31 = vld [vmem:[#allocation2 + $0x184] ss:$16 sps:$4 sm:$0xff]  }
 0x1fb   : > { %2196 = vmatmul.mubr.bf16.vlgmr.msra.gmra.mxu0 %v9431_v32 }
 0x1fc   : > { %3052 = vmatpush1.bf16.msra.mxu0 %v8258_v33  ;;  %v8252_v33 = vld [vmem:[%s10113_s1 + $0x28] ss:$16 sps:$4 sm:$0xff]  }
 0x1fd   : > { %3053 = vmatprep.subr.bf16.mxu0 %v8263_v34  ;;  %v8257_v34 = vld [vmem:[%s10113_s1 + $0xc] ss:$16 sps:$4 sm:$0xff]  }
 0x200   : > { %3054 = vmatpush1.bf16.msra.mxu0 %v8261_v35  ;;  %v8291_v35 = vld [vmem:[#allocation2 + $0x180] ss:$16 sps:$4 sm:$0xff]  }
 0x201   : > { %3055 = vmatprep.subr.bf16.mxu0 %v8266_v36  ;;  %v8296_v36 = vld [vmem:[#allocation2 + $0x164] ss:$16 sps:$4 sm:$0xff]  }
 0x204   : > { %3056 = vmatpush1.bf16.msra.mxu0 %v8264_v37  ;;  %v8255_v37 = vld [vmem:[%s10113_s1 + $0x8] ss:$16 sps:$4 sm:$0xff]  }
 0x205   : > { %3057 = vmatprep.subr.bf16.mxu0 %v8269_v38  ;;  %v8294_v38 = vld [vmem:[#allocation2 + $0x160] ss:$16 sps:$4 sm:$0xff]  }
 0x208   : > { %3058 = vmatpush1.bf16.msra.mxu0 %v8267_v40  ;;  %v8299_v40 = vld [vmem:[#allocation2 + $0x144] ss:$16 sps:$4 sm:$0xff]  }
 0x209   : > { %3059 = vmatprep.subr.bf16.mxu0 %v8272_v44  ;;  %v8297_v44 = vld [vmem:[#allocation2 + $0x140] ss:$16 sps:$4 sm:$0xff]  }
 0x20b   : > { %v1528_v48 = vpop.f32.mrf.mxu0  ;;  %v1571_v49 = vpop.f32.mrf.mxu1 }
 0x20c   : > { %3060 = vmatpush1.bf16.msra.mxu0 %v8270_v45  ;;  %v1529_v53 = vadd.f32 %v1528_v48, %v759_v47  ;;  %v8302_v45 = vld [vmem:[#allocation2 + $0x124] ss:$16 sps:$4 sm:$0xff]   ;;  %v8303_v48 = vld [vmem:[#allocation2 + $0x100] ss:$16 sps:$4 sm:$0xff]  }
 0x20d   : > { %v1530_v50 = vpop.f32.mrf.mxu0  ;;  %v1573_v51 = vpop.f32.mrf.mxu1  ;;  %3061 = vmatprep.subr.bf16.mxu0 %v8275_v10  ;;  %v8378_v10 = vld [vmem:[#allocation2 + $0x360] ss:$16 sps:$4 sm:$0xff]  }
 0x20e   : > { %v1531_v52 = vadd.f32 %v1530_v50, %v763_v46  ;;  %v1572_v62 = vadd.f32 %v1571_v49, %v1529_v53  ;;  %v8306_v49 = vld [vmem:[#allocation2 + $0x2e0] ss:$16 sps:$4 sm:$0xff]   ;;  %v8308_v50 = vld [vmem:[#allocation2 + $0x2e4] ss:$16 sps:$4 sm:$0xff]  }
 0x20f   : > { %v1532_v55 = vpop.f32.mrf.mxu0  ;;  %v1575_v56 = vpop.f32.mrf.mxu1  ;;  %v8318_v53 = vld [vmem:[#allocation2 + $0x2a0] ss:$16 sps:$4 sm:$0xff]  }
 0x210   : > { %v1533_v57 = vadd.f32 %v1532_v55, %v759_v47  ;;  %v1574_v59 = vadd.f32 %v1573_v51, %v1531_v52  ;;  %v1582_v4 = vmax.f32 %v1572_v62, 0.0  ;;  %3062 = vmatpush1.bf16.msra.mxu0 %v8273_v9  ;;  %v8305_v47 = vld [vmem:[#allocation2 + $0x104] ss:$16 sps:$4 sm:$0xff]   ;;  %v8311_v51 = vld [vmem:[#allocation2 + $0xec] ss:$16 sps:$4 sm:$0xff]  }
 0x211   : > { %v1534_v58 = vpop.f32.mrf.mxu0  ;;  %v1577_v63 = vpop.f32.mrf.mxu1  ;;  %3063 = vmatprep.subr.bf16.mxu0 %v8278_v13  ;;  %v8312_v52 = vld [vmem:[#allocation2 + $0x2c0] ss:$16 sps:$4 sm:$0xff]   ;;  %v8320_v55 = vld [vmem:[#allocation2 + $0x2a4] ss:$16 sps:$4 sm:$0xff]  }
 0x212   : > { %v1576_v60 = vadd.f32 %v1575_v56, %v1533_v57  ;;  %v1535_v61 = vadd.f32 %v1534_v58, %v763_v46  ;;  %v1583_v3 = vmax.f32 %v1574_v59, 0.0  ;;  %v8300_v46 = vld [vmem:[#allocation2 + $0x120] ss:$16 sps:$4 sm:$0xff]   ;;  %v8326_v57 = vld [vmem:[#allocation2 + $0x284] ss:$16 sps:$4 sm:$0xff]  }
 0x213   : > { %v8324_v56 = vld [vmem:[#allocation2 + $0x280] ss:$16 sps:$4 sm:$0xff]   ;;  %v8332_v59 = vld [vmem:[#allocation2 + $0x264] ss:$16 sps:$4 sm:$0xff]  }
 0x214   : > { %v1578_v1 = vadd.f32 %v1577_v63, %v1535_v61  ;;  %v1586_v2 = vmax.f32 %v1576_v60, 0.0  ;;  %3064 = vmatpush1.bf16.msra.mxu0 %v8276_v17  ;;  %v8330_v58 = vld [vmem:[#allocation2 + $0x260] ss:$16 sps:$4 sm:$0xff]   ;;  %v8338_v60 = vld [vmem:[#allocation2 + $0x244] ss:$16 sps:$4 sm:$0xff]  }
 0x215   : > { %3065 = vmatprep.subr.bf16.mxu0 %v8281_v19  ;;  %v8336_v61 = vld [vmem:[#allocation2 + $0x240] ss:$16 sps:$4 sm:$0xff]   ;;  %v8344_v62 = vld [vmem:[#allocation2 + $0x224] ss:$16 sps:$4 sm:$0xff]  }
 0x216   : > { %v1587_v54 = vmax.f32 %v1578_v1, 0.0  ;;  %v1590_v7 = vpack.c.bf16 %v1586_v2, %v1582_v4  ;;  %v8342_v63 = vld [vmem:[#allocation2 + $0x220] ss:$16 sps:$4 sm:$0xff]   ;;  %v8350_v1 = vld [vmem:[#allocation2 + $0x204] ss:$16 sps:$4 sm:$0xff]  }
 0x217   : > { %v8348_v2 = vld [vmem:[#allocation2 + $0x200] ss:$16 sps:$4 sm:$0xff]   ;;  %v8374_v9 = vld [vmem:[#allocation2 + $0x384] ss:$16 sps:$4 sm:$0xff]  }
 0x218   : > { %v1591_v5 = vpack.c.bf16 %v1587_v54, %v1583_v3  ;;  %3066 = vmatpush1.bf16.msra.mxu0 %v8279_v21  ;;  %v8354_v3 = vld [vmem:[#allocation2 + $0x3e0] ss:$16 sps:$4 sm:$0xff]   ;;  %v8356_v54 = vld [vmem:[#allocation2 + $0x3e4] ss:$16 sps:$4 sm:$0xff]  }
 0x219   : > { %3067 = vmatprep.subr.bf16.mxu0 %v8284_v22  ;;  %v8360_v4 = vld [vmem:[#allocation2 + $0x3c0] ss:$16 sps:$4 sm:$0xff]  }
 0x21a   : > { %1928 = vmatprep.mubr.bf16.mxu1 %v1591_v5  ;;  %v8362_v5 = vld [vmem:[#allocation2 + $0x3c4] ss:$16 sps:$4 sm:$0xff]   ;;  %v8384_v13 = vld [vmem:[#allocation2 + $0x340] ss:$16 sps:$4 sm:$0xff]  }
 0x21b   : > { %1929 = vmatmul.mubr.bf16.vlgmr.msra.gmra.mxu1 %v1590_v7  ;;  %v8368_v7 = vld [vmem:[#allocation2 + $0x3a4] ss:$16 sps:$4 sm:$0xff]   ;;  %v8390_v17 = vld [vmem:[#allocation2 + $0x320] ss:$16 sps:$4 sm:$0xff]  }
 0x21c   : > { %2207 = vmatpush1.bf16.msra.mxu1 %v8234_v6  ;;  %2238 = vmatprep.mubr.bf16.mxu1 %v9069_v0  ;;  %v8366_v6 = vld [vmem:[#allocation2 + $0x3a0] ss:$16 sps:$4 sm:$0xff]  }
 0x21d   : > { %2208 = vmatprep.subr.bf16.mxu1 %v8239_v8  ;;  %3068 = vmatpush2.bf16.msra.mxu0 %v8282_v24  ;;  %v8372_v8 = vld [vmem:[#allocation2 + $0x380] ss:$16 sps:$4 sm:$0xff]  }
 0x21e   : > { %3069 = vmatprep.subr.bf16.mxu0 %v8287_v15  ;;  %v8396_v19 = vld [vmem:[#allocation2 + $0x300] ss:$16 sps:$4 sm:$0xff]  }
 0x21f   : > { %v9488_v24 = vld [vmem:[%s10114_s2] sm:$0xf] }
 0x220   : > { %2209 = vmatpush1.bf16.msra.mxu1 %v8237_v11  ;;  %v8380_v11 = vld [vmem:[#allocation2 + $0x364] ss:$16 sps:$4 sm:$0xff]  }
 0x221   : > { %2210 = vmatprep.subr.bf16.mxu1 %v8242_v12  ;;  %3070 = vmatpush2.bf16.msra.mxu0 %v8285_v26  ;;  %v8386_v12 = vld [vmem:[#allocation2 + $0x344] ss:$16 sps:$4 sm:$0xff]  }
 0x222   : > { %3071 = vmatprep.subr.bf16.mxu0 %v8290_v27 }
 0x224   : > { %2211 = vmatpush1.bf16.msra.mxu1 %v8240_v14  ;;  %v8392_v14 = vld [vmem:[#allocation2 + $0x324] ss:$16 sps:$4 sm:$0xff]  }
 0x225   : > { %2212 = vmatprep.subr.bf16.mxu1 %v8245_v18  ;;  %3072 = vmatpush2.bf16.msra.mxu0 %v8288_v30  ;;  %v8398_v18 = vld [vmem:[#allocation2 + $0x304] ss:$16 sps:$4 sm:$0xff]  }
 0x226   : > { %3073 = vmatprep.subr.bf16.mxu0 %v8293_v31 }
 0x228   : > { %2213 = vmatpush1.bf16.msra.mxu1 %v8243_v20  ;;  %v8404_v20 = vld [vmem:[#allocation2 + $0x2ec] ss:$16 sps:$4 sm:$0xff]  }
 0x229   : > { %2214 = vmatprep.subr.bf16.mxu1 %v8248_v23  ;;  %3074 = vmatpush2.bf16.msra.mxu0 %v8291_v35 }
 0x22a   : > { %3075 = vmatprep.subr.bf16.mxu0 %v8296_v36 }
 0x22c   : > { %2215 = vmatpush1.bf16.msra.mxu1 %v8246_v16  ;;  %v1980_v16 = vrot.slane %v9488_v24, %v9257_v42 }
 0x22d   : > { %2216 = vmatprep.subr.bf16.mxu1 %v8251_v25  ;;  %3076 = vmatpush2.bf16.msra.mxu0 %v8294_v38  ;;  %v1984_v25 = vrot.slane %v9488_v24, %v9250_v39 }
 0x22e   : > { %3077 = vmatprep.subr.bf16.mxu0 %v8299_v40 }
 0x230   : > { %2217 = vmatpush1.bf16.msra.mxu1 %v8249_v28 }
 0x231   : > { %2218 = vmatprep.subr.bf16.mxu1 %v8254_v29  ;;  %3078 = vmatpush2.bf16.msra.mxu0 %v8297_v44 }
 0x232   : > { %3079 = vmatprep.subr.bf16.mxu0 %v8302_v45  ;;  %v8309_v45 = vld [vmem:[#allocation2 + $0xe8] ss:$16 sps:$4 sm:$0xff]  }
 0x234   : > { %2219 = vmatpush1.bf16.msra.mxu1 %v8252_v33 }
 0x235   : > { %2220 = vmatprep.subr.bf16.mxu1 %v8257_v34  ;;  %3080 = vmatpush2.bf16.msra.mxu0 %v8300_v46  ;;  %v8317_v46 = vld [vmem:[#allocation2 + $0xcc] ss:$16 sps:$4 sm:$0xff]  }
 0x236   : > { %3081 = vmatprep.subr.bf16.mxu0 %v8305_v47  ;;  %v8315_v47 = vld [vmem:[#allocation2 + $0xc8] ss:$16 sps:$4 sm:$0xff]  }
 0x238   : > { %2221 = vmatpush1.bf16.msra.mxu1 %v8255_v37 }
 0x239   : > { %3082 = vmatpush2.bf16.msra.mxu0 %v8303_v48  ;;  %3094 = vmatprep.subr.bf16.mxu1 %v8308_v50  ;;  %v8323_v48 = vld [vmem:[#allocation2 + $0xac] ss:$16 sps:$4 sm:$0xff]  }
 0x23a   : > { %3137 = vmatprep.subr.bf16.mxu0 %v8311_v51  ;;  %v8329_v50 = vld [vmem:[#allocation2 + $0x8c] ss:$16 sps:$4 sm:$0xff]   ;;  %v8327_v51 = vld [vmem:[#allocation2 + $0x88] ss:$16 sps:$4 sm:$0xff]  }
 0x23b   : > { %2239 = vmatmul.mubr.bf16.vlgmr.msra.gmra.mxu1 %v9431_v32  ;;  %v8314_v32 = vld [vmem:[#allocation2 + $0x2c4] ss:$16 sps:$4 sm:$0xff]  }
 0x23c   : > { %3095 = vmatpush1.bf16.msra.mxu1 %v8306_v49  ;;  %v8321_v49 = vld [vmem:[#allocation2 + $0xa8] ss:$16 sps:$4 sm:$0xff]  }
 0x23d   : > { %3096 = vmatprep.subr.bf16.mxu1 %v8314_v32  ;;  %v8333_v32 = vld [vmem:[#allocation2 + $0x68] ss:$16 sps:$4 sm:$0xff]  }
 0x240   : > { %3097 = vmatpush1.bf16.msra.mxu1 %v8312_v52  ;;  %v8335_v52 = vld [vmem:[#allocation2 + $0x6c] ss:$16 sps:$4 sm:$0xff]  }
 0x241   : > { %3098 = vmatprep.subr.bf16.mxu1 %v8320_v55 }
 0x244   : > { %3099 = vmatpush1.bf16.msra.mxu1 %v8318_v53  ;;  %v8341_v53 = vld [vmem:[#allocation2 + $0x4c] ss:$16 sps:$4 sm:$0xff]  }
 0x245   : > { %3100 = vmatprep.subr.bf16.mxu1 %v8326_v57  ;;  %v7109_v57 = vld [vmem:[%s10118_s6] ss:$0 sm:$0xff] }
 0x248   : > { %3101 = vmatpush1.bf16.msra.mxu1 %v8324_v56  ;;  %v8339_v56 = vld [vmem:[#allocation2 + $0x48] ss:$16 sps:$4 sm:$0xff]  }
 0x249   : > { %3102 = vmatprep.subr.bf16.mxu1 %v8332_v59  ;;  %v8347_v59 = vld [vmem:[#allocation2 + $0x2c] ss:$16 sps:$4 sm:$0xff]  }
 0x24c   : > { %3103 = vmatpush1.bf16.msra.mxu1 %v8330_v58 }
 0x24d   : > { %3104 = vmatprep.subr.bf16.mxu1 %v8338_v60 }
 0x250   : > { %3105 = vmatpush1.bf16.msra.mxu1 %v8336_v61 }
 0x251   : > { %3106 = vmatprep.subr.bf16.mxu1 %v8344_v62 }
 0x254   : > { %3107 = vmatpush1.bf16.msra.mxu1 %v8342_v63 }
 0x255   : > { %3108 = vmatprep.subr.bf16.mxu1 %v8350_v1  ;;  %v8345_v1 = vld [vmem:[#allocation2 + $0x28] ss:$16 sps:$4 sm:$0xff]  }
 0x258   : > { %3109 = vmatpush1.bf16.msra.mxu1 %v8348_v2 }
 0x259   : > { %3110 = vmatprep.subr.bf16.mxu1 %v8356_v54 }
 0x25c   : > { %3111 = vmatpush2.bf16.msra.mxu1 %v8354_v3  ;;  %v8353_v3 = vld [vmem:[#allocation2 + $0xc] ss:$16 sps:$4 sm:$0xff]  }
 0x25d   : > { %3112 = vmatprep.subr.bf16.mxu1 %v8362_v5 }
 0x260   : > { %3113 = vmatpush2.bf16.msra.mxu1 %v8360_v4 }
 0x261   : > { %3114 = vmatprep.subr.bf16.mxu1 %v8368_v7  ;;  %v8351_v7 = vld [vmem:[#allocation2 + $0x8] ss:$16 sps:$4 sm:$0xff]  }
 0x264   : > { %3115 = vmatpush2.bf16.msra.mxu1 %v8366_v6 }
 0x265   : > { %3116 = vmatprep.subr.bf16.mxu1 %v8374_v9 }
 0x268   : > { %3117 = vmatpush2.bf16.msra.mxu1 %v8372_v8  ;;  %v8359_v8 = vld [vmem:[#allocation2 + $0x1ec] ss:$16 sps:$4 sm:$0xff]  }
 0x269   : > { %3118 = vmatprep.subr.bf16.mxu1 %v8380_v11  ;;  %v8365_v11 = vld [vmem:[#allocation2 + $0x1cc] ss:$16 sps:$4 sm:$0xff]  }
 0x26c   : > { %3119 = vmatpush2.bf16.msra.mxu1 %v8378_v10  ;;  %v8357_v10 = vld [vmem:[#allocation2 + $0x1e8] ss:$16 sps:$4 sm:$0xff]  }
 0x26d   : > { %3120 = vmatprep.subr.bf16.mxu1 %v8386_v12  ;;  %v8363_v12 = vld [vmem:[#allocation2 + $0x1c8] ss:$16 sps:$4 sm:$0xff]  }
 0x270   : > { %3121 = vmatpush2.bf16.msra.mxu1 %v8384_v13  ;;  %v8371_v13 = vld [vmem:[#allocation2 + $0x1ac] ss:$16 sps:$4 sm:$0xff]  }
 0x271   : > { %3122 = vmatprep.subr.bf16.mxu1 %v8392_v14  ;;  %v8369_v14 = vld [vmem:[#allocation2 + $0x1a8] ss:$16 sps:$4 sm:$0xff]  }
 0x274   : > { %3123 = vmatpush2.bf16.msra.mxu1 %v8390_v17  ;;  %v8377_v17 = vld [vmem:[#allocation2 + $0x18c] ss:$16 sps:$4 sm:$0xff]  }
 0x275   : > { %3124 = vmatprep.subr.bf16.mxu1 %v8398_v18  ;;  %v8375_v18 = vld [vmem:[#allocation2 + $0x188] ss:$16 sps:$4 sm:$0xff]  }
 0x278   : > { %3125 = vmatpush2.bf16.msra.mxu1 %v8396_v19  ;;  %v8383_v19 = vld [vmem:[#allocation2 + $0x16c] ss:$16 sps:$4 sm:$0xff]  }
 0x279   : > { %3180 = vmatprep.subr.bf16.mxu1 %v8404_v20  ;;  %v8381_v20 = vld [vmem:[#allocation2 + $0x168] ss:$16 sps:$4 sm:$0xff]  }
 0x29b   : > { %v7754_v21 = vpop.f32.mrf.mxu0 }
 0x29d   : > { %v7755_v22 = vpop.f32.mrf.mxu0 }
 0x29e   : > { %v7756_v55 = vadd.f32 %v7755_v22, %v7754_v21  ;;  %v8389_v21 = vld [vmem:[#allocation2 + $0x14c] ss:$16 sps:$4 sm:$0xff]   ;;  %v8387_v22 = vld [vmem:[#allocation2 + $0x148] ss:$16 sps:$4 sm:$0xff]  }
 0x29f   : > { %v7757_v23 = vpop.f32.mrf.mxu0 }
 0x2a0   : > { %v1890_v61 = vadd.f32 %v7756_v55, %v7109_v57  ;;  %v8408_v55 = vld [vmem:[#allocation2 + $0x2a8] ss:$16 sps:$4 sm:$0xff]  }
 0x2a1   : > { %v7758_v15 = vpop.f32.mrf.mxu0 }
 0x2a2   : > { %v7759_v62 = vadd.f32 %v7758_v15, %v7757_v23  ;;  %v8395_v15 = vld [vmem:[#allocation2 + $0x12c] ss:$16 sps:$4 sm:$0xff]  }
 0x2a4   : > { %v1893_v5 = vadd.f32 %v7759_v62, %v7109_v57  ;;  %v8455_v57 = vld [vmem:[%s10117_s5 + $0x28] sm:$0xff]   ;;  %v8458_v62 = vld [vmem:[%s10117_s5 + $0x58] sm:$0xff]  }
 0x2bb   : > { %v2197_v26 = vpop.f32.mrf.mxu0 }
 0x2bc   : > { %v2198_v27 = vadd.f32 %v2197_v26, %v1980_v16 }
 0x2bd   : > { %v2199_v28 = vpop.f32.mrf.mxu0 }
 0x2be   : > { %v2200_v29 = vadd.f32 %v2199_v28, %v1984_v25  ;;  %v2249_v33 = vmax.f32 %v2198_v27, 0.0  ;;  %v8393_v27 = vld [vmem:[#allocation2 + $0x128] ss:$16 sps:$4 sm:$0xff]  }
 0x2bf   : > { %v2201_v30 = vpop.f32.mrf.mxu0 }
 0x2c0   : > { %v2202_v31 = vadd.f32 %v2201_v30, %v1980_v16  ;;  %v2250_v35 = vmax.f32 %v2200_v29, 0.0  ;;  %v1992_v16 = vrot.slane %v9488_v24, %v9255_v41  ;;  %v8401_v29 = vld [vmem:[#allocation2 + $0x10c] ss:$16 sps:$4 sm:$0xff]  }
 0x2c1   : > { %v2203_v34 = vpop.f32.mrf.mxu0 }
 0x2c2   : > { %v2253_v36 = vmax.f32 %v2202_v31, 0.0  ;;  %v2204_v37 = vadd.f32 %v2203_v34, %v1984_v25  ;;  %v1988_v25 = vrot.slane %v9488_v24, %v9259_v43 }
 0x2c4   : > { %v2254_v38 = vmax.f32 %v2204_v37, 0.0  ;;  %v9494_v40 = vpack.c.bf16 %v2253_v36, %v2249_v33  ;;  %v8399_v36 = vld [vmem:[#allocation2 + $0x108] ss:$16 sps:$4 sm:$0xff]  }
 0x2c6   : > { %v2258_v44 = vpack.c.bf16 %v2254_v38, %v2250_v35  ;;  %v8450_v38 = vld [vmem:[%s10117_s5 + $0x78] sm:$0xff]  }
 0x2c8   : > { %3083 = vmatprep.mubr.bf16.mxu0 %v2258_v44 }
 0x2c9   : > { %3084 = vmatmul.mubr.bf16.vlgmr.msra.gmra.mxu0 %v9494_v40 }
 0x2ca   : > { %3138 = vmatpush1.bf16.msra.mxu0 %v8309_v45  ;;  %3169 = vmatprep.mubr.bf16.mxu0 %v2258_v44 }
 0x2cb   : > { %3139 = vmatprep.subr.bf16.mxu0 %v8317_v46 }
 0x2ce   : > { %3140 = vmatpush1.bf16.msra.mxu0 %v8315_v47  ;;  %v8402_v47 = vld [vmem:[#allocation2 + $0x2e8] ss:$16 sps:$4 sm:$0xff]  }
 0x2cf   : > { %3141 = vmatprep.subr.bf16.mxu0 %v8323_v48 }
 0x2d2   : > { %3142 = vmatpush1.bf16.msra.mxu0 %v8321_v49  ;;  %v8407_v49 = vld [vmem:[#allocation2 + $0x2cc] ss:$16 sps:$4 sm:$0xff]  }
 0x2d3   : > { %3143 = vmatprep.subr.bf16.mxu0 %v8329_v50  ;;  %v8451_v50 = vld [vmem:[%s10117_s5 + $0x38] sm:$0xff]  }
 0x2d6   : > { %3144 = vmatpush1.bf16.msra.mxu0 %v8327_v51  ;;  %v8405_v51 = vld [vmem:[#allocation2 + $0x2c8] ss:$16 sps:$4 sm:$0xff]  }
 0x2d7   : > { %3145 = vmatprep.subr.bf16.mxu0 %v8335_v52  ;;  %v8452_v52 = vld [vmem:[%s10117_s5 + $0x70] sm:$0xff]  }
 0x2da   : > { %3146 = vmatpush1.bf16.msra.mxu0 %v8333_v32  ;;  %v8410_v32 = vld [vmem:[#allocation2 + $0x2ac] ss:$16 sps:$4 sm:$0xff]  }
 0x2db   : > { %v7776_v58 = vpop.f32.mrf.mxu1  ;;  %3147 = vmatprep.subr.bf16.mxu0 %v8341_v53  ;;  %v8453_v53 = vld [vmem:[%s10117_s5 + $0x30] sm:$0xff]  }
 0x2dd   : > { %v7777_v60 = vpop.f32.mrf.mxu1 }
 0x2de   : > { %v7778_v63 = vadd.f32 %v7777_v60, %v7776_v58  ;;  %3148 = vmatpush1.bf16.msra.mxu0 %v8339_v56  ;;  %v8413_v56 = vld [vmem:[#allocation2 + $0x28c] ss:$16 sps:$4 sm:$0xff]   ;;  %v8456_v58 = vld [vmem:[%s10117_s5 + $0x60] sm:$0xff]  }
 0x2df   : > { %v7779_v2 = vpop.f32.mrf.mxu1  ;;  %3149 = vmatprep.subr.bf16.mxu0 %v8347_v59  ;;  %v8411_v59 = vld [vmem:[#allocation2 + $0x288] ss:$16 sps:$4 sm:$0xff]   ;;  %v8416_v60 = vld [vmem:[#allocation2 + $0x26c] ss:$16 sps:$4 sm:$0xff]  }
 0x2e0   : > { %v1931_v54 = vadd.f32 %v7778_v63, %v1890_v61  ;;  %v8457_v61 = vld [vmem:[%s10117_s5 + $0x20] sm:$0xff]   ;;  %v8414_v63 = vld [vmem:[#allocation2 + $0x268] ss:$16 sps:$4 sm:$0xff]  }
 0x2e1   : > { %v7780_v4 = vpop.f32.mrf.mxu1 }
 0x2e2   : > { %1938 = vst.msk [vmem:[%s9504_s17] sm:$0xff] %vm1937_vm0, %v1931_v54  ;;  %v7781_v6 = vadd.f32 %v7780_v4, %v7779_v2  ;;  %3150 = vmatpush1.bf16.msra.mxu0 %v8345_v1  ;;  %v8419_v1 = vld [vmem:[#allocation2 + $0x24c] ss:$16 sps:$4 sm:$0xff]   ;;  %v8420_v4 = vld [vmem:[#allocation2 + $0x228] ss:$16 sps:$4 sm:$0xff]  }
 0x2e3   : > { %3151 = vmatprep.subr.bf16.mxu0 %v8353_v3  ;;  %v8459_v2 = vld [vmem:[%s10117_s5 + $0x18] sm:$0xff]  }
 0x2e4   : > { %v1934_v9 = vadd.f32 %v7781_v6, %v1893_v5  ;;  %v8417_v3 = vld [vmem:[#allocation2 + $0x248] ss:$16 sps:$4 sm:$0xff]   ;;  %v8422_v54 = vld [vmem:[#allocation2 + $0x22c] ss:$16 sps:$4 sm:$0xff]  }
 0x2e5   : > { %v8425_v5 = vld [vmem:[#allocation2 + $0x20c] ss:$16 sps:$4 sm:$0xff]   ;;  %v8423_v6 = vld [vmem:[#allocation2 + $0x208] ss:$16 sps:$4 sm:$0xff]  }
 0x2e6   : > { %1939 = vst.msk [vmem:[%s9504_s17 + $0x8] sm:$0xff] %vm1937_vm0, %v1934_v9  ;;  %3152 = vmatpush1.bf16.msra.mxu0 %v8351_v7  ;;  %v8428_v7 = vld [vmem:[#allocation2 + $0x3ec] ss:$16 sps:$4 sm:$0xff]  }
 0x2e7   : > { %3153 = vmatprep.subr.bf16.mxu0 %v8359_v8  ;;  %v8426_v8 = vld [vmem:[#allocation2 + $0x3e8] ss:$16 sps:$4 sm:$0xff]   ;;  %v8431_v9 = vld [vmem:[#allocation2 + $0x3cc] ss:$16 sps:$4 sm:$0xff]  }
 0x2ea   : > { %3154 = vmatpush2.bf16.msra.mxu0 %v8357_v10  ;;  %v8429_v10 = vld [vmem:[#allocation2 + $0x3c8] ss:$16 sps:$4 sm:$0xff]  }
 0x2eb   : > { %3155 = vmatprep.subr.bf16.mxu0 %v8365_v11  ;;  %v8434_v11 = vld [vmem:[#allocation2 + $0x3ac] ss:$16 sps:$4 sm:$0xff]  }
 0x2ee   : > { %3156 = vmatpush2.bf16.msra.mxu0 %v8363_v12  ;;  %v8432_v12 = vld [vmem:[#allocation2 + $0x3a8] ss:$16 sps:$4 sm:$0xff]  }
 0x2ef   : > { %3157 = vmatprep.subr.bf16.mxu0 %v8371_v13  ;;  %v8437_v13 = vld [vmem:[#allocation2 + $0x38c] ss:$16 sps:$4 sm:$0xff]  }
 0x2f2   : > { %3158 = vmatpush2.bf16.msra.mxu0 %v8369_v14  ;;  %v8435_v14 = vld [vmem:[#allocation2 + $0x388] ss:$16 sps:$4 sm:$0xff]  }
 0x2f3   : > { %3159 = vmatprep.subr.bf16.mxu0 %v8377_v17  ;;  %v8440_v17 = vld [vmem:[#allocation2 + $0x36c] ss:$16 sps:$4 sm:$0xff]  }
 0x2f6   : > { %3160 = vmatpush2.bf16.msra.mxu0 %v8375_v18  ;;  %v8438_v18 = vld [vmem:[#allocation2 + $0x368] ss:$16 sps:$4 sm:$0xff]  }
 0x2f7   : > { %3161 = vmatprep.subr.bf16.mxu0 %v8383_v19  ;;  %v8443_v19 = vld [vmem:[#allocation2 + $0x34c] ss:$16 sps:$4 sm:$0xff]  }
 0x2fa   : > { %3162 = vmatpush2.bf16.msra.mxu0 %v8381_v20  ;;  %v8441_v20 = vld [vmem:[#allocation2 + $0x348] ss:$16 sps:$4 sm:$0xff]  }
 0x2fb   : > { %v2240_v23 = vpop.f32.mrf.mxu1  ;;  %3163 = vmatprep.subr.bf16.mxu0 %v8389_v21  ;;  %v8446_v21 = vld [vmem:[#allocation2 + $0x32c] ss:$16 sps:$4 sm:$0xff]  }
 0x2fc   : > { %v2241_v33 = vadd.f32 %v2240_v23, %v1988_v25  ;;  %v8449_v23 = vld [vmem:[#allocation2 + $0x30c] ss:$16 sps:$4 sm:$0xff]  }
 0x2fd   : > { %v2242_v26 = vpop.f32.mrf.mxu1 }
 0x2fe   : > { %3164 = vmatpush2.bf16.msra.mxu0 %v8387_v22  ;;  %v2243_v30 = vadd.f32 %v2242_v26, %v1992_v16  ;;  %v2251_v45 = vmax.f32 %v2241_v33, 0.0  ;;  %v8444_v22 = vld [vmem:[#allocation2 + $0x328] ss:$16 sps:$4 sm:$0xff]  }
 0x2ff   : > { %v2244_v28 = vpop.f32.mrf.mxu1  ;;  %3165 = vmatprep.subr.bf16.mxu0 %v8395_v15  ;;  %v8447_v15 = vld [vmem:[#allocation2 + $0x308] ss:$16 sps:$4 sm:$0xff]  }
 0x300   : > { %v2245_v31 = vadd.f32 %v2244_v28, %v1988_v25  ;;  %v2252_v24 = vmax.f32 %v2243_v30, 0.0  ;;  %v8461_v25 = vld [vmem:[%s10117_s5 + $0x10] sm:$0xff]   ;;  %v8462_v26 = vld [vmem:[%s10117_s5 + $0x48] sm:$0xff]   ;;  %v8464_v28 = vld [vmem:[%s10117_s5 + $0x40] sm:$0xff]  }
 0x301   : > { %v2246_v34 = vpop.f32.mrf.mxu1  ;;  %v8468_v30 = vld [vmem:[%s10113_s1 + $0xe4] ss:$16 sps:$4 sm:$0xff]   ;;  %v8491_v33 = vld [vmem:[%s10117_s5 + $0xb8] sm:$0xff]  }
 0x302   : > { %v2247_v35 = vadd.f32 %v2246_v34, %v1992_v16  ;;  %3166 = vmatpush2.bf16.msra.mxu0 %v8393_v27  ;;  %v2255_v37 = vmax.f32 %v2245_v31, 0.0  ;;  %v8460_v16 = vld [vmem:[%s10117_s5 + $0x50] sm:$0xff]   ;;  %v8463_v27 = vld [vmem:[%s10117_s5 + $0x8] sm:$0xff]   ;;  %v8490_v31 = vld [vmem:[%s10117_s5 + $0xf8] sm:$0xff]  }
 0x303   : > { %3167 = vmatprep.subr.bf16.mxu0 %v8401_v29  ;;  %v8465_v29 = vld [vmem:[%s10117_s5] sm:$0xff]   ;;  %v8493_v34 = vld [vmem:[%s10117_s5 + $0xf0] sm:$0xff]  }
 0x304   : > { %v2256_v44 = vmax.f32 %v2247_v35, 0.0  ;;  %v9517_v48 = vpack.c.bf16 %v2255_v37, %v2251_v45  ;;  %v8494_v35 = vld [vmem:[%s10117_s5 + $0xb0] sm:$0xff]   ;;  %v8496_v37 = vld [vmem:[%s10117_s5 + $0xa8] sm:$0xff]   ;;  %v8500_v45 = vld [vmem:[%s10117_s5 + $0x98] sm:$0xff]  }
 0x306   : > { %v2260_v46 = vpack.c.bf16 %v2256_v44, %v2252_v24  ;;  %3168 = vmatpush2.bf16.msra.mxu0 %v8399_v36  ;;  %v8495_v36 = vld [vmem:[%s10117_s5 + $0xe8] sm:$0xff]   ;;  %v8498_v24 = vld [vmem:[%s10117_s5 + $0xa0] sm:$0xff]   ;;  %v8499_v44 = vld [vmem:[%s10117_s5 + $0xd8] sm:$0xff]  }
 0x307   : > { %7782 = vmatprep.subr.bf16.mxu0 %v8450_v38  ;;  %v8497_v38 = vld [vmem:[%s10117_s5 + $0xe0] sm:$0xff]  }
 0x308   : > { %3126 = vmatprep.mubr.bf16.mxu1 %v2260_v46 }
 0x309   : > { %3127 = vmatmul.mubr.bf16.vlgmr.msra.gmra.mxu1 %v9517_v48  ;;  %3170 = vmatmul.mubr.bf16.vlgmr.msra.gmra.mxu0 %v9494_v40  ;;  %v8454_v40 = vld [vmem:[%s10117_s5 + $0x68] sm:$0xff]  }
 0x30a   : > { %3181 = vmatpush1.bf16.msra.mxu1 %v8402_v47  ;;  %3212 = vmatprep.mubr.bf16.mxu1 %v2260_v46  ;;  %v8501_v46 = vld [vmem:[%s10117_s5 + $0xd0] sm:$0xff]  }
 0x30b   : > { %3182 = vmatprep.subr.bf16.mxu1 %v8407_v49  ;;  %7783 = vmatpush3.bf16.msra.mxu0 %v8451_v50  ;;  %v8502_v47 = vld [vmem:[%s10117_s5 + $0x90] sm:$0xff]   ;;  %v8504_v49 = vld [vmem:[%s10117_s5 + $0x88] sm:$0xff]   ;;  %v8505_v50 = vld [vmem:[%s10117_s5 + $0xc0] sm:$0xff]  }
 0x30c   : > { %7784 = vmatprep.subr.bf16.mxu0 %v8452_v52  ;;  %v8509_v52 = vld [vmem:[%s10113_s1 + $0xec] ss:$16 sps:$4 sm:$0xff]  }
 0x30e   : > { %3183 = vmatpush1.bf16.msra.mxu1 %v8405_v51  ;;  %v8506_v51 = vld [vmem:[%s10117_s5 + $0x80] sm:$0xff]  }
 0x30f   : > { %3184 = vmatprep.subr.bf16.mxu1 %v8410_v32  ;;  %7785 = vmatpush3.bf16.msra.mxu0 %v8453_v53 }
 0x310   : > { %7786 = vmatprep.subr.bf16.mxu0 %v8454_v40 }
 0x312   : > { %3185 = vmatpush1.bf16.msra.mxu1 %v8408_v55  ;;  %v9624_v55 = vld [vmem:[%s10116_s4] sm:$0xf] }
 0x313   : > { %3186 = vmatprep.subr.bf16.mxu1 %v8413_v56  ;;  %7787 = vmatpush3.bf16.msra.mxu0 %v8455_v57  ;;  %v2394_v56 = vrot.slane %v9624_v55, %v9257_v42  ;;  %v2398_v57 = vrot.slane %v9624_v55, %v9250_v39 }
 0x314   : > { %7788 = vmatprep.subr.bf16.mxu0 %v8456_v58 }
 0x316   : > { %3187 = vmatpush1.bf16.msra.mxu1 %v8411_v59 }
 0x317   : > { %3188 = vmatprep.subr.bf16.mxu1 %v8416_v60  ;;  %7789 = vmatpush3.bf16.msra.mxu0 %v8457_v61 }
 0x318   : > { %7790 = vmatprep.subr.bf16.mxu0 %v8458_v62 }
 0x31a   : > { %3189 = vmatpush1.bf16.msra.mxu1 %v8414_v63 }
 0x31b   : > { %3190 = vmatprep.subr.bf16.mxu1 %v8419_v1  ;;  %7791 = vmatpush3.bf16.msra.mxu0 %v8459_v2 }
 0x31c   : > { %7792 = vmatprep.subr.bf16.mxu0 %v8460_v16  ;;  %v8481_v16 = vld [vmem:[%s10113_s1 + $0x40] ss:$16 sps:$4 sm:$0xff]  }
 0x31e   : > { %3191 = vmatpush1.bf16.msra.mxu1 %v8417_v3 }
 0x31f   : > { %3192 = vmatprep.subr.bf16.mxu1 %v8422_v54  ;;  %7793 = vmatpush3.bf16.msra.mxu0 %v8461_v25  ;;  %v8486_v25 = vld [vmem:[%s10113_s1 + $0x24] ss:$16 sps:$4 sm:$0xff]  }
 0x320   : > { %7794 = vmatprep.subr.bf16.mxu0 %v8462_v26  ;;  %v8484_v26 = vld [vmem:[%s10113_s1 + $0x20] ss:$16 sps:$4 sm:$0xff]  }
 0x322   : > { %3193 = vmatpush1.bf16.msra.mxu1 %v8420_v4 }
 0x323   : > { %3194 = vmatprep.subr.bf16.mxu1 %v8425_v5  ;;  %7795 = vmatpush3.bf16.msra.mxu0 %v8463_v27  ;;  %v8489_v27 = vld [vmem:[%s10113_s1 + $0x4] ss:$16 sps:$4 sm:$0xff]  }
 0x324   : > { %7796 = vmatprep.subr.bf16.mxu0 %v8464_v28  ;;  %v8487_v28 = vld [vmem:[%s10113_s1] ss:$16 sps:$4 sm:$0xff]  }
 0x326   : > { %3195 = vmatpush1.bf16.msra.mxu1 %v8423_v6 }
 0x327   : > { %3196 = vmatprep.subr.bf16.mxu1 %v8428_v7  ;;  %7797 = vmatpush3.bf16.msra.mxu0 %v8465_v29  ;;  %v8533_v29 = vld [vmem:[#allocation2 + $0xe4] ss:$16 sps:$4 sm:$0xff]  }
 0x328   : > { %3806 = vmatprep.subr.bf16.mxu0 %v8468_v30  ;;  %v9677_v30 = vld [vmem:[%s9226_s23 + $0x10] sm:$0xff]  }
 0x32a   : > { %3197 = vmatpush2.bf16.msra.mxu1 %v8426_v8 }
 0x32b   : > { %3198 = vmatprep.subr.bf16.mxu1 %v8431_v9 }
 0x32e   : > { %3199 = vmatpush2.bf16.msra.mxu1 %v8429_v10 }
 0x32f   : > { %3200 = vmatprep.subr.bf16.mxu1 %v8434_v11 }
 0x332   : > { %3201 = vmatpush2.bf16.msra.mxu1 %v8432_v12  ;;  %v8466_v12 = vld [vmem:[%s10113_s1 + $0xe0] ss:$16 sps:$4 sm:$0xff]  }
 0x333   : > { %3202 = vmatprep.subr.bf16.mxu1 %v8437_v13 }
 0x336   : > { %3203 = vmatpush2.bf16.msra.mxu1 %v8435_v14  ;;  %v8471_v14 = vld [vmem:[%s10113_s1 + $0xc4] ss:$16 sps:$4 sm:$0xff]  }
 0x337   : > { %3204 = vmatprep.subr.bf16.mxu1 %v8440_v17  ;;  %v8469_v17 = vld [vmem:[%s10113_s1 + $0xc0] ss:$16 sps:$4 sm:$0xff]  }
 0x33a   : > { %3205 = vmatpush2.bf16.msra.mxu1 %v8438_v18  ;;  %v8474_v18 = vld [vmem:[%s10113_s1 + $0xa4] ss:$16 sps:$4 sm:$0xff]  }
 0x33b   : > { %3206 = vmatprep.subr.bf16.mxu1 %v8443_v19  ;;  %v8472_v19 = vld [vmem:[%s10113_s1 + $0xa0] ss:$16 sps:$4 sm:$0xff]  }
 0x33e   : > { %3207 = vmatpush2.bf16.msra.mxu1 %v8441_v20  ;;  %v8477_v20 = vld [vmem:[%s10113_s1 + $0x84] ss:$16 sps:$4 sm:$0xff]  }
 0x33f   : > { %3208 = vmatprep.subr.bf16.mxu1 %v8446_v21  ;;  %v8475_v21 = vld [vmem:[%s10113_s1 + $0x80] ss:$16 sps:$4 sm:$0xff]  }
 0x342   : > { %3209 = vmatpush2.bf16.msra.mxu1 %v8444_v22  ;;  %v8480_v22 = vld [vmem:[%s10113_s1 + $0x64] ss:$16 sps:$4 sm:$0xff]  }
 0x343   : > { %3210 = vmatprep.subr.bf16.mxu1 %v8449_v23  ;;  %v8478_v23 = vld [vmem:[%s10113_s1 + $0x60] ss:$16 sps:$4 sm:$0xff]  }
 0x346   : > { %3211 = vmatpush2.bf16.msra.mxu1 %v8447_v15  ;;  %v8483_v15 = vld [vmem:[%s10113_s1 + $0x44] ss:$16 sps:$4 sm:$0xff]  }
 0x347   : > { %7804 = vmatprep.subr.bf16.mxu1 %v8490_v31  ;;  %v8531_v31 = vld [vmem:[#allocation2 + $0xe0] ss:$16 sps:$4 sm:$0xff]  }
 0x349   : > { %3213 = vmatmul.mubr.bf16.vlgmr.msra.gmra.mxu1 %v9517_v48  ;;  %v8503_v48 = vld [vmem:[%s10117_s5 + $0xc8] sm:$0xff]  }
 0x34a   : > { %7805 = vmatpush3.bf16.msra.mxu1 %v8491_v33  ;;  %v8536_v33 = vld [vmem:[#allocation2 + $0xc4] ss:$16 sps:$4 sm:$0xff]  }
 0x34b   : > { %7806 = vmatprep.subr.bf16.mxu1 %v8493_v34  ;;  %v8534_v34 = vld [vmem:[#allocation2 + $0xc0] ss:$16 sps:$4 sm:$0xff]  }
 0x34e   : > { %7807 = vmatpush3.bf16.msra.mxu1 %v8494_v35  ;;  %v8539_v35 = vld [vmem:[#allocation2 + $0xa4] ss:$16 sps:$4 sm:$0xff]  }
 0x34f   : > { %7808 = vmatprep.subr.bf16.mxu1 %v8495_v36  ;;  %v8537_v36 = vld [vmem:[#allocation2 + $0xa0] ss:$16 sps:$4 sm:$0xff]  }
 0x352   : > { %7809 = vmatpush3.bf16.msra.mxu1 %v8496_v37  ;;  %v8542_v37 = vld [vmem:[#allocation2 + $0x84] ss:$16 sps:$4 sm:$0xff]  }
 0x353   : > { %7810 = vmatprep.subr.bf16.mxu1 %v8497_v38 }
 0x356   : > { %7811 = vmatpush3.bf16.msra.mxu1 %v8498_v24  ;;  %v8540_v24 = vld [vmem:[#allocation2 + $0x80] ss:$16 sps:$4 sm:$0xff]  }
 0x357   : > { %7812 = vmatprep.subr.bf16.mxu1 %v8499_v44  ;;  %v8545_v44 = vld [vmem:[#allocation2 + $0x64] ss:$16 sps:$4 sm:$0xff]  }
 0x35a   : > { %7813 = vmatpush3.bf16.msra.mxu1 %v8500_v45 }
 0x35b   : > { %7814 = vmatprep.subr.bf16.mxu1 %v8501_v46  ;;  %v8543_v46 = vld [vmem:[#allocation2 + $0x60] ss:$16 sps:$4 sm:$0xff]  }
 0x35e   : > { %7815 = vmatpush3.bf16.msra.mxu1 %v8502_v47 }
 0x35f   : > { %7816 = vmatprep.subr.bf16.mxu1 %v8503_v48  ;;  %v2406_v48 = vrot.slane %v9624_v55, %v9255_v41 }
 0x362   : > { %7817 = vmatpush3.bf16.msra.mxu1 %v8504_v49  ;;  %v2402_v49 = vrot.slane %v9624_v55, %v9259_v43  ;;  %v8507_v55 = vld [vmem:[%s10113_s1 + $0xe8] ss:$16 sps:$4 sm:$0xff]  }
 0x363   : > { %7818 = vmatprep.subr.bf16.mxu1 %v8505_v50 }
 0x366   : > { %7819 = vmatpush3.bf16.msra.mxu1 %v8506_v51 }
 0x367   : > { %3849 = vmatprep.subr.bf16.mxu1 %v8509_v52 }
 0x389   : > { %v3085_v32 = vpop.f32.mrf.mxu0 }
 0x38a   : > { %v3086_v63 = vadd.f32 %v3085_v32, %v2394_v56 }
 0x38b   : > { %v3087_v53 = vpop.f32.mrf.mxu0 }
 0x38c   : > { %v3088_v61 = vadd.f32 %v3087_v53, %v2398_v57 }
 0x38d   : > { %v3089_v40 = vpop.f32.mrf.mxu0 }
 0x38e   : > { %v3090_v62 = vadd.f32 %v3089_v40, %v2394_v56 }
 0x38f   : > { %v3091_v59 = vpop.f32.mrf.mxu0 }
 0x390   : > { %v3092_v2 = vadd.f32 %v3091_v59, %v2398_v57 }
 0x3c9   : > { %v3128_v58 = vpop.f32.mrf.mxu1  ;;  %v3171_v38 = vpop.f32.mrf.mxu0 }
 0x3ca   : > { %v3129_v4 = vadd.f32 %v3128_v58, %v3086_v63  ;;  %v3172_v40 = vadd.f32 %v3171_v38, %v2402_v49  ;;  %v8572_v38 = vld [vmem:[#allocation2 + $0x144] ss:$16 sps:$4 sm:$0xff]  }
 0x3cb   : > { %v3130_v60 = vpop.f32.mrf.mxu1  ;;  %v3173_v45 = vpop.f32.mrf.mxu0 }
 0x3cc   : > { %v3131_v3 = vadd.f32 %v3130_v60, %v3088_v61  ;;  %v3223_v10 = vmax.f32 %v3129_v4, 0.0  ;;  %v3174_v32 = vadd.f32 %v3173_v45, %v2406_v48  ;;  %v8573_v45 = vld [vmem:[#allocation2 + $0x120] ss:$16 sps:$4 sm:$0xff]  }
 0x3cd   : > { %v3132_v1 = vpop.f32.mrf.mxu1  ;;  %v3175_v47 = vpop.f32.mrf.mxu0 }
 0x3ce   : > { %v3133_v54 = vadd.f32 %v3132_v1, %v3090_v62  ;;  %v3224_v8 = vmax.f32 %v3131_v3, 0.0  ;;  %v3176_v53 = vadd.f32 %v3175_v47, %v2402_v49  ;;  %v8576_v47 = vld [vmem:[#allocation2 + $0x100] ss:$16 sps:$4 sm:$0xff]   ;;  %v8581_v49 = vld [vmem:[#allocation2 + $0x2e4] ss:$16 sps:$4 sm:$0xff]  }
 0x3cf   : > { %v3134_v5 = vpop.f32.mrf.mxu1  ;;  %v3177_v51 = vpop.f32.mrf.mxu0 }
 0x3d0   : > { %v3135_v6 = vadd.f32 %v3134_v5, %v3092_v2  ;;  %v3227_v7 = vmax.f32 %v3133_v54, 0.0  ;;  %v3178_v57 = vadd.f32 %v3177_v51, %v2406_v48  ;;  %v8512_v5 = vld [vmem:[%s10113_s1 + $0xcc] ss:$16 sps:$4 sm:$0xff]   ;;  %v8579_v48 = vld [vmem:[#allocation2 + $0x2e0] ss:$16 sps:$4 sm:$0xff]  }
 0x3d1   : > { %v8585_v51 = vld [vmem:[#allocation2 + $0x2c0] ss:$16 sps:$4 sm:$0xff]  }
 0x3d2   : > { %v3228_v9 = vmax.f32 %v3135_v6, 0.0  ;;  %v3231_v13 = vpack.c.bf16 %v3227_v7, %v3223_v10  ;;  %v8546_v6 = vld [vmem:[#allocation2 + $0x40] ss:$16 sps:$4 sm:$0xff]   ;;  %v8548_v7 = vld [vmem:[#allocation2 + $0x44] ss:$16 sps:$4 sm:$0xff]  }
 0x3d3   : > { %v8551_v10 = vld [vmem:[#allocation2 + $0x24] ss:$16 sps:$4 sm:$0xff]  }
 0x3d4   : > { %v3232_v11 = vpack.c.bf16 %v3228_v9, %v3224_v8  ;;  %v8510_v8 = vld [vmem:[%s10113_s1 + $0xc8] ss:$16 sps:$4 sm:$0xff]   ;;  %v8515_v9 = vld [vmem:[%s10113_s1 + $0xac] ss:$16 sps:$4 sm:$0xff]  }
 0x3d6   : > { %3530 = vmatprep.mubr.bf16.mxu0 %v3232_v11  ;;  %v8513_v11 = vld [vmem:[%s10113_s1 + $0xa8] ss:$16 sps:$4 sm:$0xff]  }
 0x3d7   : > { %3531 = vmatmul.mubr.bf16.vlgmr.msra.gmra.mxu0 %v3231_v13  ;;  %v8518_v13 = vld [vmem:[%s10113_s1 + $0x8c] ss:$16 sps:$4 sm:$0xff]  }
 0x3d8   : > { %3807 = vmatpush1.bf16.msra.mxu0 %v8466_v12  ;;  %3838 = vmatprep.mubr.bf16.mxu0 %v9069_v0  ;;  %v8549_v12 = vld [vmem:[#allocation2 + $0x20] ss:$16 sps:$4 sm:$0xff]  }
 0x3d9   : > { %3808 = vmatprep.subr.bf16.mxu0 %v8471_v14  ;;  %v8554_v14 = vld [vmem:[#allocation2 + $0x4] ss:$16 sps:$4 sm:$0xff]  }
 0x3dc   : > { %3809 = vmatpush1.bf16.msra.mxu0 %v8469_v17  ;;  %v8516_v17 = vld [vmem:[%s10113_s1 + $0x88] ss:$16 sps:$4 sm:$0xff]  }
 0x3dd   : > { %3810 = vmatprep.subr.bf16.mxu0 %v8474_v18  ;;  %v8552_v18 = vld [vmem:[#allocation2] ss:$16 sps:$4 sm:$0xff]  }
 0x3e0   : > { %3811 = vmatpush1.bf16.msra.mxu0 %v8472_v19  ;;  %v8557_v19 = vld [vmem:[#allocation2 + $0x1e4] ss:$16 sps:$4 sm:$0xff]  }
 0x3e1   : > { %3812 = vmatprep.subr.bf16.mxu0 %v8477_v20  ;;  %v8521_v20 = vld [vmem:[%s10113_s1 + $0x6c] ss:$16 sps:$4 sm:$0xff]  }
 0x3e4   : > { %3813 = vmatpush1.bf16.msra.mxu0 %v8475_v21  ;;  %v8555_v21 = vld [vmem:[#allocation2 + $0x1e0] ss:$16 sps:$4 sm:$0xff]  }
 0x3e5   : > { %3814 = vmatprep.subr.bf16.mxu0 %v8480_v22  ;;  %v8560_v22 = vld [vmem:[#allocation2 + $0x1c4] ss:$16 sps:$4 sm:$0xff]  }
 0x3e8   : > { %3815 = vmatpush1.bf16.msra.mxu0 %v8478_v23  ;;  %v8519_v23 = vld [vmem:[%s10113_s1 + $0x68] ss:$16 sps:$4 sm:$0xff]  }
 0x3e9   : > { %3816 = vmatprep.subr.bf16.mxu0 %v8483_v15  ;;  %v8524_v15 = vld [vmem:[%s10113_s1 + $0x4c] ss:$16 sps:$4 sm:$0xff]  }
 0x3ec   : > { %3817 = vmatpush1.bf16.msra.mxu0 %v8481_v16  ;;  %v8558_v16 = vld [vmem:[#allocation2 + $0x1c0] ss:$16 sps:$4 sm:$0xff]  }
 0x3ed   : > { %3818 = vmatprep.subr.bf16.mxu0 %v8486_v25  ;;  %v8563_v25 = vld [vmem:[#allocation2 + $0x1a4] ss:$16 sps:$4 sm:$0xff]  }
 0x3f0   : > { %3819 = vmatpush1.bf16.msra.mxu0 %v8484_v26  ;;  %v8522_v26 = vld [vmem:[%s10113_s1 + $0x48] ss:$16 sps:$4 sm:$0xff]  }
 0x3f1   : > { %3820 = vmatprep.subr.bf16.mxu0 %v8489_v27  ;;  %v8527_v27 = vld [vmem:[%s10113_s1 + $0x2c] ss:$16 sps:$4 sm:$0xff]  }
 0x3f4   : > { %3821 = vmatpush1.bf16.msra.mxu0 %v8487_v28  ;;  %v8561_v28 = vld [vmem:[#allocation2 + $0x1a0] ss:$16 sps:$4 sm:$0xff]  }
 0x3f5   : > { %4694 = vmatprep.subr.bf16.mxu0 %v8533_v29  ;;  %v8566_v29 = vld [vmem:[#allocation2 + $0x184] ss:$16 sps:$4 sm:$0xff]  }
 0x3f7   : > { %3839 = vmatmul.mubr.bf16.vlgmr.msra.gmra.mxu0 %v9677_v30 }
 0x3f8   : > { %4695 = vmatpush1.bf16.msra.mxu0 %v8531_v31  ;;  %v8525_v31 = vld [vmem:[%s10113_s1 + $0x28] ss:$16 sps:$4 sm:$0xff]  }
 0x3f9   : > { %4696 = vmatprep.subr.bf16.mxu0 %v8536_v33  ;;  %v8530_v33 = vld [vmem:[%s10113_s1 + $0xc] ss:$16 sps:$4 sm:$0xff]  }
 0x3fc   : > { %4697 = vmatpush1.bf16.msra.mxu0 %v8534_v34  ;;  %v8564_v34 = vld [vmem:[#allocation2 + $0x180] ss:$16 sps:$4 sm:$0xff]  }
 0x3fd   : > { %4698 = vmatprep.subr.bf16.mxu0 %v8539_v35  ;;  %v8569_v35 = vld [vmem:[#allocation2 + $0x164] ss:$16 sps:$4 sm:$0xff]  }
 0x400   : > { %4699 = vmatpush1.bf16.msra.mxu0 %v8537_v36  ;;  %v8528_v36 = vld [vmem:[%s10113_s1 + $0x8] ss:$16 sps:$4 sm:$0xff]  }
 0x401   : > { %4700 = vmatprep.subr.bf16.mxu0 %v8542_v37  ;;  %v8567_v37 = vld [vmem:[#allocation2 + $0x160] ss:$16 sps:$4 sm:$0xff]  }
 0x404   : > { %4701 = vmatpush1.bf16.msra.mxu0 %v8540_v24  ;;  %v8570_v24 = vld [vmem:[#allocation2 + $0x140] ss:$16 sps:$4 sm:$0xff]  }
 0x405   : > { %4702 = vmatprep.subr.bf16.mxu0 %v8545_v44  ;;  %v8575_v44 = vld [vmem:[#allocation2 + $0x124] ss:$16 sps:$4 sm:$0xff]  }
 0x408   : > { %4703 = vmatpush1.bf16.msra.mxu0 %v8543_v46  ;;  %v8578_v46 = vld [vmem:[#allocation2 + $0x104] ss:$16 sps:$4 sm:$0xff]  }
 0x409   : > { %v3214_v50 = vpop.f32.mrf.mxu1  ;;  %4704 = vmatprep.subr.bf16.mxu0 %v8548_v7  ;;  %v8651_v7 = vld [vmem:[#allocation2 + $0x360] ss:$16 sps:$4 sm:$0xff]  }
 0x40a   : > { %v3215_v60 = vadd.f32 %v3214_v50, %v3172_v40  ;;  %v8584_v50 = vld [vmem:[#allocation2 + $0xec] ss:$16 sps:$4 sm:$0xff]   ;;  %v8599_v40 = vld [vmem:[#allocation2 + $0x284] ss:$16 sps:$4 sm:$0xff]  }
 0x40b   : > { %v3216_v52 = vpop.f32.mrf.mxu1 }
 0x40c   : > { %v3217_v58 = vadd.f32 %v3216_v52, %v3174_v32  ;;  %v3225_v3 = vmax.f32 %v3215_v60, 0.0  ;;  %4705 = vmatpush1.bf16.msra.mxu0 %v8546_v6  ;;  %v8591_v52 = vld [vmem:[#allocation2 + $0x2a0] ss:$16 sps:$4 sm:$0xff]   ;;  %v8593_v32 = vld [vmem:[#allocation2 + $0x2a4] ss:$16 sps:$4 sm:$0xff]  }
 0x40d   : > { %v3218_v56 = vpop.f32.mrf.mxu1  ;;  %4706 = vmatprep.subr.bf16.mxu0 %v8551_v10  ;;  %v8617_v60 = vld [vmem:[#allocation2 + $0x224] ss:$16 sps:$4 sm:$0xff]   ;;  %v8657_v10 = vld [vmem:[#allocation2 + $0x340] ss:$16 sps:$4 sm:$0xff]  }
 0x40e   : > { %v3219_v59 = vadd.f32 %v3218_v56, %v3176_v53  ;;  %v3226_v1 = vmax.f32 %v3217_v58, 0.0  ;;  %v8597_v53 = vld [vmem:[#allocation2 + $0x280] ss:$16 sps:$4 sm:$0xff]   ;;  %v8611_v58 = vld [vmem:[#allocation2 + $0x244] ss:$16 sps:$4 sm:$0xff]  }
 0x40f   : > { %v3220_v61 = vpop.f32.mrf.mxu1  ;;  %v8603_v56 = vld [vmem:[#allocation2 + $0x260] ss:$16 sps:$4 sm:$0xff]   ;;  %v8647_v6 = vld [vmem:[#allocation2 + $0x384] ss:$16 sps:$4 sm:$0xff]  }
 0x410   : > { %v3221_v62 = vadd.f32 %v3220_v61, %v3178_v57  ;;  %v3229_v63 = vmax.f32 %v3219_v59, 0.0  ;;  %4707 = vmatpush1.bf16.msra.mxu0 %v8549_v12  ;;  %v8605_v57 = vld [vmem:[#allocation2 + $0x264] ss:$16 sps:$4 sm:$0xff]   ;;  %v8609_v59 = vld [vmem:[#allocation2 + $0x240] ss:$16 sps:$4 sm:$0xff]  }
 0x411   : > { %4708 = vmatprep.subr.bf16.mxu0 %v8554_v14  ;;  %v8615_v61 = vld [vmem:[#allocation2 + $0x220] ss:$16 sps:$4 sm:$0xff]  }
 0x412   : > { %v3230_v2 = vmax.f32 %v3221_v62, 0.0  ;;  %v3233_v4 = vpack.c.bf16 %v3229_v63, %v3225_v3  ;;  %v8623_v62 = vld [vmem:[#allocation2 + $0x204] ss:$16 sps:$4 sm:$0xff]   ;;  %v8621_v63 = vld [vmem:[#allocation2 + $0x200] ss:$16 sps:$4 sm:$0xff]  }
 0x413   : > { %v8633_v3 = vld [vmem:[#allocation2 + $0x3c0] ss:$16 sps:$4 sm:$0xff]  }
 0x414   : > { %v3234_v54 = vpack.c.bf16 %v3230_v2, %v3226_v1  ;;  %4709 = vmatpush1.bf16.msra.mxu0 %v8552_v18  ;;  %v8627_v1 = vld [vmem:[#allocation2 + $0x3e0] ss:$16 sps:$4 sm:$0xff]   ;;  %v8629_v2 = vld [vmem:[#allocation2 + $0x3e4] ss:$16 sps:$4 sm:$0xff]  }
 0x415   : > { %4710 = vmatprep.subr.bf16.mxu0 %v8557_v19  ;;  %v8663_v12 = vld [vmem:[#allocation2 + $0x320] ss:$16 sps:$4 sm:$0xff]  }
 0x416   : > { %3571 = vmatprep.mubr.bf16.mxu1 %v3234_v54  ;;  %v8635_v54 = vld [vmem:[#allocation2 + $0x3c4] ss:$16 sps:$4 sm:$0xff]   ;;  %v8669_v14 = vld [vmem:[#allocation2 + $0x300] ss:$16 sps:$4 sm:$0xff]  }
 0x417   : > { %3572 = vmatmul.mubr.bf16.vlgmr.msra.gmra.mxu1 %v3233_v4  ;;  %v8641_v4 = vld [vmem:[#allocation2 + $0x3a4] ss:$16 sps:$4 sm:$0xff]  }
 0x418   : > { %3850 = vmatpush1.bf16.msra.mxu1 %v8507_v55  ;;  %3881 = vmatprep.mubr.bf16.mxu1 %v9069_v0  ;;  %v8639_v55 = vld [vmem:[#allocation2 + $0x3a0] ss:$16 sps:$4 sm:$0xff]  }
 0x419   : > { %3851 = vmatprep.subr.bf16.mxu1 %v8512_v5  ;;  %4711 = vmatpush2.bf16.msra.mxu0 %v8555_v21  ;;  %v8645_v5 = vld [vmem:[#allocation2 + $0x380] ss:$16 sps:$4 sm:$0xff]  }
 0x41a   : > { %4712 = vmatprep.subr.bf16.mxu0 %v8560_v22  ;;  %v9734_v21 = vld [vmem:[%s10114_s2] sm:$0xf] }
 0x41c   : > { %3852 = vmatpush1.bf16.msra.mxu1 %v8510_v8  ;;  %v8653_v8 = vld [vmem:[#allocation2 + $0x364] ss:$16 sps:$4 sm:$0xff]  }
 0x41d   : > { %3853 = vmatprep.subr.bf16.mxu1 %v8515_v9  ;;  %4713 = vmatpush2.bf16.msra.mxu0 %v8558_v16  ;;  %v8659_v9 = vld [vmem:[#allocation2 + $0x344] ss:$16 sps:$4 sm:$0xff]  }
 0x41e   : > { %4714 = vmatprep.subr.bf16.mxu0 %v8563_v25 }
 0x420   : > { %3854 = vmatpush1.bf16.msra.mxu1 %v8513_v11  ;;  %v8665_v11 = vld [vmem:[#allocation2 + $0x324] ss:$16 sps:$4 sm:$0xff]  }
 0x421   : > { %3855 = vmatprep.subr.bf16.mxu1 %v8518_v13  ;;  %4715 = vmatpush2.bf16.msra.mxu0 %v8561_v28  ;;  %v8671_v13 = vld [vmem:[#allocation2 + $0x304] ss:$16 sps:$4 sm:$0xff]  }
 0x422   : > { %4716 = vmatprep.subr.bf16.mxu0 %v8566_v29 }
 0x424   : > { %3856 = vmatpush1.bf16.msra.mxu1 %v8516_v17  ;;  %v8677_v17 = vld [vmem:[#allocation2 + $0x2ec] ss:$16 sps:$4 sm:$0xff]  }
 0x425   : > { %3857 = vmatprep.subr.bf16.mxu1 %v8521_v20  ;;  %4717 = vmatpush2.bf16.msra.mxu0 %v8564_v34 }
 0x426   : > { %4718 = vmatprep.subr.bf16.mxu0 %v8569_v35 }
 0x428   : > { %3858 = vmatpush1.bf16.msra.mxu1 %v8519_v23  ;;  %v3623_v23 = vrot.slane %v9734_v21, %v9257_v42 }
 0x429   : > { %3859 = vmatprep.subr.bf16.mxu1 %v8524_v15  ;;  %4719 = vmatpush2.bf16.msra.mxu0 %v8567_v37  ;;  %v3627_v15 = vrot.slane %v9734_v21, %v9250_v39 }
 0x42a   : > { %4720 = vmatprep.subr.bf16.mxu0 %v8572_v38 }
 0x42c   : > { %3860 = vmatpush1.bf16.msra.mxu1 %v8522_v26 }
 0x42d   : > { %3861 = vmatprep.subr.bf16.mxu1 %v8527_v27  ;;  %4721 = vmatpush2.bf16.msra.mxu0 %v8570_v24 }
 0x42e   : > { %4722 = vmatprep.subr.bf16.mxu0 %v8575_v44  ;;  %v8582_v44 = vld [vmem:[#allocation2 + $0xe8] ss:$16 sps:$4 sm:$0xff]  }
 0x430   : > { %3862 = vmatpush1.bf16.msra.mxu1 %v8525_v31 }
 0x431   : > { %3863 = vmatprep.subr.bf16.mxu1 %v8530_v33  ;;  %4723 = vmatpush2.bf16.msra.mxu0 %v8573_v45  ;;  %v8590_v45 = vld [vmem:[#allocation2 + $0xcc] ss:$16 sps:$4 sm:$0xff]  }
 0x432   : > { %4724 = vmatprep.subr.bf16.mxu0 %v8578_v46  ;;  %v8588_v46 = vld [vmem:[#allocation2 + $0xc8] ss:$16 sps:$4 sm:$0xff]  }
 0x434   : > { %3864 = vmatpush1.bf16.msra.mxu1 %v8528_v36 }
 0x435   : > { %4725 = vmatpush2.bf16.msra.mxu0 %v8576_v47  ;;  %4737 = vmatprep.subr.bf16.mxu1 %v8581_v49  ;;  %v8596_v47 = vld [vmem:[#allocation2 + $0xac] ss:$16 sps:$4 sm:$0xff]  }
 0x436   : > { %4780 = vmatprep.subr.bf16.mxu0 %v8584_v50  ;;  %v8602_v49 = vld [vmem:[#allocation2 + $0x8c] ss:$16 sps:$4 sm:$0xff]   ;;  %v8600_v50 = vld [vmem:[#allocation2 + $0x88] ss:$16 sps:$4 sm:$0xff]  }
 0x437   : > { %3882 = vmatmul.mubr.bf16.vlgmr.msra.gmra.mxu1 %v9677_v30  ;;  %v8587_v30 = vld [vmem:[#allocation2 + $0x2c4] ss:$16 sps:$4 sm:$0xff]  }
 0x438   : > { %4738 = vmatpush1.bf16.msra.mxu1 %v8579_v48  ;;  %v8594_v48 = vld [vmem:[#allocation2 + $0xa8] ss:$16 sps:$4 sm:$0xff]  }
 0x439   : > { %4739 = vmatprep.subr.bf16.mxu1 %v8587_v30  ;;  %v8606_v30 = vld [vmem:[#allocation2 + $0x68] ss:$16 sps:$4 sm:$0xff]  }
 0x43c   : > { %4740 = vmatpush1.bf16.msra.mxu1 %v8585_v51  ;;  %v8608_v51 = vld [vmem:[#allocation2 + $0x6c] ss:$16 sps:$4 sm:$0xff]  }
 0x43d   : > { %4741 = vmatprep.subr.bf16.mxu1 %v8593_v32 }
 0x440   : > { %4742 = vmatpush1.bf16.msra.mxu1 %v8591_v52  ;;  %v8614_v52 = vld [vmem:[#allocation2 + $0x4c] ss:$16 sps:$4 sm:$0xff]  }
 0x441   : > { %4743 = vmatprep.subr.bf16.mxu1 %v8599_v40  ;;  %v7305_v40 = vld [vmem:[%s10118_s6] ss:$0 sm:$0xff] }
 0x444   : > { %4744 = vmatpush1.bf16.msra.mxu1 %v8597_v53  ;;  %v8612_v53 = vld [vmem:[#allocation2 + $0x48] ss:$16 sps:$4 sm:$0xff]  }
 0x445   : > { %4745 = vmatprep.subr.bf16.mxu1 %v8605_v57  ;;  %v8620_v57 = vld [vmem:[#allocation2 + $0x2c] ss:$16 sps:$4 sm:$0xff]  }
 0x448   : > { %4746 = vmatpush1.bf16.msra.mxu1 %v8603_v56 }
 0x449   : > { %4747 = vmatprep.subr.bf16.mxu1 %v8611_v58 }
 0x44c   : > { %4748 = vmatpush1.bf16.msra.mxu1 %v8609_v59 }
 0x44d   : > { %4749 = vmatprep.subr.bf16.mxu1 %v8617_v60 }
 0x450   : > { %4750 = vmatpush1.bf16.msra.mxu1 %v8615_v61 }
 0x451   : > { %4751 = vmatprep.subr.bf16.mxu1 %v8623_v62  ;;  %v8618_v62 = vld [vmem:[#allocation2 + $0x28] ss:$16 sps:$4 sm:$0xff]  }
 0x454   : > { %4752 = vmatpush1.bf16.msra.mxu1 %v8621_v63 }
 0x455   : > { %4753 = vmatprep.subr.bf16.mxu1 %v8629_v2 }
 0x458   : > { %4754 = vmatpush2.bf16.msra.mxu1 %v8627_v1  ;;  %v8626_v1 = vld [vmem:[#allocation2 + $0xc] ss:$16 sps:$4 sm:$0xff]  }
 0x459   : > { %4755 = vmatprep.subr.bf16.mxu1 %v8635_v54 }
 0x45c   : > { %4756 = vmatpush2.bf16.msra.mxu1 %v8633_v3 }
 0x45d   : > { %4757 = vmatprep.subr.bf16.mxu1 %v8641_v4  ;;  %v8624_v4 = vld [vmem:[#allocation2 + $0x8] ss:$16 sps:$4 sm:$0xff]  }
 0x460   : > { %4758 = vmatpush2.bf16.msra.mxu1 %v8639_v55 }
 0x461   : > { %4759 = vmatprep.subr.bf16.mxu1 %v8647_v6 }
 0x464   : > { %4760 = vmatpush2.bf16.msra.mxu1 %v8645_v5  ;;  %v8632_v5 = vld [vmem:[#allocation2 + $0x1ec] ss:$16 sps:$4 sm:$0xff]  }
 0x465   : > { %4761 = vmatprep.subr.bf16.mxu1 %v8653_v8  ;;  %v8638_v8 = vld [vmem:[#allocation2 + $0x1cc] ss:$16 sps:$4 sm:$0xff]  }
 0x468   : > { %4762 = vmatpush2.bf16.msra.mxu1 %v8651_v7  ;;  %v8630_v7 = vld [vmem:[#allocation2 + $0x1e8] ss:$16 sps:$4 sm:$0xff]  }
 0x469   : > { %4763 = vmatprep.subr.bf16.mxu1 %v8659_v9  ;;  %v8636_v9 = vld [vmem:[#allocation2 + $0x1c8] ss:$16 sps:$4 sm:$0xff]  }
 0x46c   : > { %4764 = vmatpush2.bf16.msra.mxu1 %v8657_v10  ;;  %v8644_v10 = vld [vmem:[#allocation2 + $0x1ac] ss:$16 sps:$4 sm:$0xff]  }
 0x46d   : > { %4765 = vmatprep.subr.bf16.mxu1 %v8665_v11  ;;  %v8642_v11 = vld [vmem:[#allocation2 + $0x1a8] ss:$16 sps:$4 sm:$0xff]  }
 0x470   : > { %4766 = vmatpush2.bf16.msra.mxu1 %v8663_v12  ;;  %v8650_v12 = vld [vmem:[#allocation2 + $0x18c] ss:$16 sps:$4 sm:$0xff]  }
 0x471   : > { %4767 = vmatprep.subr.bf16.mxu1 %v8671_v13  ;;  %v8648_v13 = vld [vmem:[#allocation2 + $0x188] ss:$16 sps:$4 sm:$0xff]  }
 0x474   : > { %4768 = vmatpush2.bf16.msra.mxu1 %v8669_v14  ;;  %v8656_v14 = vld [vmem:[#allocation2 + $0x16c] ss:$16 sps:$4 sm:$0xff]  }
 0x475   : > { %4823 = vmatprep.subr.bf16.mxu1 %v8677_v17  ;;  %v8654_v17 = vld [vmem:[#allocation2 + $0x168] ss:$16 sps:$4 sm:$0xff]  }
 0x497   : > { %v7798_v18 = vpop.f32.mrf.mxu0 }
 0x499   : > { %v7799_v19 = vpop.f32.mrf.mxu0 }
 0x49a   : > { %v7800_v32 = vadd.f32 %v7799_v19, %v7798_v18  ;;  %v8662_v18 = vld [vmem:[#allocation2 + $0x14c] ss:$16 sps:$4 sm:$0xff]   ;;  %v8660_v19 = vld [vmem:[#allocation2 + $0x148] ss:$16 sps:$4 sm:$0xff]  }
 0x49b   : > { %v7801_v20 = vpop.f32.mrf.mxu0 }
 0x49c   : > { %v3533_v59 = vadd.f32 %v7800_v32, %v7305_v40  ;;  %v8681_v32 = vld [vmem:[#allocation2 + $0x2a8] ss:$16 sps:$4 sm:$0xff]  }
 0x49d   : > { %v7802_v22 = vpop.f32.mrf.mxu0 }
 0x49e   : > { %v7803_v60 = vadd.f32 %v7802_v22, %v7801_v20  ;;  %v8668_v22 = vld [vmem:[#allocation2 + $0x12c] ss:$16 sps:$4 sm:$0xff]  }
 0x4a0   : > { %v3536_v54 = vadd.f32 %v7803_v60, %v7305_v40  ;;  %v8728_v40 = vld [vmem:[%s10117_s5 + $0x28] sm:$0xff]   ;;  %v8731_v60 = vld [vmem:[%s10117_s5 + $0x58] sm:$0xff]  }
 0x4b7   : > { %v3840_v16 = vpop.f32.mrf.mxu0 }
 0x4b8   : > { %v3841_v25 = vadd.f32 %v3840_v16, %v3623_v23 }
 0x4b9   : > { %v3842_v26 = vpop.f32.mrf.mxu0 }
 0x4ba   : > { %v3843_v27 = vadd.f32 %v3842_v26, %v3627_v15  ;;  %v3892_v31 = vmax.f32 %v3841_v25, 0.0  ;;  %v8666_v25 = vld [vmem:[#allocation2 + $0x128] ss:$16 sps:$4 sm:$0xff]  }
 0x4bb   : > { %v3844_v28 = vpop.f32.mrf.mxu0 }
 0x4bc   : > { %v3845_v29 = vadd.f32 %v3844_v28, %v3623_v23  ;;  %v3893_v34 = vmax.f32 %v3843_v27, 0.0  ;;  %v3635_v23 = vrot.slane %v9734_v21, %v9255_v41  ;;  %v8674_v27 = vld [vmem:[#allocation2 + $0x10c] ss:$16 sps:$4 sm:$0xff]  }
 0x4bd   : > { %v3846_v33 = vpop.f32.mrf.mxu0 }
 0x4be   : > { %v3896_v35 = vmax.f32 %v3845_v29, 0.0  ;;  %v3847_v36 = vadd.f32 %v3846_v33, %v3627_v15  ;;  %v3631_v15 = vrot.slane %v9734_v21, %v9259_v43 }
 0x4c0   : > { %v3897_v37 = vmax.f32 %v3847_v36, 0.0  ;;  %v9740_v38 = vpack.c.bf16 %v3896_v35, %v3892_v31  ;;  %v8672_v35 = vld [vmem:[#allocation2 + $0x108] ss:$16 sps:$4 sm:$0xff]  }
 0x4c2   : > { %v3901_v24 = vpack.c.bf16 %v3897_v37, %v3893_v34  ;;  %v8723_v37 = vld [vmem:[%s10117_s5 + $0x78] sm:$0xff]  }
 0x4c4   : > { %4726 = vmatprep.mubr.bf16.mxu0 %v3901_v24 }
 0x4c5   : > { %4727 = vmatmul.mubr.bf16.vlgmr.msra.gmra.mxu0 %v9740_v38 }
 0x4c6   : > { %4781 = vmatpush1.bf16.msra.mxu0 %v8582_v44  ;;  %4812 = vmatprep.mubr.bf16.mxu0 %v3901_v24 }
 0x4c7   : > { %4782 = vmatprep.subr.bf16.mxu0 %v8590_v45 }
 0x4ca   : > { %4783 = vmatpush1.bf16.msra.mxu0 %v8588_v46  ;;  %v8675_v46 = vld [vmem:[#allocation2 + $0x2e8] ss:$16 sps:$4 sm:$0xff]  }
 0x4cb   : > { %4784 = vmatprep.subr.bf16.mxu0 %v8596_v47 }
 0x4ce   : > { %4785 = vmatpush1.bf16.msra.mxu0 %v8594_v48  ;;  %v8680_v48 = vld [vmem:[#allocation2 + $0x2cc] ss:$16 sps:$4 sm:$0xff]  }
 0x4cf   : > { %4786 = vmatprep.subr.bf16.mxu0 %v8602_v49  ;;  %v8724_v49 = vld [vmem:[%s10117_s5 + $0x38] sm:$0xff]  }
 0x4d2   : > { %4787 = vmatpush1.bf16.msra.mxu0 %v8600_v50  ;;  %v8678_v50 = vld [vmem:[#allocation2 + $0x2c8] ss:$16 sps:$4 sm:$0xff]  }
 0x4d3   : > { %4788 = vmatprep.subr.bf16.mxu0 %v8608_v51  ;;  %v8725_v51 = vld [vmem:[%s10117_s5 + $0x70] sm:$0xff]  }
 0x4d6   : > { %4789 = vmatpush1.bf16.msra.mxu0 %v8606_v30  ;;  %v8683_v30 = vld [vmem:[#allocation2 + $0x2ac] ss:$16 sps:$4 sm:$0xff]  }
 0x4d7   : > { %v7820_v56 = vpop.f32.mrf.mxu1  ;;  %4790 = vmatprep.subr.bf16.mxu0 %v8614_v52  ;;  %v8726_v52 = vld [vmem:[%s10117_s5 + $0x30] sm:$0xff]  }
 0x4d9   : > { %v7821_v58 = vpop.f32.mrf.mxu1 }
 0x4da   : > { %v7822_v61 = vadd.f32 %v7821_v58, %v7820_v56  ;;  %4791 = vmatpush1.bf16.msra.mxu0 %v8612_v53  ;;  %v8686_v53 = vld [vmem:[#allocation2 + $0x28c] ss:$16 sps:$4 sm:$0xff]   ;;  %v8729_v56 = vld [vmem:[%s10117_s5 + $0x60] sm:$0xff]  }
 0x4db   : > { %v7823_v63 = vpop.f32.mrf.mxu1  ;;  %4792 = vmatprep.subr.bf16.mxu0 %v8620_v57  ;;  %v8684_v57 = vld [vmem:[#allocation2 + $0x288] ss:$16 sps:$4 sm:$0xff]   ;;  %v8689_v58 = vld [vmem:[#allocation2 + $0x26c] ss:$16 sps:$4 sm:$0xff]  }
 0x4dc   : > { %v3574_v2 = vadd.f32 %v7822_v61, %v3533_v59  ;;  %v8730_v59 = vld [vmem:[%s10117_s5 + $0x20] sm:$0xff]   ;;  %v8687_v61 = vld [vmem:[#allocation2 + $0x268] ss:$16 sps:$4 sm:$0xff]  }
 0x4dd   : > { %v7824_v3 = vpop.f32.mrf.mxu1 }
 0x4de   : > { %7338 = vst.msk [vmem:[%s9504_s17 + $0x10] sm:$0xff] %vm1937_vm0, %v3574_v2  ;;  %v7825_v55 = vadd.f32 %v7824_v3, %v7823_v63  ;;  %4793 = vmatpush1.bf16.msra.mxu0 %v8618_v62  ;;  %v8692_v62 = vld [vmem:[#allocation2 + $0x24c] ss:$16 sps:$4 sm:$0xff]   ;;  %v8693_v3 = vld [vmem:[#allocation2 + $0x228] ss:$16 sps:$4 sm:$0xff]  }
 0x4df   : > { %4794 = vmatprep.subr.bf16.mxu0 %v8626_v1  ;;  %v8732_v63 = vld [vmem:[%s10117_s5 + $0x18] sm:$0xff]  }
 0x4e0   : > { %v3577_v6 = vadd.f32 %v7825_v55, %v3536_v54  ;;  %v8690_v1 = vld [vmem:[#allocation2 + $0x248] ss:$16 sps:$4 sm:$0xff]   ;;  %v8695_v2 = vld [vmem:[#allocation2 + $0x22c] ss:$16 sps:$4 sm:$0xff]  }
 0x4e1   : > { %v8698_v54 = vld [vmem:[#allocation2 + $0x20c] ss:$16 sps:$4 sm:$0xff]   ;;  %v8696_v55 = vld [vmem:[#allocation2 + $0x208] ss:$16 sps:$4 sm:$0xff]  }
 0x4e2   : > { %7339 = vst.msk [vmem:[%s9504_s17 + $0x18] sm:$0xff] %vm1937_vm0, %v3577_v6  ;;  %4795 = vmatpush1.bf16.msra.mxu0 %v8624_v4  ;;  %v8701_v4 = vld [vmem:[#allocation2 + $0x3ec] ss:$16 sps:$4 sm:$0xff]  }
 0x4e3   : > { %4796 = vmatprep.subr.bf16.mxu0 %v8632_v5  ;;  %v8699_v5 = vld [vmem:[#allocation2 + $0x3e8] ss:$16 sps:$4 sm:$0xff]   ;;  %v8704_v6 = vld [vmem:[#allocation2 + $0x3cc] ss:$16 sps:$4 sm:$0xff]  }
 0x4e6   : > { %4797 = vmatpush2.bf16.msra.mxu0 %v8630_v7  ;;  %v8702_v7 = vld [vmem:[#allocation2 + $0x3c8] ss:$16 sps:$4 sm:$0xff]  }
 0x4e7   : > { %4798 = vmatprep.subr.bf16.mxu0 %v8638_v8  ;;  %v8707_v8 = vld [vmem:[#allocation2 + $0x3ac] ss:$16 sps:$4 sm:$0xff]  }
 0x4ea   : > { %4799 = vmatpush2.bf16.msra.mxu0 %v8636_v9  ;;  %v8705_v9 = vld [vmem:[#allocation2 + $0x3a8] ss:$16 sps:$4 sm:$0xff]  }
 0x4eb   : > { %4800 = vmatprep.subr.bf16.mxu0 %v8644_v10  ;;  %v8710_v10 = vld [vmem:[#allocation2 + $0x38c] ss:$16 sps:$4 sm:$0xff]  }
 0x4ee   : > { %4801 = vmatpush2.bf16.msra.mxu0 %v8642_v11  ;;  %v8708_v11 = vld [vmem:[#allocation2 + $0x388] ss:$16 sps:$4 sm:$0xff]  }
 0x4ef   : > { %4802 = vmatprep.subr.bf16.mxu0 %v8650_v12  ;;  %v8713_v12 = vld [vmem:[#allocation2 + $0x36c] ss:$16 sps:$4 sm:$0xff]  }
 0x4f2   : > { %4803 = vmatpush2.bf16.msra.mxu0 %v8648_v13  ;;  %v8711_v13 = vld [vmem:[#allocation2 + $0x368] ss:$16 sps:$4 sm:$0xff]  }
 0x4f3   : > { %4804 = vmatprep.subr.bf16.mxu0 %v8656_v14  ;;  %v8716_v14 = vld [vmem:[#allocation2 + $0x34c] ss:$16 sps:$4 sm:$0xff]  }
 0x4f6   : > { %4805 = vmatpush2.bf16.msra.mxu0 %v8654_v17  ;;  %v8714_v17 = vld [vmem:[#allocation2 + $0x348] ss:$16 sps:$4 sm:$0xff]  }
 0x4f7   : > { %v3883_v20 = vpop.f32.mrf.mxu1  ;;  %4806 = vmatprep.subr.bf16.mxu0 %v8662_v18  ;;  %v8719_v18 = vld [vmem:[#allocation2 + $0x32c] ss:$16 sps:$4 sm:$0xff]  }
 0x4f8   : > { %v3884_v31 = vadd.f32 %v3883_v20, %v3631_v15  ;;  %v8722_v20 = vld [vmem:[#allocation2 + $0x30c] ss:$16 sps:$4 sm:$0xff]  }
 0x4f9   : > { %v3885_v16 = vpop.f32.mrf.mxu1 }
 0x4fa   : > { %4807 = vmatpush2.bf16.msra.mxu0 %v8660_v19  ;;  %v3886_v28 = vadd.f32 %v3885_v16, %v3635_v23  ;;  %v3894_v44 = vmax.f32 %v3884_v31, 0.0  ;;  %v8717_v19 = vld [vmem:[#allocation2 + $0x328] ss:$16 sps:$4 sm:$0xff]  }
 0x4fb   : > { %v3887_v26 = vpop.f32.mrf.mxu1  ;;  %4808 = vmatprep.subr.bf16.mxu0 %v8668_v22  ;;  %v8720_v22 = vld [vmem:[#allocation2 + $0x308] ss:$16 sps:$4 sm:$0xff]  }
 0x4fc   : > { %v3888_v29 = vadd.f32 %v3887_v26, %v3631_v15  ;;  %v3895_v21 = vmax.f32 %v3886_v28, 0.0  ;;  %v8734_v15 = vld [vmem:[%s10117_s5 + $0x10] sm:$0xff]   ;;  %v8735_v16 = vld [vmem:[%s10117_s5 + $0x48] sm:$0xff]   ;;  %v8737_v26 = vld [vmem:[%s10117_s5 + $0x40] sm:$0xff]  }
 0x4fd   : > { %v3889_v33 = vpop.f32.mrf.mxu1  ;;  %v8741_v28 = vld [vmem:[%s10113_s1 + $0xe4] ss:$16 sps:$4 sm:$0xff]   ;;  %v8764_v31 = vld [vmem:[%s10117_s5 + $0xb8] sm:$0xff]  }
 0x4fe   : > { %v3890_v34 = vadd.f32 %v3889_v33, %v3635_v23  ;;  %4809 = vmatpush2.bf16.msra.mxu0 %v8666_v25  ;;  %v3898_v36 = vmax.f32 %v3888_v29, 0.0  ;;  %v8733_v23 = vld [vmem:[%s10117_s5 + $0x50] sm:$0xff]   ;;  %v8736_v25 = vld [vmem:[%s10117_s5 + $0x8] sm:$0xff]   ;;  %v8763_v29 = vld [vmem:[%s10117_s5 + $0xf8] sm:$0xff]  }
 0x4ff   : > { %4810 = vmatprep.subr.bf16.mxu0 %v8674_v27  ;;  %v8738_v27 = vld [vmem:[%s10117_s5] sm:$0xff]   ;;  %v8766_v33 = vld [vmem:[%s10117_s5 + $0xf0] sm:$0xff]  }
 0x500   : > { %v3899_v24 = vmax.f32 %v3890_v34, 0.0  ;;  %v9757_v47 = vpack.c.bf16 %v3898_v36, %v3894_v44  ;;  %v8767_v34 = vld [vmem:[%s10117_s5 + $0xb0] sm:$0xff]   ;;  %v8769_v36 = vld [vmem:[%s10117_s5 + $0xa8] sm:$0xff]   ;;  %v8773_v44 = vld [vmem:[%s10117_s5 + $0x98] sm:$0xff]  }
 0x502   : > { %v3903_v45 = vpack.c.bf16 %v3899_v24, %v3895_v21  ;;  %4811 = vmatpush2.bf16.msra.mxu0 %v8672_v35  ;;  %v8768_v35 = vld [vmem:[%s10117_s5 + $0xe8] sm:$0xff]   ;;  %v8771_v21 = vld [vmem:[%s10117_s5 + $0xa0] sm:$0xff]   ;;  %v8772_v24 = vld [vmem:[%s10117_s5 + $0xd8] sm:$0xff]  }
 0x503   : > { %7826 = vmatprep.subr.bf16.mxu0 %v8723_v37  ;;  %v8770_v37 = vld [vmem:[%s10117_s5 + $0xe0] sm:$0xff]  }
 0x504   : > { %4769 = vmatprep.mubr.bf16.mxu1 %v3903_v45 }
 0x505   : > { %4770 = vmatmul.mubr.bf16.vlgmr.msra.gmra.mxu1 %v9757_v47  ;;  %4813 = vmatmul.mubr.bf16.vlgmr.msra.gmra.mxu0 %v9740_v38  ;;  %v8727_v38 = vld [vmem:[%s10117_s5 + $0x68] sm:$0xff]  }
 0x506   : > { %4824 = vmatpush1.bf16.msra.mxu1 %v8675_v46  ;;  %4855 = vmatprep.mubr.bf16.mxu1 %v3903_v45  ;;  %v8774_v45 = vld [vmem:[%s10117_s5 + $0xd0] sm:$0xff]  }
 0x507   : > { %4825 = vmatprep.subr.bf16.mxu1 %v8680_v48  ;;  %7827 = vmatpush3.bf16.msra.mxu0 %v8724_v49  ;;  %v8775_v46 = vld [vmem:[%s10117_s5 + $0x90] sm:$0xff]   ;;  %v8777_v48 = vld [vmem:[%s10117_s5 + $0x88] sm:$0xff]   ;;  %v8778_v49 = vld [vmem:[%s10117_s5 + $0xc0] sm:$0xff]  }
 0x508   : > { %7828 = vmatprep.subr.bf16.mxu0 %v8725_v51  ;;  %v8782_v51 = vld [vmem:[%s10113_s1 + $0xec] ss:$16 sps:$4 sm:$0xff]  }
 0x50a   : > { %4826 = vmatpush1.bf16.msra.mxu1 %v8678_v50  ;;  %v8779_v50 = vld [vmem:[%s10117_s5 + $0x80] sm:$0xff]  }
 0x50b   : > { %4827 = vmatprep.subr.bf16.mxu1 %v8683_v30  ;;  %7829 = vmatpush3.bf16.msra.mxu0 %v8726_v52 }
 0x50c   : > { %7830 = vmatprep.subr.bf16.mxu0 %v8727_v38 }
 0x50e   : > { %4828 = vmatpush1.bf16.msra.mxu1 %v8681_v32  ;;  %v9864_v32 = vld [vmem:[%s10116_s4] sm:$0xf] }
 0x50f   : > { %4829 = vmatprep.subr.bf16.mxu1 %v8686_v53  ;;  %7831 = vmatpush3.bf16.msra.mxu0 %v8728_v40  ;;  %v4037_v53 = vrot.slane %v9864_v32, %v9257_v42  ;;  %v4041_v40 = vrot.slane %v9864_v32, %v9250_v39 }
 0x510   : > { %7832 = vmatprep.subr.bf16.mxu0 %v8729_v56 }
 0x512   : > { %4830 = vmatpush1.bf16.msra.mxu1 %v8684_v57 }
 0x513   : > { %4831 = vmatprep.subr.bf16.mxu1 %v8689_v58  ;;  %7833 = vmatpush3.bf16.msra.mxu0 %v8730_v59 }
 0x514   : > { %7834 = vmatprep.subr.bf16.mxu0 %v8731_v60 }
 0x516   : > { %4832 = vmatpush1.bf16.msra.mxu1 %v8687_v61 }
 0x517   : > { %4833 = vmatprep.subr.bf16.mxu1 %v8692_v62  ;;  %7835 = vmatpush3.bf16.msra.mxu0 %v8732_v63 }
 0x518   : > { %7836 = vmatprep.subr.bf16.mxu0 %v8733_v23  ;;  %v8754_v23 = vld [vmem:[%s10113_s1 + $0x40] ss:$16 sps:$4 sm:$0xff]  }
 0x51a   : > { %4834 = vmatpush1.bf16.msra.mxu1 %v8690_v1 }
 0x51b   : > { %4835 = vmatprep.subr.bf16.mxu1 %v8695_v2  ;;  %7837 = vmatpush3.bf16.msra.mxu0 %v8734_v15  ;;  %v8759_v15 = vld [vmem:[%s10113_s1 + $0x24] ss:$16 sps:$4 sm:$0xff]  }
 0x51c   : > { %7838 = vmatprep.subr.bf16.mxu0 %v8735_v16  ;;  %v8757_v16 = vld [vmem:[%s10113_s1 + $0x20] ss:$16 sps:$4 sm:$0xff]  }
 0x51e   : > { %4836 = vmatpush1.bf16.msra.mxu1 %v8693_v3 }
 0x51f   : > { %4837 = vmatprep.subr.bf16.mxu1 %v8698_v54  ;;  %7839 = vmatpush3.bf16.msra.mxu0 %v8736_v25  ;;  %v8762_v25 = vld [vmem:[%s10113_s1 + $0x4] ss:$16 sps:$4 sm:$0xff]  }
 0x520   : > { %7840 = vmatprep.subr.bf16.mxu0 %v8737_v26  ;;  %v8760_v26 = vld [vmem:[%s10113_s1] ss:$16 sps:$4 sm:$0xff]  }
 0x522   : > { %4838 = vmatpush1.bf16.msra.mxu1 %v8696_v55 }
 0x523   : > { %4839 = vmatprep.subr.bf16.mxu1 %v8701_v4  ;;  %7841 = vmatpush3.bf16.msra.mxu0 %v8738_v27  ;;  %v8806_v27 = vld [vmem:[#allocation2 + $0xe4] ss:$16 sps:$4 sm:$0xff]  }
 0x524   : > { %5449 = vmatprep.subr.bf16.mxu0 %v8741_v28  ;;  %v9917_v28 = vld [vmem:[%s9226_s23 + $0x18] sm:$0xff]  }
 0x526   : > { %4840 = vmatpush2.bf16.msra.mxu1 %v8699_v5 }
 0x527   : > { %4841 = vmatprep.subr.bf16.mxu1 %v8704_v6 }
 0x52a   : > { %4842 = vmatpush2.bf16.msra.mxu1 %v8702_v7 }
 0x52b   : > { %4843 = vmatprep.subr.bf16.mxu1 %v8707_v8 }
 0x52e   : > { %4844 = vmatpush2.bf16.msra.mxu1 %v8705_v9  ;;  %v8739_v9 = vld [vmem:[%s10113_s1 + $0xe0] ss:$16 sps:$4 sm:$0xff]  }
 0x52f   : > { %4845 = vmatprep.subr.bf16.mxu1 %v8710_v10 }
 0x532   : > { %4846 = vmatpush2.bf16.msra.mxu1 %v8708_v11  ;;  %v8744_v11 = vld [vmem:[%s10113_s1 + $0xc4] ss:$16 sps:$4 sm:$0xff]  }
 0x533   : > { %4847 = vmatprep.subr.bf16.mxu1 %v8713_v12  ;;  %v8742_v12 = vld [vmem:[%s10113_s1 + $0xc0] ss:$16 sps:$4 sm:$0xff]  }
 0x536   : > { %4848 = vmatpush2.bf16.msra.mxu1 %v8711_v13  ;;  %v8747_v13 = vld [vmem:[%s10113_s1 + $0xa4] ss:$16 sps:$4 sm:$0xff]  }
 0x537   : > { %4849 = vmatprep.subr.bf16.mxu1 %v8716_v14  ;;  %v8745_v14 = vld [vmem:[%s10113_s1 + $0xa0] ss:$16 sps:$4 sm:$0xff]  }
 0x53a   : > { %4850 = vmatpush2.bf16.msra.mxu1 %v8714_v17  ;;  %v8750_v17 = vld [vmem:[%s10113_s1 + $0x84] ss:$16 sps:$4 sm:$0xff]  }
 0x53b   : > { %4851 = vmatprep.subr.bf16.mxu1 %v8719_v18  ;;  %v8748_v18 = vld [vmem:[%s10113_s1 + $0x80] ss:$16 sps:$4 sm:$0xff]  }
 0x53e   : > { %4852 = vmatpush2.bf16.msra.mxu1 %v8717_v19  ;;  %v8753_v19 = vld [vmem:[%s10113_s1 + $0x64] ss:$16 sps:$4 sm:$0xff]  }
 0x53f   : > { %4853 = vmatprep.subr.bf16.mxu1 %v8722_v20  ;;  %v8751_v20 = vld [vmem:[%s10113_s1 + $0x60] ss:$16 sps:$4 sm:$0xff]  }
 0x542   : > { %4854 = vmatpush2.bf16.msra.mxu1 %v8720_v22  ;;  %v8756_v22 = vld [vmem:[%s10113_s1 + $0x44] ss:$16 sps:$4 sm:$0xff]  }
 0x543   : > { %7848 = vmatprep.subr.bf16.mxu1 %v8763_v29  ;;  %v8804_v29 = vld [vmem:[#allocation2 + $0xe0] ss:$16 sps:$4 sm:$0xff]  }
 0x545   : > { %4856 = vmatmul.mubr.bf16.vlgmr.msra.gmra.mxu1 %v9757_v47  ;;  %v8776_v47 = vld [vmem:[%s10117_s5 + $0xc8] sm:$0xff]  }
 0x546   : > { %7849 = vmatpush3.bf16.msra.mxu1 %v8764_v31  ;;  %v8809_v31 = vld [vmem:[#allocation2 + $0xc4] ss:$16 sps:$4 sm:$0xff]  }
 0x547   : > { %7850 = vmatprep.subr.bf16.mxu1 %v8766_v33  ;;  %v8807_v33 = vld [vmem:[#allocation2 + $0xc0] ss:$16 sps:$4 sm:$0xff]  }
 0x54a   : > { %7851 = vmatpush3.bf16.msra.mxu1 %v8767_v34  ;;  %v8812_v34 = vld [vmem:[#allocation2 + $0xa4] ss:$16 sps:$4 sm:$0xff]  }
 0x54b   : > { %7852 = vmatprep.subr.bf16.mxu1 %v8768_v35  ;;  %v8810_v35 = vld [vmem:[#allocation2 + $0xa0] ss:$16 sps:$4 sm:$0xff]  }
 0x54e   : > { %7853 = vmatpush3.bf16.msra.mxu1 %v8769_v36  ;;  %v8815_v36 = vld [vmem:[#allocation2 + $0x84] ss:$16 sps:$4 sm:$0xff]  }
 0x54f   : > { %7854 = vmatprep.subr.bf16.mxu1 %v8770_v37 }
 0x552   : > { %7855 = vmatpush3.bf16.msra.mxu1 %v8771_v21  ;;  %v8813_v21 = vld [vmem:[#allocation2 + $0x80] ss:$16 sps:$4 sm:$0xff]  }
 0x553   : > { %7856 = vmatprep.subr.bf16.mxu1 %v8772_v24  ;;  %v8818_v24 = vld [vmem:[#allocation2 + $0x64] ss:$16 sps:$4 sm:$0xff]  }
 0x556   : > { %7857 = vmatpush3.bf16.msra.mxu1 %v8773_v44 }
 0x557   : > { %7858 = vmatprep.subr.bf16.mxu1 %v8774_v45  ;;  %v8816_v45 = vld [vmem:[#allocation2 + $0x60] ss:$16 sps:$4 sm:$0xff]  }
 0x55a   : > { %7859 = vmatpush3.bf16.msra.mxu1 %v8775_v46 }
 0x55b   : > { %7860 = vmatprep.subr.bf16.mxu1 %v8776_v47  ;;  %v4049_v47 = vrot.slane %v9864_v32, %v9255_v41 }
 0x55e   : > { %7861 = vmatpush3.bf16.msra.mxu1 %v8777_v48  ;;  %v4045_v48 = vrot.slane %v9864_v32, %v9259_v43  ;;  %v8780_v32 = vld [vmem:[%s10113_s1 + $0xe8] ss:$16 sps:$4 sm:$0xff]  }
 0x55f   : > { %7862 = vmatprep.subr.bf16.mxu1 %v8778_v49 }
 0x562   : > { %7863 = vmatpush3.bf16.msra.mxu1 %v8779_v50 }
 0x563   : > { %5492 = vmatprep.subr.bf16.mxu1 %v8782_v51 }
 0x585   : > { %v4728_v30 = vpop.f32.mrf.mxu0 }
 0x586   : > { %v4729_v61 = vadd.f32 %v4728_v30, %v4037_v53 }
 0x587   : > { %v4730_v52 = vpop.f32.mrf.mxu0 }
 0x588   : > { %v4731_v59 = vadd.f32 %v4730_v52, %v4041_v40 }
 0x589   : > { %v4732_v38 = vpop.f32.mrf.mxu0 }
 0x58a   : > { %v4733_v60 = vadd.f32 %v4732_v38, %v4037_v53 }
 0x58b   : > { %v4734_v57 = vpop.f32.mrf.mxu0 }
 0x58c   : > { %v4735_v63 = vadd.f32 %v4734_v57, %v4041_v40 }
 0x5c5   : > { %v4771_v56 = vpop.f32.mrf.mxu1  ;;  %v4814_v37 = vpop.f32.mrf.mxu0 }
 0x5c6   : > { %v4772_v3 = vadd.f32 %v4771_v56, %v4729_v61  ;;  %v4815_v38 = vadd.f32 %v4814_v37, %v4045_v48  ;;  %v8843_v37 = vld [vmem:[#allocation2 + $0x140] ss:$16 sps:$4 sm:$0xff]  }
 0x5c7   : > { %v4773_v58 = vpop.f32.mrf.mxu1  ;;  %v4816_v44 = vpop.f32.mrf.mxu0 }
 0x5c8   : > { %v4774_v1 = vadd.f32 %v4773_v58, %v4731_v59  ;;  %v4866_v7 = vmax.f32 %v4772_v3, 0.0  ;;  %v4817_v30 = vadd.f32 %v4816_v44, %v4049_v47  ;;  %v8851_v44 = vld [vmem:[#allocation2 + $0x104] ss:$16 sps:$4 sm:$0xff]  }
 0x5c9   : > { %v4775_v62 = vpop.f32.mrf.mxu1  ;;  %v4818_v46 = vpop.f32.mrf.mxu0 }
 0x5ca   : > { %v4776_v2 = vadd.f32 %v4775_v62, %v4733_v60  ;;  %v4867_v5 = vmax.f32 %v4774_v1, 0.0  ;;  %v4819_v52 = vadd.f32 %v4818_v46, %v4045_v48  ;;  %v8852_v46 = vld [vmem:[#allocation2 + $0x2e0] ss:$16 sps:$4 sm:$0xff]   ;;  %v8857_v48 = vld [vmem:[#allocation2 + $0xec] ss:$16 sps:$4 sm:$0xff]  }
 0x5cb   : > { %v4777_v54 = vpop.f32.mrf.mxu1  ;;  %v4820_v50 = vpop.f32.mrf.mxu0 }
 0x5cc   : > { %v4778_v55 = vadd.f32 %v4777_v54, %v4735_v63  ;;  %v4870_v4 = vmax.f32 %v4776_v2, 0.0  ;;  %v4821_v40 = vadd.f32 %v4820_v50, %v4049_v47  ;;  %v8785_v54 = vld [vmem:[%s10113_s1 + $0xcc] ss:$16 sps:$4 sm:$0xff]   ;;  %v8854_v47 = vld [vmem:[#allocation2 + $0x2e4] ss:$16 sps:$4 sm:$0xff]  }
 0x5cd   : > { %v8864_v50 = vld [vmem:[#allocation2 + $0x2a0] ss:$16 sps:$4 sm:$0xff]  }
 0x5ce   : > { %v4871_v6 = vmax.f32 %v4778_v55, 0.0  ;;  %v4874_v10 = vpack.c.bf16 %v4870_v4, %v4866_v7  ;;  %v8819_v55 = vld [vmem:[#allocation2 + $0x40] ss:$16 sps:$4 sm:$0xff]   ;;  %v8821_v4 = vld [vmem:[#allocation2 + $0x44] ss:$16 sps:$4 sm:$0xff]  }
 0x5cf   : > { %v8824_v7 = vld [vmem:[#allocation2 + $0x24] ss:$16 sps:$4 sm:$0xff]  }
 0x5d0   : > { %v4875_v8 = vpack.c.bf16 %v4871_v6, %v4867_v5  ;;  %v8783_v5 = vld [vmem:[%s10113_s1 + $0xc8] ss:$16 sps:$4 sm:$0xff]   ;;  %v8788_v6 = vld [vmem:[%s10113_s1 + $0xac] ss:$16 sps:$4 sm:$0xff]  }
 0x5d2   : > { %5173 = vmatprep.mubr.bf16.mxu0 %v4875_v8  ;;  %v8786_v8 = vld [vmem:[%s10113_s1 + $0xa8] ss:$16 sps:$4 sm:$0xff]  }
 0x5d3   : > { %5174 = vmatmul.mubr.bf16.vlgmr.msra.gmra.mxu0 %v4874_v10  ;;  %v8791_v10 = vld [vmem:[%s10113_s1 + $0x8c] ss:$16 sps:$4 sm:$0xff]  }
 0x5d4   : > { %5450 = vmatpush1.bf16.msra.mxu0 %v8739_v9  ;;  %5481 = vmatprep.mubr.bf16.mxu0 %v9069_v0  ;;  %v8822_v9 = vld [vmem:[#allocation2 + $0x20] ss:$16 sps:$4 sm:$0xff]  }
 0x5d5   : > { %5451 = vmatprep.subr.bf16.mxu0 %v8744_v11  ;;  %v8789_v11 = vld [vmem:[%s10113_s1 + $0x88] ss:$16 sps:$4 sm:$0xff]  }
 0x5d8   : > { %5452 = vmatpush1.bf16.msra.mxu0 %v8742_v12  ;;  %v8825_v12 = vld [vmem:[#allocation2] ss:$16 sps:$4 sm:$0xff]  }
 0x5d9   : > { %5453 = vmatprep.subr.bf16.mxu0 %v8747_v13  ;;  %v8830_v13 = vld [vmem:[#allocation2 + $0x1e4] ss:$16 sps:$4 sm:$0xff]  }
 0x5dc   : > { %5454 = vmatpush1.bf16.msra.mxu0 %v8745_v14  ;;  %v8794_v14 = vld [vmem:[%s10113_s1 + $0x6c] ss:$16 sps:$4 sm:$0xff]  }
 0x5dd   : > { %5455 = vmatprep.subr.bf16.mxu0 %v8750_v17  ;;  %v8828_v17 = vld [vmem:[#allocation2 + $0x1e0] ss:$16 sps:$4 sm:$0xff]  }
 0x5e0   : > { %5456 = vmatpush1.bf16.msra.mxu0 %v8748_v18  ;;  %v8833_v18 = vld [vmem:[#allocation2 + $0x1c4] ss:$16 sps:$4 sm:$0xff]  }
 0x5e1   : > { %5457 = vmatprep.subr.bf16.mxu0 %v8753_v19  ;;  %v8792_v19 = vld [vmem:[%s10113_s1 + $0x68] ss:$16 sps:$4 sm:$0xff]  }
 0x5e4   : > { %5458 = vmatpush1.bf16.msra.mxu0 %v8751_v20  ;;  %v8797_v20 = vld [vmem:[%s10113_s1 + $0x4c] ss:$16 sps:$4 sm:$0xff]  }
 0x5e5   : > { %5459 = vmatprep.subr.bf16.mxu0 %v8756_v22  ;;  %v8831_v22 = vld [vmem:[#allocation2 + $0x1c0] ss:$16 sps:$4 sm:$0xff]  }
 0x5e8   : > { %5460 = vmatpush1.bf16.msra.mxu0 %v8754_v23  ;;  %v8836_v23 = vld [vmem:[#allocation2 + $0x1a4] ss:$16 sps:$4 sm:$0xff]  }
 0x5e9   : > { %5461 = vmatprep.subr.bf16.mxu0 %v8759_v15  ;;  %v8795_v15 = vld [vmem:[%s10113_s1 + $0x48] ss:$16 sps:$4 sm:$0xff]  }
 0x5ec   : > { %5462 = vmatpush1.bf16.msra.mxu0 %v8757_v16  ;;  %v8800_v16 = vld [vmem:[%s10113_s1 + $0x2c] ss:$16 sps:$4 sm:$0xff]  }
 0x5ed   : > { %5463 = vmatprep.subr.bf16.mxu0 %v8762_v25  ;;  %v8834_v25 = vld [vmem:[#allocation2 + $0x1a0] ss:$16 sps:$4 sm:$0xff]  }
 0x5f0   : > { %5464 = vmatpush1.bf16.msra.mxu0 %v8760_v26  ;;  %v8839_v26 = vld [vmem:[#allocation2 + $0x184] ss:$16 sps:$4 sm:$0xff]  }
 0x5f1   : > { %6337 = vmatprep.subr.bf16.mxu0 %v8806_v27  ;;  %v8798_v27 = vld [vmem:[%s10113_s1 + $0x28] ss:$16 sps:$4 sm:$0xff]  }
 0x5f3   : > { %5482 = vmatmul.mubr.bf16.vlgmr.msra.gmra.mxu0 %v9917_v28 }
 0x5f4   : > { %6338 = vmatpush1.bf16.msra.mxu0 %v8804_v29  ;;  %v8803_v29 = vld [vmem:[%s10113_s1 + $0xc] ss:$16 sps:$4 sm:$0xff]  }
 0x5f5   : > { %6339 = vmatprep.subr.bf16.mxu0 %v8809_v31  ;;  %v8837_v31 = vld [vmem:[#allocation2 + $0x180] ss:$16 sps:$4 sm:$0xff]  }
 0x5f8   : > { %6340 = vmatpush1.bf16.msra.mxu0 %v8807_v33  ;;  %v8842_v33 = vld [vmem:[#allocation2 + $0x164] ss:$16 sps:$4 sm:$0xff]  }
 0x5f9   : > { %6341 = vmatprep.subr.bf16.mxu0 %v8812_v34  ;;  %v8801_v34 = vld [vmem:[%s10113_s1 + $0x8] ss:$16 sps:$4 sm:$0xff]  }
 0x5fc   : > { %6342 = vmatpush1.bf16.msra.mxu0 %v8810_v35  ;;  %v8840_v35 = vld [vmem:[#allocation2 + $0x160] ss:$16 sps:$4 sm:$0xff]  }
 0x5fd   : > { %6343 = vmatprep.subr.bf16.mxu0 %v8815_v36  ;;  %v8845_v36 = vld [vmem:[#allocation2 + $0x144] ss:$16 sps:$4 sm:$0xff]  }
 0x600   : > { %6344 = vmatpush1.bf16.msra.mxu0 %v8813_v21  ;;  %v8848_v21 = vld [vmem:[#allocation2 + $0x124] ss:$16 sps:$4 sm:$0xff]  }
 0x601   : > { %6345 = vmatprep.subr.bf16.mxu0 %v8818_v24  ;;  %v8846_v24 = vld [vmem:[#allocation2 + $0x120] ss:$16 sps:$4 sm:$0xff]  }
 0x604   : > { %6346 = vmatpush1.bf16.msra.mxu0 %v8816_v45  ;;  %v8849_v45 = vld [vmem:[#allocation2 + $0x100] ss:$16 sps:$4 sm:$0xff]  }
 0x605   : > { %v4857_v49 = vpop.f32.mrf.mxu1  ;;  %6347 = vmatprep.subr.bf16.mxu0 %v8821_v4  ;;  %v8926_v4 = vld [vmem:[#allocation2 + $0x364] ss:$16 sps:$4 sm:$0xff]  }
 0x606   : > { %v4858_v58 = vadd.f32 %v4857_v49, %v4815_v38  ;;  %v8858_v49 = vld [vmem:[#allocation2 + $0x2c0] ss:$16 sps:$4 sm:$0xff]  }
 0x607   : > { %v4859_v51 = vpop.f32.mrf.mxu1  ;;  %v8876_v38 = vld [vmem:[#allocation2 + $0x260] ss:$16 sps:$4 sm:$0xff]  }
 0x608   : > { %v4860_v56 = vadd.f32 %v4859_v51, %v4817_v30  ;;  %v4868_v1 = vmax.f32 %v4858_v58, 0.0  ;;  %6348 = vmatpush1.bf16.msra.mxu0 %v8819_v55  ;;  %v8866_v51 = vld [vmem:[#allocation2 + $0x2a4] ss:$16 sps:$4 sm:$0xff]   ;;  %v8870_v30 = vld [vmem:[#allocation2 + $0x280] ss:$16 sps:$4 sm:$0xff]  }
 0x609   : > { %v4861_v53 = vpop.f32.mrf.mxu1  ;;  %6349 = vmatprep.subr.bf16.mxu0 %v8824_v7  ;;  %v8888_v58 = vld [vmem:[#allocation2 + $0x220] ss:$16 sps:$4 sm:$0xff]   ;;  %v8938_v7 = vld [vmem:[#allocation2 + $0x324] ss:$16 sps:$4 sm:$0xff]  }
 0x60a   : > { %v4862_v57 = vadd.f32 %v4861_v53, %v4819_v52  ;;  %v4869_v62 = vmax.f32 %v4860_v56, 0.0  ;;  %v8872_v52 = vld [vmem:[#allocation2 + $0x284] ss:$16 sps:$4 sm:$0xff]   ;;  %v8882_v56 = vld [vmem:[#allocation2 + $0x240] ss:$16 sps:$4 sm:$0xff]  }
 0x60b   : > { %v4863_v59 = vpop.f32.mrf.mxu1  ;;  %v8878_v53 = vld [vmem:[#allocation2 + $0x264] ss:$16 sps:$4 sm:$0xff]   ;;  %v8924_v55 = vld [vmem:[#allocation2 + $0x360] ss:$16 sps:$4 sm:$0xff]  }
 0x60c   : > { %v4864_v60 = vadd.f32 %v4863_v59, %v4821_v40  ;;  %v4872_v61 = vmax.f32 %v4862_v57, 0.0  ;;  %6350 = vmatpush1.bf16.msra.mxu0 %v8822_v9  ;;  %v8884_v40 = vld [vmem:[#allocation2 + $0x244] ss:$16 sps:$4 sm:$0xff]  }
 0x60d   : > { %v8890_v57 = vld [vmem:[#allocation2 + $0x224] ss:$16 sps:$4 sm:$0xff]  }
 0x60e   : > { %v4873_v63 = vmax.f32 %v4864_v60, 0.0  ;;  %v4876_v3 = vpack.c.bf16 %v4872_v61, %v4868_v1  ;;  %v8896_v59 = vld [vmem:[#allocation2 + $0x204] ss:$16 sps:$4 sm:$0xff]   ;;  %v8894_v60 = vld [vmem:[#allocation2 + $0x200] ss:$16 sps:$4 sm:$0xff]  }
 0x60f   : > { %v8900_v61 = vld [vmem:[#allocation2 + $0x3e0] ss:$16 sps:$4 sm:$0xff]   ;;  %v8908_v1 = vld [vmem:[#allocation2 + $0x3c4] ss:$16 sps:$4 sm:$0xff]  }
 0x610   : > { %v4877_v2 = vpack.c.bf16 %v4873_v63, %v4869_v62  ;;  %v8902_v62 = vld [vmem:[#allocation2 + $0x3e4] ss:$16 sps:$4 sm:$0xff]   ;;  %v8906_v63 = vld [vmem:[#allocation2 + $0x3c0] ss:$16 sps:$4 sm:$0xff]  }
 0x611   : > { %v8944_v9 = vld [vmem:[#allocation2 + $0x304] ss:$16 sps:$4 sm:$0xff]  }
 0x612   : > { %5214 = vmatprep.mubr.bf16.mxu1 %v4877_v2  ;;  %v8912_v2 = vld [vmem:[#allocation2 + $0x3a0] ss:$16 sps:$4 sm:$0xff]  }
 0x613   : > { %5215 = vmatmul.mubr.bf16.vlgmr.msra.gmra.mxu1 %v4876_v3  ;;  %v8918_v3 = vld [vmem:[#allocation2 + $0x380] ss:$16 sps:$4 sm:$0xff]  }
 0x614   : > { %5493 = vmatpush1.bf16.msra.mxu1 %v8780_v32  ;;  %5524 = vmatprep.mubr.bf16.mxu1 %v9069_v0  ;;  %v8827_v0 = vld [vmem:[#allocation2 + $0x4] ss:$16 sps:$4 sm:$0xff]  }
 0x615   : > { %5494 = vmatprep.subr.bf16.mxu1 %v8785_v54  ;;  %6351 = vmatprep.subr.bf16.mxu0 %v8827_v0  ;;  %v8914_v32 = vld [vmem:[#allocation2 + $0x3a4] ss:$16 sps:$4 sm:$0xff]   ;;  %v8950_v0 = vld [vmem:[#allocation2 + $0x2ec] ss:$16 sps:$4 sm:$0xff]  }
 0x616   : > { %6352 = vmatpush1.bf16.msra.mxu0 %v8825_v12  ;;  %v8920_v54 = vld [vmem:[#allocation2 + $0x384] ss:$16 sps:$4 sm:$0xff]  }
 0x617   : > { %6353 = vmatprep.subr.bf16.mxu0 %v8830_v13 }
 0x618   : > { %5495 = vmatpush1.bf16.msra.mxu1 %v8783_v5  ;;  %v8932_v5 = vld [vmem:[#allocation2 + $0x344] ss:$16 sps:$4 sm:$0xff]  }
 0x619   : > { %5496 = vmatprep.subr.bf16.mxu1 %v8788_v6  ;;  %v8930_v6 = vld [vmem:[#allocation2 + $0x340] ss:$16 sps:$4 sm:$0xff]  }
 0x61a   : > { %6354 = vmatpush2.bf16.msra.mxu0 %v8828_v17 }
 0x61b   : > { %6355 = vmatprep.subr.bf16.mxu0 %v8833_v18 }
 0x61c   : > { %5497 = vmatpush1.bf16.msra.mxu1 %v8786_v8  ;;  %v8936_v8 = vld [vmem:[#allocation2 + $0x320] ss:$16 sps:$4 sm:$0xff]  }
 0x61d   : > { %5498 = vmatprep.subr.bf16.mxu1 %v8791_v10  ;;  %v8942_v10 = vld [vmem:[#allocation2 + $0x300] ss:$16 sps:$4 sm:$0xff]  }
 0x61e   : > { %6356 = vmatpush2.bf16.msra.mxu0 %v8831_v22 }
 0x61f   : > { %6357 = vmatprep.subr.bf16.mxu0 %v8836_v23 }
 0x620   : > { %5499 = vmatpush1.bf16.msra.mxu1 %v8789_v11 }
 0x621   : > { %5500 = vmatprep.subr.bf16.mxu1 %v8794_v14  ;;  %v9974_v14 = vld [vmem:[%s10114_s2] sm:$0xf] }
 0x622   : > { %6358 = vmatpush2.bf16.msra.mxu0 %v8834_v25  ;;  %v5266_v18 = vrot.slane %v9974_v14, %v9257_v42 }
 0x623   : > { %6359 = vmatprep.subr.bf16.mxu0 %v8839_v26 }
 0x624   : > { %5501 = vmatpush1.bf16.msra.mxu1 %v8792_v19  ;;  %v5270_v19 = vrot.slane %v9974_v14, %v9250_v39 }
 0x625   : > { %5502 = vmatprep.subr.bf16.mxu1 %v8797_v20 }
 0x626   : > { %6360 = vmatpush2.bf16.msra.mxu0 %v8837_v31 }
 0x627   : > { %6361 = vmatprep.subr.bf16.mxu0 %v8842_v33 }
 0x628   : > { %5503 = vmatpush1.bf16.msra.mxu1 %v8795_v15 }
 0x629   : > { %5504 = vmatprep.subr.bf16.mxu1 %v8800_v16 }
 0x62a   : > { %6362 = vmatpush2.bf16.msra.mxu0 %v8840_v35 }
 0x62b   : > { %6363 = vmatprep.subr.bf16.mxu0 %v8845_v36 }
 0x62c   : > { %5505 = vmatpush1.bf16.msra.mxu1 %v8798_v27 }
 0x62d   : > { %5506 = vmatprep.subr.bf16.mxu1 %v8803_v29 }
 0x62e   : > { %6364 = vmatpush2.bf16.msra.mxu0 %v8843_v37  ;;  %v8855_v37 = vld [vmem:[#allocation2 + $0xe8] ss:$16 sps:$4 sm:$0xff]  }
 0x62f   : > { %6365 = vmatprep.subr.bf16.mxu0 %v8848_v21  ;;  %v8863_v21 = vld [vmem:[#allocation2 + $0xcc] ss:$16 sps:$4 sm:$0xff]  }
 0x630   : > { %5507 = vmatpush1.bf16.msra.mxu1 %v8801_v34 }
 0x631   : > { %6380 = vmatprep.subr.bf16.mxu1 %v8854_v47  ;;  %v8873_v47 = vld [vmem:[#allocation2 + $0x88] ss:$16 sps:$4 sm:$0xff]  }
 0x632   : > { %6366 = vmatpush2.bf16.msra.mxu0 %v8846_v24  ;;  %v8861_v24 = vld [vmem:[#allocation2 + $0xc8] ss:$16 sps:$4 sm:$0xff]  }
 0x633   : > { %5525 = vmatmul.mubr.bf16.vlgmr.msra.gmra.mxu1 %v9917_v28  ;;  %6367 = vmatprep.subr.bf16.mxu0 %v8851_v44  ;;  %v8860_v28 = vld [vmem:[#allocation2 + $0x2c4] ss:$16 sps:$4 sm:$0xff]   ;;  %v8869_v44 = vld [vmem:[#allocation2 + $0xac] ss:$16 sps:$4 sm:$0xff]  }
 0x634   : > { %6381 = vmatpush1.bf16.msra.mxu1 %v8852_v46  ;;  %v8875_v46 = vld [vmem:[#allocation2 + $0x8c] ss:$16 sps:$4 sm:$0xff]  }
 0x635   : > { %6382 = vmatprep.subr.bf16.mxu1 %v8860_v28  ;;  %v8887_v28 = vld [vmem:[#allocation2 + $0x4c] ss:$16 sps:$4 sm:$0xff]  }
 0x636   : > { %6368 = vmatpush2.bf16.msra.mxu0 %v8849_v45  ;;  %v8867_v45 = vld [vmem:[#allocation2 + $0xa8] ss:$16 sps:$4 sm:$0xff]  }
 0x637   : > { %6423 = vmatprep.subr.bf16.mxu0 %v8857_v48  ;;  %v8881_v48 = vld [vmem:[#allocation2 + $0x6c] ss:$16 sps:$4 sm:$0xff]  }
 0x638   : > { %6383 = vmatpush1.bf16.msra.mxu1 %v8858_v49  ;;  %v8879_v49 = vld [vmem:[#allocation2 + $0x68] ss:$16 sps:$4 sm:$0xff]  }
 0x639   : > { %6384 = vmatprep.subr.bf16.mxu1 %v8866_v51  ;;  %v8885_v51 = vld [vmem:[#allocation2 + $0x48] ss:$16 sps:$4 sm:$0xff]  }
 0x63c   : > { %6385 = vmatpush1.bf16.msra.mxu1 %v8864_v50 }
 0x63d   : > { %6386 = vmatprep.subr.bf16.mxu1 %v8872_v52 }
 0x640   : > { %6387 = vmatpush1.bf16.msra.mxu1 %v8870_v30  ;;  %v7503_v30 = vld [vmem:[%s10118_s6] ss:$0 sm:$0xff] }
 0x641   : > { %6388 = vmatprep.subr.bf16.mxu1 %v8878_v53 }
 0x644   : > { %6389 = vmatpush1.bf16.msra.mxu1 %v8876_v38  ;;  %v8893_v38 = vld [vmem:[#allocation2 + $0x2c] ss:$16 sps:$4 sm:$0xff]  }
 0x645   : > { %6390 = vmatprep.subr.bf16.mxu1 %v8884_v40 }
 0x648   : > { %6391 = vmatpush1.bf16.msra.mxu1 %v8882_v56 }
 0x649   : > { %6392 = vmatprep.subr.bf16.mxu1 %v8890_v57 }
 0x64c   : > { %6393 = vmatpush1.bf16.msra.mxu1 %v8888_v58  ;;  %v8891_v58 = vld [vmem:[#allocation2 + $0x28] ss:$16 sps:$4 sm:$0xff]  }
 0x64d   : > { %6394 = vmatprep.subr.bf16.mxu1 %v8896_v59 }
 0x650   : > { %6395 = vmatpush1.bf16.msra.mxu1 %v8894_v60  ;;  %v8899_v60 = vld [vmem:[#allocation2 + $0xc] ss:$16 sps:$4 sm:$0xff]  }
 0x651   : > { %6396 = vmatprep.subr.bf16.mxu1 %v8902_v62 }
 0x654   : > { %6397 = vmatpush2.bf16.msra.mxu1 %v8900_v61 }
 0x655   : > { %6398 = vmatprep.subr.bf16.mxu1 %v8908_v1 }
 0x658   : > { %6399 = vmatpush2.bf16.msra.mxu1 %v8906_v63 }
 0x659   : > { %6400 = vmatprep.subr.bf16.mxu1 %v8914_v32  ;;  %v8905_v32 = vld [vmem:[#allocation2 + $0x1ec] ss:$16 sps:$4 sm:$0xff]  }
 0x65c   : > { %6401 = vmatpush2.bf16.msra.mxu1 %v8912_v2  ;;  %v8897_v2 = vld [vmem:[#allocation2 + $0x8] ss:$16 sps:$4 sm:$0xff]  }
 0x65d   : > { %6402 = vmatprep.subr.bf16.mxu1 %v8920_v54  ;;  %v8903_v54 = vld [vmem:[#allocation2 + $0x1e8] ss:$16 sps:$4 sm:$0xff]  }
 0x660   : > { %6403 = vmatpush2.bf16.msra.mxu1 %v8918_v3 }
 0x661   : > { %6404 = vmatprep.subr.bf16.mxu1 %v8926_v4  ;;  %v8909_v4 = vld [vmem:[#allocation2 + $0x1c8] ss:$16 sps:$4 sm:$0xff]  }
 0x664   : > { %6405 = vmatpush2.bf16.msra.mxu1 %v8924_v55  ;;  %v8911_v55 = vld [vmem:[#allocation2 + $0x1cc] ss:$16 sps:$4 sm:$0xff]  }
 0x665   : > { %6406 = vmatprep.subr.bf16.mxu1 %v8932_v5  ;;  %v8917_v5 = vld [vmem:[#allocation2 + $0x1ac] ss:$16 sps:$4 sm:$0xff]  }
 0x668   : > { %6407 = vmatpush2.bf16.msra.mxu1 %v8930_v6  ;;  %v8915_v6 = vld [vmem:[#allocation2 + $0x1a8] ss:$16 sps:$4 sm:$0xff]  }
 0x669   : > { %6408 = vmatprep.subr.bf16.mxu1 %v8938_v7  ;;  %v8923_v7 = vld [vmem:[#allocation2 + $0x18c] ss:$16 sps:$4 sm:$0xff]  }
 0x66c   : > { %6409 = vmatpush2.bf16.msra.mxu1 %v8936_v8  ;;  %v8921_v8 = vld [vmem:[#allocation2 + $0x188] ss:$16 sps:$4 sm:$0xff]  }
 0x66d   : > { %6410 = vmatprep.subr.bf16.mxu1 %v8944_v9  ;;  %v8929_v9 = vld [vmem:[#allocation2 + $0x16c] ss:$16 sps:$4 sm:$0xff]  }
 0x670   : > { %6411 = vmatpush2.bf16.msra.mxu1 %v8942_v10  ;;  %v8927_v10 = vld [vmem:[#allocation2 + $0x168] ss:$16 sps:$4 sm:$0xff]  }
 0x671   : > { %6466 = vmatprep.subr.bf16.mxu1 %v8950_v0  ;;  %v8935_v0 = vld [vmem:[#allocation2 + $0x14c] ss:$16 sps:$4 sm:$0xff]  }
 0x693   : > { %v7842_v11 = vpop.f32.mrf.mxu0 }
 0x695   : > { %v7843_v12 = vpop.f32.mrf.mxu0 }
 0x696   : > { %v7844_v50 = vadd.f32 %v7843_v12, %v7842_v11  ;;  %v8933_v11 = vld [vmem:[#allocation2 + $0x148] ss:$16 sps:$4 sm:$0xff]  }
 0x697   : > { %v7845_v13 = vpop.f32.mrf.mxu0 }
 0x698   : > { %v5176_v40 = vadd.f32 %v7844_v50, %v7503_v30  ;;  %v8959_v50 = vld [vmem:[#allocation2 + $0x28c] ss:$16 sps:$4 sm:$0xff]  }
 0x699   : > { %v7846_v17 = vpop.f32.mrf.mxu0 }
 0x69a   : > { %v7847_v56 = vadd.f32 %v7846_v17, %v7845_v13  ;;  %v8941_v13 = vld [vmem:[#allocation2 + $0x12c] ss:$16 sps:$4 sm:$0xff]   ;;  %v5278_v17 = vrot.slane %v9974_v14, %v9255_v41 }
 0x69c   : > { %v5179_v63 = vadd.f32 %v7847_v56, %v7503_v30  ;;  %v9002_v30 = vld [vmem:[%s10117_s5 + $0x60] sm:$0xff]   ;;  %v8960_v56 = vld [vmem:[#allocation2 + $0x268] ss:$16 sps:$4 sm:$0xff]  }
 0x6b3   : > { %v5483_v20 = vpop.f32.mrf.mxu0 }
 0x6b4   : > { %v5484_v22 = vadd.f32 %v5483_v20, %v5266_v18  ;;  %v8939_v20 = vld [vmem:[#allocation2 + $0x128] ss:$16 sps:$4 sm:$0xff]  }
 0x6b5   : > { %v5485_v23 = vpop.f32.mrf.mxu0 }
 0x6b6   : > { %v5486_v15 = vadd.f32 %v5485_v23, %v5270_v19  ;;  %v5535_v26 = vmax.f32 %v5484_v22, 0.0  ;;  %v8947_v23 = vld [vmem:[#allocation2 + $0x10c] ss:$16 sps:$4 sm:$0xff]  }
 0x6b7   : > { %v5487_v16 = vpop.f32.mrf.mxu0 }
 0x6b8   : > { %v5488_v25 = vadd.f32 %v5487_v16, %v5266_v18  ;;  %v5536_v29 = vmax.f32 %v5486_v15, 0.0  ;;  %v5274_v18 = vrot.slane %v9974_v14, %v9259_v43 }
 0x6b9   : > { %v5489_v27 = vpop.f32.mrf.mxu0 }
 0x6ba   : > { %v5539_v31 = vmax.f32 %v5488_v25, 0.0  ;;  %v5490_v33 = vadd.f32 %v5489_v27, %v5270_v19 }
 0x6bc   : > { %v5540_v34 = vmax.f32 %v5490_v33, 0.0  ;;  %v9980_v35 = vpack.c.bf16 %v5539_v31, %v5535_v26  ;;  %v8996_v33 = vld [vmem:[%s10117_s5 + $0x78] sm:$0xff]  }
 0x6be   : > { %v5544_v36 = vpack.c.bf16 %v5540_v34, %v5536_v29  ;;  %v8945_v29 = vld [vmem:[#allocation2 + $0x108] ss:$16 sps:$4 sm:$0xff]  }
 0x6c0   : > { %6369 = vmatprep.mubr.bf16.mxu0 %v5544_v36 }
 0x6c1   : > { %6370 = vmatmul.mubr.bf16.vlgmr.msra.gmra.mxu0 %v9980_v35 }
 0x6c2   : > { %6424 = vmatpush1.bf16.msra.mxu0 %v8855_v37  ;;  %6455 = vmatprep.mubr.bf16.mxu0 %v5544_v36 }
 0x6c3   : > { %6425 = vmatprep.subr.bf16.mxu0 %v8863_v21  ;;  %v8948_v21 = vld [vmem:[#allocation2 + $0x2e8] ss:$16 sps:$4 sm:$0xff]  }
 0x6c6   : > { %6426 = vmatpush1.bf16.msra.mxu0 %v8861_v24 }
 0x6c7   : > { %6427 = vmatprep.subr.bf16.mxu0 %v8869_v44  ;;  %v8953_v44 = vld [vmem:[#allocation2 + $0x2cc] ss:$16 sps:$4 sm:$0xff]  }
 0x6ca   : > { %6428 = vmatpush1.bf16.msra.mxu0 %v8867_v45  ;;  %v8997_v45 = vld [vmem:[%s10117_s5 + $0x38] sm:$0xff]  }
 0x6cb   : > { %6429 = vmatprep.subr.bf16.mxu0 %v8875_v46  ;;  %v8951_v46 = vld [vmem:[#allocation2 + $0x2c8] ss:$16 sps:$4 sm:$0xff]  }
 0x6ce   : > { %6430 = vmatpush1.bf16.msra.mxu0 %v8873_v47  ;;  %v8998_v47 = vld [vmem:[%s10117_s5 + $0x70] sm:$0xff]  }
 0x6cf   : > { %6431 = vmatprep.subr.bf16.mxu0 %v8881_v48  ;;  %v8956_v48 = vld [vmem:[#allocation2 + $0x2ac] ss:$16 sps:$4 sm:$0xff]  }
 0x6d2   : > { %6432 = vmatpush1.bf16.msra.mxu0 %v8879_v49  ;;  %v8999_v49 = vld [vmem:[%s10117_s5 + $0x30] sm:$0xff]  }
 0x6d3   : > { %v7864_v52 = vpop.f32.mrf.mxu1  ;;  %6433 = vmatprep.subr.bf16.mxu0 %v8887_v28  ;;  %v8954_v28 = vld [vmem:[#allocation2 + $0x2a8] ss:$16 sps:$4 sm:$0xff]  }
 0x6d5   : > { %v7865_v53 = vpop.f32.mrf.mxu1 }
 0x6d6   : > { %v7866_v57 = vadd.f32 %v7865_v53, %v7864_v52  ;;  %6434 = vmatpush1.bf16.msra.mxu0 %v8885_v51  ;;  %v9001_v51 = vld [vmem:[%s10117_s5 + $0x28] sm:$0xff]   ;;  %v9003_v53 = vld [vmem:[%s10117_s5 + $0x20] sm:$0xff]  }
 0x6d7   : > { %v7867_v59 = vpop.f32.mrf.mxu1  ;;  %6435 = vmatprep.subr.bf16.mxu0 %v8893_v38  ;;  %v8957_v52 = vld [vmem:[#allocation2 + $0x288] ss:$16 sps:$4 sm:$0xff]   ;;  %v8962_v38 = vld [vmem:[#allocation2 + $0x26c] ss:$16 sps:$4 sm:$0xff]  }
 0x6d8   : > { %v5217_v61 = vadd.f32 %v7866_v57, %v5176_v40  ;;  %v9004_v40 = vld [vmem:[%s10117_s5 + $0x58] sm:$0xff]  }
 0x6d9   : > { %v7868_v62 = vpop.f32.mrf.mxu1  ;;  %v8965_v57 = vld [vmem:[#allocation2 + $0x24c] ss:$16 sps:$4 sm:$0xff]  }
 0x6da   : > { %7536 = vst.msk [vmem:[%s9504_s17 + $0x20] sm:$0xff] %vm1937_vm0, %v5217_v61  ;;  %v7869_v1 = vadd.f32 %v7868_v62, %v7867_v59  ;;  %6436 = vmatpush1.bf16.msra.mxu0 %v8891_v58  ;;  %v9005_v58 = vld [vmem:[%s10117_s5 + $0x18] sm:$0xff]  }
 0x6db   : > { %6437 = vmatprep.subr.bf16.mxu0 %v8899_v60  ;;  %v8963_v59 = vld [vmem:[#allocation2 + $0x248] ss:$16 sps:$4 sm:$0xff]   ;;  %v8968_v60 = vld [vmem:[#allocation2 + $0x22c] ss:$16 sps:$4 sm:$0xff]  }
 0x6dc   : > { %v5220_v3 = vadd.f32 %v7869_v1, %v5179_v63  ;;  %v8966_v61 = vld [vmem:[#allocation2 + $0x228] ss:$16 sps:$4 sm:$0xff]   ;;  %v8971_v62 = vld [vmem:[#allocation2 + $0x20c] ss:$16 sps:$4 sm:$0xff]  }
 0x6dd   : > { %v8969_v63 = vld [vmem:[#allocation2 + $0x208] ss:$16 sps:$4 sm:$0xff]   ;;  %v8974_v1 = vld [vmem:[#allocation2 + $0x3ec] ss:$16 sps:$4 sm:$0xff]  }
 0x6de   : > { %7537 = vst.msk [vmem:[%s9504_s17 + $0x28] sm:$0xff] %vm1937_vm0, %v5220_v3  ;;  %6438 = vmatpush1.bf16.msra.mxu0 %v8897_v2  ;;  %v8972_v2 = vld [vmem:[#allocation2 + $0x3e8] ss:$16 sps:$4 sm:$0xff]  }
 0x6df   : > { %6439 = vmatprep.subr.bf16.mxu0 %v8905_v32  ;;  %v8977_v32 = vld [vmem:[#allocation2 + $0x3cc] ss:$16 sps:$4 sm:$0xff]   ;;  %v8975_v3 = vld [vmem:[#allocation2 + $0x3c8] ss:$16 sps:$4 sm:$0xff]  }
 0x6e2   : > { %6440 = vmatpush2.bf16.msra.mxu0 %v8903_v54  ;;  %v8980_v54 = vld [vmem:[#allocation2 + $0x3ac] ss:$16 sps:$4 sm:$0xff]  }
 0x6e3   : > { %6441 = vmatprep.subr.bf16.mxu0 %v8911_v55  ;;  %v8978_v55 = vld [vmem:[#allocation2 + $0x3a8] ss:$16 sps:$4 sm:$0xff]  }
 0x6e6   : > { %6442 = vmatpush2.bf16.msra.mxu0 %v8909_v4  ;;  %v8983_v4 = vld [vmem:[#allocation2 + $0x38c] ss:$16 sps:$4 sm:$0xff]  }
 0x6e7   : > { %6443 = vmatprep.subr.bf16.mxu0 %v8917_v5  ;;  %v8981_v5 = vld [vmem:[#allocation2 + $0x388] ss:$16 sps:$4 sm:$0xff]  }
 0x6ea   : > { %6444 = vmatpush2.bf16.msra.mxu0 %v8915_v6  ;;  %v8986_v6 = vld [vmem:[#allocation2 + $0x36c] ss:$16 sps:$4 sm:$0xff]  }
 0x6eb   : > { %6445 = vmatprep.subr.bf16.mxu0 %v8923_v7  ;;  %v8984_v7 = vld [vmem:[#allocation2 + $0x368] ss:$16 sps:$4 sm:$0xff]  }
 0x6ee   : > { %6446 = vmatpush2.bf16.msra.mxu0 %v8921_v8  ;;  %v8989_v8 = vld [vmem:[#allocation2 + $0x34c] ss:$16 sps:$4 sm:$0xff]  }
 0x6ef   : > { %6447 = vmatprep.subr.bf16.mxu0 %v8929_v9  ;;  %v8987_v9 = vld [vmem:[#allocation2 + $0x348] ss:$16 sps:$4 sm:$0xff]  }
 0x6f2   : > { %6448 = vmatpush2.bf16.msra.mxu0 %v8927_v10  ;;  %v8992_v10 = vld [vmem:[#allocation2 + $0x32c] ss:$16 sps:$4 sm:$0xff]  }
 0x6f3   : > { %v5526_v12 = vpop.f32.mrf.mxu1  ;;  %6449 = vmatprep.subr.bf16.mxu0 %v8935_v0  ;;  %v8990_v0 = vld [vmem:[#allocation2 + $0x328] ss:$16 sps:$4 sm:$0xff]  }
 0x6f4   : > { %v5527_v25 = vadd.f32 %v5526_v12, %v5274_v18  ;;  %v8993_v12 = vld [vmem:[#allocation2 + $0x308] ss:$16 sps:$4 sm:$0xff]  }
 0x6f5   : > { %v5528_v19 = vpop.f32.mrf.mxu1 }
 0x6f6   : > { %6450 = vmatpush2.bf16.msra.mxu0 %v8933_v11  ;;  %v5529_v15 = vadd.f32 %v5528_v19, %v5278_v17  ;;  %v5537_v36 = vmax.f32 %v5527_v25, 0.0  ;;  %v8995_v11 = vld [vmem:[#allocation2 + $0x30c] ss:$16 sps:$4 sm:$0xff]   ;;  %v9015_v25 = vld [vmem:[%s10117_s5 + $0xb0] sm:$0xff]  }
 0x6f7   : > { %v5530_v22 = vpop.f32.mrf.mxu1  ;;  %6451 = vmatprep.subr.bf16.mxu0 %v8941_v13  ;;  %v9006_v13 = vld [vmem:[%s10117_s5 + $0x50] sm:$0xff]   ;;  %v9009_v19 = vld [vmem:[%s10117_s5 + $0x8] sm:$0xff]  }
 0x6f8   : > { %v5531_v16 = vadd.f32 %v5530_v22, %v5274_v18  ;;  %v5538_v14 = vmax.f32 %v5529_v15, 0.0  ;;  %v9008_v18 = vld [vmem:[%s10117_s5 + $0x48] sm:$0xff]   ;;  %v9011_v22 = vld [vmem:[%s10117_s5] sm:$0xff]   ;;  %v9013_v15 = vld [vmem:[%s10117_s5 + $0xb8] sm:$0xff]  }
 0x6f9   : > { %v5532_v26 = vpop.f32.mrf.mxu1 }
 0x6fa   : > { %v5533_v27 = vadd.f32 %v5532_v26, %v5278_v17  ;;  %6452 = vmatpush2.bf16.msra.mxu0 %v8939_v20  ;;  %v5541_v31 = vmax.f32 %v5531_v16, 0.0  ;;  %v9007_v17 = vld [vmem:[%s10117_s5 + $0x10] sm:$0xff]   ;;  %v9010_v20 = vld [vmem:[%s10117_s5 + $0x40] sm:$0xff]   ;;  %v9016_v26 = vld [vmem:[%s10117_s5 + $0xe8] sm:$0xff]  }
 0x6fb   : > { %6453 = vmatprep.subr.bf16.mxu0 %v8947_v23  ;;  %v9012_v23 = vld [vmem:[%s10117_s5 + $0xf8] sm:$0xff]   ;;  %v9014_v16 = vld [vmem:[%s10117_s5 + $0xf0] sm:$0xff]  }
 0x6fc   : > { %v5542_v34 = vmax.f32 %v5533_v27, 0.0  ;;  %v9997_v24 = vpack.c.bf16 %v5541_v31, %v5537_v36  ;;  %v9017_v27 = vld [vmem:[%s10117_s5 + $0xa8] sm:$0xff]   ;;  %v9019_v31 = vld [vmem:[%s10117_s5 + $0xa0] sm:$0xff]   ;;  %v9023_v36 = vld [vmem:[%s10117_s5 + $0x90] sm:$0xff]  }
 0x6fe   : > { %v5546_v37 = vpack.c.bf16 %v5542_v34, %v5538_v14  ;;  %6454 = vmatpush2.bf16.msra.mxu0 %v8945_v29  ;;  %v9018_v29 = vld [vmem:[%s10117_s5 + $0xe0] sm:$0xff]   ;;  %v9021_v14 = vld [vmem:[%s10117_s5 + $0x98] sm:$0xff]   ;;  %v9022_v34 = vld [vmem:[%s10117_s5 + $0xd0] sm:$0xff]  }
 0x6ff   : > { %7870 = vmatprep.subr.bf16.mxu0 %v8996_v33  ;;  %v9020_v33 = vld [vmem:[%s10117_s5 + $0xd8] sm:$0xff]  }
 0x700   : > { %6412 = vmatprep.mubr.bf16.mxu1 %v5546_v37 }
 0x701   : > { %6413 = vmatmul.mubr.bf16.vlgmr.msra.gmra.mxu1 %v9997_v24  ;;  %6456 = vmatmul.mubr.bf16.vlgmr.msra.gmra.mxu0 %v9980_v35  ;;  %v9000_v35 = vld [vmem:[%s10117_s5 + $0x68] sm:$0xff]  }
 0x702   : > { %6467 = vmatpush1.bf16.msra.mxu1 %v8948_v21  ;;  %6498 = vmatprep.mubr.bf16.mxu1 %v5546_v37  ;;  %v9024_v37 = vld [vmem:[%s10117_s5 + $0xc8] sm:$0xff]  }
 0x703   : > { %6468 = vmatprep.subr.bf16.mxu1 %v8953_v44  ;;  %7871 = vmatpush3.bf16.msra.mxu0 %v8997_v45  ;;  %v9025_v21 = vld [vmem:[%s10117_s5 + $0x88] sm:$0xff]   ;;  %v9027_v44 = vld [vmem:[%s10117_s5 + $0x80] sm:$0xff]  }
 0x704   : > { %7872 = vmatprep.subr.bf16.mxu0 %v8998_v47  ;;  %v5675_v47 = vld [vmem:[%s10116_s4] sm:$0xf] }
 0x706   : > { %6469 = vmatpush1.bf16.msra.mxu1 %v8951_v46 }
 0x707   : > { %6470 = vmatprep.subr.bf16.mxu1 %v8956_v48  ;;  %7873 = vmatpush3.bf16.msra.mxu0 %v8999_v49  ;;  %v5680_v49 = vrot.slane %v5675_v47, %v9257_v42 }
 0x708   : > { %7874 = vmatprep.subr.bf16.mxu0 %v9000_v35 }
 0x70a   : > { %6471 = vmatpush1.bf16.msra.mxu1 %v8954_v28  ;;  %v5684_v28 = vrot.slane %v5675_v47, %v9250_v39 }
 0x70b   : > { %6472 = vmatprep.subr.bf16.mxu1 %v8959_v50  ;;  %7875 = vmatpush3.bf16.msra.mxu0 %v9001_v51 }
 0x70c   : > { %7876 = vmatprep.subr.bf16.mxu0 %v9002_v30 }
 0x70e   : > { %6473 = vmatpush1.bf16.msra.mxu1 %v8957_v52 }
 0x70f   : > { %6474 = vmatprep.subr.bf16.mxu1 %v8962_v38  ;;  %7877 = vmatpush3.bf16.msra.mxu0 %v9003_v53 }
 0x710   : > { %7878 = vmatprep.subr.bf16.mxu0 %v9004_v40 }
 0x712   : > { %6475 = vmatpush1.bf16.msra.mxu1 %v8960_v56 }
 0x713   : > { %6476 = vmatprep.subr.bf16.mxu1 %v8965_v57  ;;  %7879 = vmatpush3.bf16.msra.mxu0 %v9005_v58 }
 0x714   : > { %7880 = vmatprep.subr.bf16.mxu0 %v9006_v13 }
 0x716   : > { %6477 = vmatpush1.bf16.msra.mxu1 %v8963_v59 }
 0x717   : > { %6478 = vmatprep.subr.bf16.mxu1 %v8968_v60  ;;  %7881 = vmatpush3.bf16.msra.mxu0 %v9007_v17 }
 0x718   : > { %7882 = vmatprep.subr.bf16.mxu0 %v9008_v18 }
 0x71a   : > { %6479 = vmatpush1.bf16.msra.mxu1 %v8966_v61 }
 0x71b   : > { %6480 = vmatprep.subr.bf16.mxu1 %v8971_v62  ;;  %7883 = vmatpush3.bf16.msra.mxu0 %v9009_v19 }
 0x71c   : > { %7884 = vmatprep.subr.bf16.mxu0 %v9010_v20 }
 0x71e   : > { %6481 = vmatpush1.bf16.msra.mxu1 %v8969_v63 }
 0x71f   : > { %6482 = vmatprep.subr.bf16.mxu1 %v8974_v1  ;;  %7885 = vmatpush3.bf16.msra.mxu0 %v9011_v22 }
 0x722   : > { %6483 = vmatpush2.bf16.msra.mxu1 %v8972_v2 }
 0x723   : > { %6484 = vmatprep.subr.bf16.mxu1 %v8977_v32 }
 0x726   : > { %6485 = vmatpush2.bf16.msra.mxu1 %v8975_v3 }
 0x727   : > { %6486 = vmatprep.subr.bf16.mxu1 %v8980_v54  ;;  %v5692_v54 = vrot.slane %v5675_v47, %v9255_v41 }
 0x72a   : > { %6487 = vmatpush2.bf16.msra.mxu1 %v8978_v55  ;;  %v5688_v55 = vrot.slane %v5675_v47, %v9259_v43 }
 0x72b   : > { %6488 = vmatprep.subr.bf16.mxu1 %v8983_v4 }
 0x72e   : > { %6489 = vmatpush2.bf16.msra.mxu1 %v8981_v5 }
 0x72f   : > { %6490 = vmatprep.subr.bf16.mxu1 %v8986_v6 }
 0x732   : > { %6491 = vmatpush2.bf16.msra.mxu1 %v8984_v7 }
 0x733   : > { %6492 = vmatprep.subr.bf16.mxu1 %v8989_v8 }
 0x736   : > { %6493 = vmatpush2.bf16.msra.mxu1 %v8987_v9 }
 0x737   : > { %6494 = vmatprep.subr.bf16.mxu1 %v8992_v10 }
 0x73a   : > { %6495 = vmatpush2.bf16.msra.mxu1 %v8990_v0 }
 0x73b   : > { %6496 = vmatprep.subr.bf16.mxu1 %v8995_v11 }
 0x73e   : > { %6497 = vmatpush2.bf16.msra.mxu1 %v8993_v12 }
 0x73f   : > { %7892 = vmatprep.subr.bf16.mxu1 %v9012_v23 }
 0x741   : > { %6499 = vmatmul.mubr.bf16.vlgmr.msra.gmra.mxu1 %v9997_v24  ;;  %v9026_v24 = vld [vmem:[%s10117_s5 + $0xc0] sm:$0xff]  }
 0x742   : > { %7893 = vmatpush3.bf16.msra.mxu1 %v9013_v15 }
 0x743   : > { %7894 = vmatprep.subr.bf16.mxu1 %v9014_v16 }
 0x746   : > { %7895 = vmatpush3.bf16.msra.mxu1 %v9015_v25 }
 0x747   : > { %7896 = vmatprep.subr.bf16.mxu1 %v9016_v26 }
 0x74a   : > { %7897 = vmatpush3.bf16.msra.mxu1 %v9017_v27  ;;  %v7701_v27 = vld [vmem:[%s10118_s6] ss:$0 sm:$0xff] }
 0x74b   : > { %7898 = vmatprep.subr.bf16.mxu1 %v9018_v29 }
 0x74e   : > { %7899 = vmatpush3.bf16.msra.mxu1 %v9019_v31 }
 0x74f   : > { %7900 = vmatprep.subr.bf16.mxu1 %v9020_v33 }
 0x752   : > { %7901 = vmatpush3.bf16.msra.mxu1 %v9021_v14 }
 0x753   : > { %7902 = vmatprep.subr.bf16.mxu1 %v9022_v34 }
 0x756   : > { %7903 = vmatpush3.bf16.msra.mxu1 %v9023_v36 }
 0x757   : > { %7904 = vmatprep.subr.bf16.mxu1 %v9024_v37 }
 0x75a   : > { %7905 = vmatpush3.bf16.msra.mxu1 %v9025_v21 }
 0x75b   : > { %7906 = vmatprep.subr.bf16.mxu1 %v9026_v24 }
 0x75e   : > { %7907 = vmatpush3.bf16.msra.mxu1 %v9027_v44 }
 0x781   : > { %v6371_v45 = vpop.f32.mrf.mxu0 }
 0x782   : > { %v6372_v38 = vadd.f32 %v6371_v45, %v5680_v49 }
 0x783   : > { %v6373_v46 = vpop.f32.mrf.mxu0 }
 0x784   : > { %v6374_v30 = vadd.f32 %v6373_v46, %v5684_v28 }
 0x785   : > { %v6375_v48 = vpop.f32.mrf.mxu0 }
 0x786   : > { %v6376_v52 = vadd.f32 %v6375_v48, %v5680_v49 }
 0x787   : > { %v6377_v50 = vpop.f32.mrf.mxu0 }
 0x788   : > { %v6378_v40 = vadd.f32 %v6377_v50, %v5684_v28 }
 0x7c1   : > { %v6414_v35 = vpop.f32.mrf.mxu1  ;;  %v6457_v39 = vpop.f32.mrf.mxu0 }
 0x7c2   : > { %v6415_v58 = vadd.f32 %v6414_v35, %v6372_v38  ;;  %v6458_v9 = vadd.f32 %v6457_v39, %v5688_v55 }
 0x7c3   : > { %v6416_v51 = vpop.f32.mrf.mxu1  ;;  %v6459_v32 = vpop.f32.mrf.mxu0 }
 0x7c4   : > { %v6417_v56 = vadd.f32 %v6416_v51, %v6374_v30  ;;  %v6509_v1 = vmax.f32 %v6415_v58, 0.0  ;;  %v6460_v7 = vadd.f32 %v6459_v32, %v5692_v54 }
 0x7c5   : > { %v6418_v53 = vpop.f32.mrf.mxu1  ;;  %v6461_v3 = vpop.f32.mrf.mxu0 }
 0x7c6   : > { %v6419_v57 = vadd.f32 %v6418_v53, %v6376_v52  ;;  %v6510_v62 = vmax.f32 %v6417_v56, 0.0  ;;  %v6462_v8 = vadd.f32 %v6461_v3, %v5688_v55 }
 0x7c7   : > { %v6420_v59 = vpop.f32.mrf.mxu1  ;;  %v6463_v5 = vpop.f32.mrf.mxu0 }
 0x7c8   : > { %v6421_v60 = vadd.f32 %v6420_v59, %v6378_v40  ;;  %v6513_v61 = vmax.f32 %v6419_v57, 0.0  ;;  %v6464_v0 = vadd.f32 %v6463_v5, %v5692_v54 }
 0x7ca   : > { %v6514_v63 = vmax.f32 %v6421_v60, 0.0  ;;  %v6517_v2 = vpack.c.bf16 %v6513_v61, %v6509_v1 }
 0x7cc   : > { %v6518_v42 = vpack.c.bf16 %v6514_v63, %v6510_v62 }
 0x7ce   : > { %6816 = vmatprep.mubr.bf16.mxu0 %v6518_v42 }
 0x7cf   : > { %6817 = vmatmul.mubr.bf16.vlgmr.msra.gmra.mxu0 %v6517_v2 }
 0x801   : > { %v6500_v4 = vpop.f32.mrf.mxu1 }
 0x802   : > { %v6501_v13 = vadd.f32 %v6500_v4, %v6458_v9 }
 0x803   : > { %v6502_v6 = vpop.f32.mrf.mxu1 }
 0x804   : > { %v6503_v11 = vadd.f32 %v6502_v6, %v6460_v7  ;;  %v6511_v23 = vmax.f32 %v6501_v13, 0.0 }
 0x805   : > { %v6504_v10 = vpop.f32.mrf.mxu1 }
 0x806   : > { %v6505_v12 = vadd.f32 %v6504_v10, %v6462_v8  ;;  %v6512_v20 = vmax.f32 %v6503_v11, 0.0 }
 0x807   : > { %v6506_v17 = vpop.f32.mrf.mxu1 }
 0x808   : > { %v6507_v18 = vadd.f32 %v6506_v17, %v6464_v0  ;;  %v6515_v19 = vmax.f32 %v6505_v12, 0.0 }
 0x80a   : > { %v6516_v22 = vmax.f32 %v6507_v18, 0.0  ;;  %v6519_v15 = vpack.c.bf16 %v6515_v19, %v6511_v23 }
 0x80c   : > { %v6520_v41 = vpack.c.bf16 %v6516_v22, %v6512_v20 }
 0x80e   : > { %6857 = vmatprep.mubr.bf16.mxu1 %v6520_v41 }
 0x80f   : > { %6858 = vmatmul.mubr.bf16.vlgmr.msra.gmra.mxu1 %v6519_v15 }
 0x88f   : > { %v7886_v43 = vpop.f32.mrf.mxu0 }
 0x891   : > { %v7887_v16 = vpop.f32.mrf.mxu0 }
 0x892   : > { %v7888_v26 = vadd.f32 %v7887_v16, %v7886_v43 }
 0x893   : > { %v7889_v25 = vpop.f32.mrf.mxu0 }
 0x894   : > { %v6819_v14 = vadd.f32 %v7888_v26, %v7701_v27 }
 0x895   : > { %v7890_v29 = vpop.f32.mrf.mxu0 }
 0x896   : > { %v7891_v34 = vadd.f32 %v7890_v29, %v7889_v25 }
 0x898   : > { %v6822_v44 = vadd.f32 %v7891_v34, %v7701_v27 }
 0x8cf   : > { %v7908_v31 = vpop.f32.mrf.mxu1 }
 0x8d1   : > { %v7909_v33 = vpop.f32.mrf.mxu1 }
 0x8d2   : > { %v7910_v36 = vadd.f32 %v7909_v33, %v7908_v31 }
 0x8d3   : > { %v7911_v37 = vpop.f32.mrf.mxu1 }
 0x8d4   : > { %v6860_v21 = vadd.f32 %v7910_v36, %v6819_v14 }
 0x8d5   : > { %v7912_v24 = vpop.f32.mrf.mxu1 }
 0x8d6   : > { %7734 = vst.msk [vmem:[%s9504_s17 + $0x30] sm:$0xff] %vm1937_vm0, %v6860_v21  ;;  %v7913_v45 = vadd.f32 %v7912_v24, %v7911_v37 }
 0x8d8   : > { %v6863_v46 = vadd.f32 %v7913_v45, %v6822_v44 }
 0x8da   : > { %7735 = vst.msk [vmem:[%s9504_s17 + $0x38] sm:$0xff] %vm1937_vm0, %v6863_v46 }
 0x8db PF: > { %s18_s24 = sadd.s32 1, %s9064_s24  }
 0x8dc   : > { %p15_p1 = scmp.ge.s32.totalorder %s18_s24, 4  }
 0x8de   :  { %17 = sbr.rel (!%p15_p1) target bundleno = 1 (0x1), region = 89 }
 0x8e3   :  { %6891 = vsyncpa [#allocation3], 1 }
 0x8e4   :  { %6893 = vsyncpa [#allocation3 + $0x1], 1 }

</bundles_post_ra>
